<compile_context>
chip_gen: v7x
topology: tpu7x:2x2x1
jax: 0.10.0
libtpu: 0.0.40
codegen_flags: <defaults>
</compile_context>

<pallas_src>
import math
from functools import partial

import jax
import jax.numpy as jnp
from jax import lax
from jax.experimental import pallas as pl
from jax.experimental.pallas import tpu as pltpu


def _choose_lane_width(H, W):
    """Lane width LW: multiple of W, >=128 when possible (prefer multiples of 128)."""
    if W % 128 == 0:
        return W
    cands = [r * W for r in range(1, H + 1) if H % r == 0 and r * W >= 128]
    if not cands:
        return H * W
    aligned = [c for c in cands if c % 128 == 0]
    return min(aligned) if aligned else min(cands)


def _choose_row_tile(HR, LW, NTAP):
    """Rows of width LW per output tile: big (amortize per-step overhead), VMEM-budgeted,
    multiple of 8 (or the full extent) so output blocks satisfy the (8,128) rule."""
    cap_elems = max(1024, min(32 * 1024, (6 * 1024 * 1024) // (4 * NTAP)))
    cap_rows = max(1, cap_elems // LW)
    cands = [t for t in range(8, min(HR, cap_rows) + 1, 8) if HR % t == 0]
    return max(cands) if cands else HR


def _conv_bn_gelu_kernel(x_ref, w_ref, b_ref, o_ref, xbuf, win,
                         *, C1, C2, KH, KW, W, ph, pw,
                         LW, TR, HR, NR, img_row0, NTAP):
    # x_ref : (1, C1, HR, LW) VMEM  -- unpadded image, flat H*W regrouped as (HR, LW)
    # w_ref : (C2, NTAP)      SMEM  -- conv weights with BN scale folded in
    # b_ref : (C2,)           SMEM  -- folded BN bias
    # o_ref : (1, C2, TR, LW) VMEM  -- output tile (lane-dense)
    # xbuf  : (C1, NR, LW)    VMEM scratch -- zero-haloed flat image buffer
    # win   : (NTAP, TR, LW)  VMEM scratch -- shifted/masked tap windows for this tile
    h = pl.program_id(1)
    img_off = img_row0 * LW  # flat offset of image[0,0] inside xbuf (multiple of LW)

    # Once per image: zero the halo rows and copy the image into the flat buffer.
    # (VMEM->VMEM DMA; the HBM->VMEM transfer stays on the auto-pipelined BlockSpec path.)
    @pl.when(h == 0)
    def _():
        if img_row0 > 0:
            xbuf[:, 0:img_row0, :] = jnp.zeros((C1, img_row0, LW), jnp.float32)
        tail = NR - (img_row0 + HR)
        if tail > 0:
            xbuf[:, img_row0 + HR:NR, :] = jnp.zeros((C1, tail, LW), jnp.float32)
        pltpu.sync_copy(x_ref.at[0], xbuf.at[:, img_row0:img_row0 + HR, :])

    base = pl.multiple_of(h * TR, TR)  # first buffer row of this output tile

    # Hoisted lane/column index helpers (JAX does not CSE broadcast_in_dim).
    lane = lax.broadcasted_iota(jnp.int32, (TR, LW), 1)
    col = lane % W  # output column of each lane (LW % W == 0, tile start % W == 0)
    colmask = {}
    for kw in range(KW):
        d = kw - pw
        if d < 0:
            colmask[d] = col >= (-d)
        elif d > 0:
            colmask[d] = col < (W - d)

    # Phase 1: build the C1*KH*KW shifted, column-masked windows once per tile.
    # Tap (kh,kw) is a constant flat offset off = img_off + (kh-ph)*W + (kw-pw) = q*LW+m:
    # rows come from sublane-aligned slab loads, the lane phase m from pltpu.roll (XLU).
    t = 0
    for c1 in range(C1):
        for kh in range(KH):
            for kw in range(KW):
                off = img_off + (kh - ph) * W + (kw - pw)
                q, m = divmod(off, LW)
                a = xbuf[c1, pl.ds(base + q, TR), :]
                if m == 0:
                    wnd = a
                else:
                    b = xbuf[c1, pl.ds(base + q + 1, TR), :]
                    ra = pltpu.roll(a, shift=LW - m, axis=1)
                    rb = pltpu.roll(b, shift=LW - m, axis=1)
                    wnd = jnp.where(lane < (LW - m), ra, rb)
                d = kw - pw
                if d != 0:  # zero lanes whose source column falls outside [0, W)
                    wnd = jnp.where(colmask[d], wnd, jnp.float32(0.0))
                win[t] = wnd
                t += 1

    # Phase 2: one live (TR, LW) accumulator; c2 outermost via fori_loop (bounded live
    # ranges -> no spills even for large TR).  Scalar weights broadcast from SMEM.
    inv_sqrt2 = jnp.float32(1.0 / math.sqrt(2.0))

    def c2_body(c2, carry):
        acc = jnp.zeros((TR, LW), jnp.float32)
        for tt in range(NTAP):
            acc = acc + w_ref[c2, tt] * win[tt]
        y = acc + b_ref[c2]
        y = jnp.float32(0.5) * y * (jnp.float32(1.0) + lax.erf(y * inv_sqrt2))
        o_ref[0, c2] = y.astype(o_ref.dtype)
        return carry

    lax.fori_loop(0, C2, c2_body, 0)


def conv_bn_gelu(x_nchw, weight_oihw, gamma, beta, run_mean, run_var, *, eps=1e-3):
    """Conv2d(k, s=1, p=k//2, groups=1, bias=False) -> BatchNorm2d(eval) -> exact GELU.

    NCHW in / NCHW out.  All wrapper reshapes are free (contiguous); no pad pass.
    """
    N, C1, H, W = x_nchw.shape
    C2, c1w, KH, KW = weight_oihw.shape
    assert c1w == C1 and KH % 2 == 1 and KW % 2 == 1, "expects groups=1 and odd kernel"
    ph, pw = KH // 2, KW // 2
    NTAP = C1 * KH * KW

    # Fold eval-mode BN into the conv:  conv(x, w)*scale + bias == conv(x, w*scale) + bias
    scale = gamma / jnp.sqrt(run_var + eps)                           # (C2,)
    bias = (beta - run_mean * scale).astype(jnp.float32)              # (C2,)
    w_folded = (weight_oihw * scale[:, None, None, None]).astype(jnp.float32)
    w_flat = w_folded.reshape(C2, NTAP)  # tap order (c1, kh, kw) matches the kernel

    # Flat lane layout parameters.
    LW = _choose_lane_width(H, W)
    HR = (H * W) // LW
    TR = _choose_row_tile(HR, LW, NTAP)
    img_row0 = (ph * W + pw + LW - 1) // LW            # image start row inside xbuf
    img_off = img_row0 * LW
    q_max = (img_off + ph * W + pw) // LW
    NR = max(img_row0 + HR, HR + q_max + 1)            # buffer rows incl. zero halos

    grid = (N, HR // TR)

    est_vmem = 4 * (2 * C1 * HR * LW + C1 * NR * LW + NTAP * TR * LW
                    + 2 * C2 * TR * LW) + (4 << 20)
    vmem_limit = int(min(110 * 1024 * 1024, max(32 * 1024 * 1024, est_vmem)))

    kernel = partial(_conv_bn_gelu_kernel, C1=C1, C2=C2, KH=KH, KW=KW, W=W,
                     ph=ph, pw=pw, LW=LW, TR=TR, HR=HR, NR=NR,
                     img_row0=img_row0, NTAP=NTAP)

    # Free reshape: (N,C1,H,W) row-major == (N,C1,HR,LW) row-major.
    xr = x_nchw.astype(jnp.float32).reshape(N, C1, HR, LW)

    out = pl.pallas_call(
        kernel,
        out_shape=jax.ShapeDtypeStruct((N, C2, HR, LW), jnp.float32),
        grid_spec=pltpu.PrefetchScalarGridSpec(
            num_scalar_prefetch=0,
            grid=grid,
            in_specs=[
                # Unpadded image: block index constant along h -> DMA'd once per image
                # (auto-pipelined across n), VMEM-resident while output tiles stream out.
                pl.BlockSpec((1, C1, HR, LW), lambda n, h: (n, 0, 0, 0)),
                # Small parameter tables in SMEM (scalar reads + vector broadcast).
                pl.BlockSpec(memory_space=pltpu.MemorySpace.SMEM),
                pl.BlockSpec(memory_space=pltpu.MemorySpace.SMEM),
            ],
            out_specs=pl.BlockSpec((1, C2, TR, LW), lambda n, h: (n, 0, h, 0)),
            scratch_shapes=[
                pltpu.VMEM((C1, NR, LW), jnp.float32),    # zero-haloed flat image
                pltpu.VMEM((NTAP, TR, LW), jnp.float32),  # per-tile tap windows
            ],
        ),
        compiler_params=pltpu.CompilerParams(
            # h must stay sequential per image (scratch filled at h==0); shard on N.
            dimension_semantics=("parallel", "arbitrary"),
            vmem_limit_bytes=vmem_limit,
        ),
    )(xr, w_flat, bias)

    return out.reshape(N, C2, H, W)


def _reference(x_nchw, weight_oihw, gamma, beta, run_mean, run_var, eps=1e-3):
    """Pure-JAX reference (conv + eval BN + exact GELU) for validation."""
    y = lax.conv_general_dilated(
        x_nchw, weight_oihw,
        window_strides=(1, 1), padding="SAME",
        dimension_numbers=("NCHW", "OIHW", "NCHW"),
    )
    scale = (gamma / jnp.sqrt(run_var + eps)).reshape(1, -1, 1, 1)
    bias = (beta - run_mean * gamma / jnp.sqrt(run_var + eps)).reshape(1, -1, 1, 1)
    y = y * scale + bias
    return 0.5 * y * (1.0 + lax.erf(y / jnp.sqrt(2.0)))


if __name__ == "__main__":
    # Small shapes consistent with Conv(c1=4, c2=8, k=3, s=1).
    N, C1, C2, H, W, K = 2, 4, 8, 16, 16, 3

    key = jax.random.PRNGKey(0)
    kx, kw, kg, kb, km, kv = jax.random.split(key, 6)

    x = jax.random.normal(kx, (N, C1, H, W), dtype=jnp.float32)
    weight = jax.random.normal(kw, (C2, C1, K, K), dtype=jnp.float32) * 0.1
    gamma = 1.0 + 0.1 * jax.random.normal(kg, (C2,), dtype=jnp.float32)
    beta = 0.1 * jax.random.normal(kb, (C2,), dtype=jnp.float32)
    run_mean = 0.1 * jax.random.normal(km, (C2,), dtype=jnp.float32)
    run_var = jnp.abs(jax.random.normal(kv, (C2,), dtype=jnp.float32)) + 0.5

    out = conv_bn_gelu(x, weight, gamma, beta, run_mean, run_var)
    out = jax.block_until_ready(out)

    ref = _reference(x, weight, gamma, beta, run_mean, run_var)
    assert out.shape == (N, C2, H, W)
    assert jnp.allclose(out, ref, rtol=1e-4, atol=1e-4), "mismatch vs reference"

    print("KERNEL_OK")
</pallas_src>

<mosaic_0001>
module attributes {stable_mosaic.version = 11 : i64} {
  func.func @_conv_bn_gelu_kernel(%arg0: i32, %arg1: i32, %arg2: memref<1x4x2x128xf32, #tpu.memory_space<vmem>>, %arg3: memref<8x36xf32, #tpu.memory_space<smem>>, %arg4: memref<8xf32, #tpu.memory_space<smem>>, %arg5: memref<1x8x2x128xf32, #tpu.memory_space<vmem>>, %arg6: memref<4x4x128xf32, #tpu.memory_space<vmem>>, %arg7: memref<36x2x128xf32, #tpu.memory_space<vmem>>) attributes {dimension_semantics = [#tpu.dimension_semantics<parallel>, #tpu.dimension_semantics<arbitrary>], iteration_bounds = array<i64: 2, 1>, scalar_prefetch = 0 : i64, scratch_operands = 2 : i64, tpu.core_type = #tpu.core_type<tc>, window_params = [{transform_indices = @transform_0, window_bounds = array<i64: 1, 4, 2, 128>}, {transform_indices = @transform_1, window_bounds = array<i64: 8, 36>}, {transform_indices = @transform_2, window_bounds = array<i64: 8>}, {transform_indices = @transform_3, window_bounds = array<i64: 1, 8, 2, 128>}]} {
    %c0_i32 = arith.constant 0 : i32
    %0 = arith.cmpi eq, %arg1, %c0_i32 : i32
    %1 = arith.extui %0 : i1 to i32
    %c0_i32_0 = arith.constant 0 : i32
    %2 = arith.cmpi ne, %1, %c0_i32_0 : i32
    scf.if %2 {
      %cst_432 = arith.constant 0.000000e+00 : f32
      %647 = vector.broadcast %cst_432 : f32 to vector<4x1x128xf32>
      %c0_433 = arith.constant 0 : index
      %c0_434 = arith.constant 0 : index
      %c0_435 = arith.constant 0 : index
      %648 = vector.load %arg6[%c0_433, %c0_434, %c0_435] : memref<4x4x128xf32, #tpu.memory_space<vmem>>, vector<4x1x128xf32>
      tpu.vector_store %arg6[%c0_433, %c0_434, %c0_435], %647 {strides = array<i32>} : memref<4x4x128xf32, #tpu.memory_space<vmem>>, vector<4x1x128xf32>,
      %cst_436 = arith.constant 0.000000e+00 : f32
      %649 = vector.broadcast %cst_436 : f32 to vector<4x1x128xf32>
      %c0_437 = arith.constant 0 : index
      %c3_438 = arith.constant 3 : index
      %c0_439 = arith.constant 0 : index
      %650 = vector.load %arg6[%c0_437, %c3_438, %c0_439] : memref<4x4x128xf32, #tpu.memory_space<vmem>>, vector<4x1x128xf32>
      tpu.vector_store %arg6[%c0_437, %c3_438, %c0_439], %649 {strides = array<i32>} : memref<4x4x128xf32, #tpu.memory_space<vmem>>, vector<4x1x128xf32>,
      %c0_i32_440 = arith.constant 0 : i32
      "tpu.region"() ({
        %651 = tpu.sem_alloc : memref<!tpu.dma_semaphore, #tpu.memory_space<semaphore_mem>>
        %c0_i32_441 = arith.constant 0 : i32
        %c0_i32_442 = arith.constant 0 : i32
        %c0_i32_443 = arith.constant 0 : i32
        %652 = tpu.memref_slice %arg2[%c0_i32_440, %c0_i32_441, %c0_i32_442, %c0_i32_443] : memref<1x4x2x128xf32, #tpu.memory_space<vmem>> -> memref<1x4x2x128xf32, #tpu.memory_space<vmem>>
        %653 = tpu.memref_squeeze %652 : memref<1x4x2x128xf32, #tpu.memory_space<vmem>> -> memref<4x2x128xf32, #tpu.memory_space<vmem>>
        %c0_i32_444 = arith.constant 0 : i32
        %c1_i32_445 = arith.constant 1 : i32
        %c0_i32_446 = arith.constant 0 : i32
        %654 = tpu.memref_slice %arg6[%c0_i32_444, %c1_i32_445, %c0_i32_446] : memref<4x4x128xf32, #tpu.memory_space<vmem>> -> memref<4x2x128xf32, #tpu.memory_space<vmem>>
        tpu.enqueue_dma source(%653 : memref<4x2x128xf32, #tpu.memory_space<vmem>>) target(%654 : memref<4x2x128xf32, #tpu.memory_space<vmem>>) target_semaphore(%651 : memref<!tpu.dma_semaphore, #tpu.memory_space<semaphore_mem>>)
        %c0_i32_447 = arith.constant 0 : i32
        %c0_i32_448 = arith.constant 0 : i32
        %c0_i32_449 = arith.constant 0 : i32
        %655 = tpu.memref_slice %arg2[%c0_i32_440, %c0_i32_447, %c0_i32_448, %c0_i32_449] : memref<1x4x2x128xf32, #tpu.memory_space<vmem>> -> memref<1x4x2x128xf32, #tpu.memory_space<vmem>>
        %656 = tpu.memref_squeeze %655 : memref<1x4x2x128xf32, #tpu.memory_space<vmem>> -> memref<4x2x128xf32, #tpu.memory_space<vmem>>
        %c0_i32_450 = arith.constant 0 : i32
        %c1_i32_451 = arith.constant 1 : i32
        %c0_i32_452 = arith.constant 0 : i32
        %657 = tpu.memref_slice %arg6[%c0_i32_450, %c1_i32_451, %c0_i32_452] : memref<4x4x128xf32, #tpu.memory_space<vmem>> -> memref<4x2x128xf32, #tpu.memory_space<vmem>>
        tpu.wait_dma2 semaphore(%651 : memref<!tpu.dma_semaphore, #tpu.memory_space<semaphore_mem>>) src(%656 : memref<4x2x128xf32, #tpu.memory_space<vmem>>) dst(%657 : memref<4x2x128xf32, #tpu.memory_space<vmem>>)
        tpu.yield
      }) : () -> ()
    } else {
    }
    %c2_i32 = arith.constant 2 : i32
    %3 = arith.muli %arg1, %c2_i32 : i32
    %4 = tpu.assume_multiple %3, 2 : i32
    %5 = tpu.iota {dimensions = array<i32: 1>} : vector<2x128xi32>
    %c16_i32 = arith.constant 16 : i32
    %c0_i32_1 = arith.constant 0 : i32
    %6 = arith.cmpi eq, %c16_i32, %c0_i32_1 : i32
    %c1_i32 = arith.constant 1 : i32
    %7 = arith.select %6, %c1_i32, %c16_i32 : i32
    %8 = vector.broadcast %7 : i32 to vector<2x128xi32>
    %9 = arith.remsi %5, %8 : vector<2x128xi32>
    %c0_i32_2 = arith.constant 0 : i32
    %10 = vector.broadcast %c0_i32_2 : i32 to vector<2x128xi32>
    %11 = arith.cmpi ne, %9, %10 : vector<2x128xi32>
    %c0_i32_3 = arith.constant 0 : i32
    %12 = vector.broadcast %c0_i32_3 : i32 to vector<2x128xi32>
    %13 = arith.cmpi slt, %9, %12 : vector<2x128xi32>
    %c0_i32_4 = arith.constant 0 : i32
    %14 = arith.cmpi slt, %7, %c0_i32_4 : i32
    %15 = vector.broadcast %14 : i1 to vector<2x128xi1>
    %16 = vector.broadcast %15 : vector<2x128xi1> to vector<2x128xi1>
    %17 = arith.xori %13, %16 : vector<2x128xi1>
    %18 = arith.andi %17, %11 : vector<2x128xi1>
    %19 = vector.broadcast %7 : i32 to vector<2x128xi32>
    %20 = arith.addi %9, %19 : vector<2x128xi32>
    %21 = arith.select %18, %20, %9 : vector<2x128xi1>, vector<2x128xi32>
    %c1_i32_5 = arith.constant 1 : i32
    %22 = vector.broadcast %c1_i32_5 : i32 to vector<2x128xi32>
    %23 = arith.cmpi sge, %21, %22 : vector<2x128xi32>
    %c15_i32 = arith.constant 15 : i32
    %24 = vector.broadcast %c15_i32 : i32 to vector<2x128xi32>
    %25 = arith.cmpi slt, %21, %24 : vector<2x128xi32>
    %c0_i32_6 = arith.constant 0 : i32
    %26 = arith.addi %4, %c0_i32_6 : i32
    %c0 = arith.constant 0 : index
    %27 = arith.index_cast %26 : i32 to index
    %c0_7 = arith.constant 0 : index
    %28 = vector.load %arg6[%c0, %27, %c0_7] : memref<4x4x128xf32, #tpu.memory_space<vmem>>, vector<1x2x128xf32>
    %29 = vector.shape_cast %28 : vector<1x2x128xf32> to vector<2x128xf32>
    %c0_i32_8 = arith.constant 0 : i32
    %30 = arith.addi %4, %c0_i32_8 : i32
    %c1_i32_9 = arith.constant 1 : i32
    %31 = arith.addi %30, %c1_i32_9 : i32
    %c0_10 = arith.constant 0 : index
    %32 = arith.index_cast %31 : i32 to index
    %c0_11 = arith.constant 0 : index
    %33 = vector.load %arg6[%c0_10, %32, %c0_11] : memref<4x4x128xf32, #tpu.memory_space<vmem>>, vector<1x2x128xf32>
    %34 = vector.shape_cast %33 : vector<1x2x128xf32> to vector<2x128xf32>
    %c17_i32 = arith.constant 17 : i32
    %35 = tpu.dynamic_rotate %29 by %c17_i32 dim 1 : vector<2x128xf32>, i32 -> vector<2x128xf32>
    %c17_i32_12 = arith.constant 17 : i32
    %36 = tpu.dynamic_rotate %34 by %c17_i32_12 dim 1 : vector<2x128xf32>, i32 -> vector<2x128xf32>
    %c17_i32_13 = arith.constant 17 : i32
    %37 = vector.broadcast %c17_i32_13 : i32 to vector<2x128xi32>
    %38 = arith.cmpi slt, %5, %37 : vector<2x128xi32>
    %39 = arith.select %38, %35, %36 : vector<2x128xi1>, vector<2x128xf32>
    %cst = arith.constant 0.000000e+00 : f32
    %40 = vector.broadcast %cst : f32 to vector<2x128xf32>
    %41 = arith.select %23, %39, %40 : vector<2x128xi1>, vector<2x128xf32>
    %c0_14 = arith.constant 0 : index
    %c0_15 = arith.constant 0 : index
    %c0_16 = arith.constant 0 : index
    %42 = vector.load %arg7[%c0_14, %c0_15, %c0_16] : memref<36x2x128xf32, #tpu.memory_space<vmem>>, vector<1x2x128xf32>
    %43 = vector.shape_cast %42 : vector<1x2x128xf32> to vector<2x128xf32>
    %44 = vector.shape_cast %41 : vector<2x128xf32> to vector<1x2x128xf32>
    tpu.vector_store %arg7[%c0_14, %c0_15, %c0_16], %44 {strides = array<i32>} : memref<36x2x128xf32, #tpu.memory_space<vmem>>, vector<1x2x128xf32>,
    %c0_i32_17 = arith.constant 0 : i32
    %45 = arith.addi %4, %c0_i32_17 : i32
    %c0_18 = arith.constant 0 : index
    %46 = arith.index_cast %45 : i32 to index
    %c0_19 = arith.constant 0 : index
    %47 = vector.load %arg6[%c0_18, %46, %c0_19] : memref<4x4x128xf32, #tpu.memory_space<vmem>>, vector<1x2x128xf32>
    %48 = vector.shape_cast %47 : vector<1x2x128xf32> to vector<2x128xf32>
    %c0_i32_20 = arith.constant 0 : i32
    %49 = arith.addi %4, %c0_i32_20 : i32
    %c1_i32_21 = arith.constant 1 : i32
    %50 = arith.addi %49, %c1_i32_21 : i32
    %c0_22 = arith.constant 0 : index
    %51 = arith.index_cast %50 : i32 to index
    %c0_23 = arith.constant 0 : index
    %52 = vector.load %arg6[%c0_22, %51, %c0_23] : memref<4x4x128xf32, #tpu.memory_space<vmem>>, vector<1x2x128xf32>
    %53 = vector.shape_cast %52 : vector<1x2x128xf32> to vector<2x128xf32>
    %c16_i32_24 = arith.constant 16 : i32
    %54 = tpu.dynamic_rotate %48 by %c16_i32_24 dim 1 : vector<2x128xf32>, i32 -> vector<2x128xf32>
    %c16_i32_25 = arith.constant 16 : i32
    %55 = tpu.dynamic_rotate %53 by %c16_i32_25 dim 1 : vector<2x128xf32>, i32 -> vector<2x128xf32>
    %c16_i32_26 = arith.constant 16 : i32
    %56 = vector.broadcast %c16_i32_26 : i32 to vector<2x128xi32>
    %57 = arith.cmpi slt, %5, %56 : vector<2x128xi32>
    %58 = arith.select %57, %54, %55 : vector<2x128xi1>, vector<2x128xf32>
    %c1 = arith.constant 1 : index
    %c0_27 = arith.constant 0 : index
    %c0_28 = arith.constant 0 : index
    %59 = vector.load %arg7[%c1, %c0_27, %c0_28] : memref<36x2x128xf32, #tpu.memory_space<vmem>>, vector<1x2x128xf32>
    %60 = vector.shape_cast %59 : vector<1x2x128xf32> to vector<2x128xf32>
    %61 = vector.shape_cast %58 : vector<2x128xf32> to vector<1x2x128xf32>
    tpu.vector_store %arg7[%c1, %c0_27, %c0_28], %61 {strides = array<i32>} : memref<36x2x128xf32, #tpu.memory_space<vmem>>, vector<1x2x128xf32>,
    %c0_i32_29 = arith.constant 0 : i32
    %62 = arith.addi %4, %c0_i32_29 : i32
    %c0_30 = arith.constant 0 : index
    %63 = arith.index_cast %62 : i32 to index
    %c0_31 = arith.constant 0 : index
    %64 = vector.load %arg6[%c0_30, %63, %c0_31] : memref<4x4x128xf32, #tpu.memory_space<vmem>>, vector<1x2x128xf32>
    %65 = vector.shape_cast %64 : vector<1x2x128xf32> to vector<2x128xf32>
    %c0_i32_32 = arith.constant 0 : i32
    %66 = arith.addi %4, %c0_i32_32 : i32
    %c1_i32_33 = arith.constant 1 : i32
    %67 = arith.addi %66, %c1_i32_33 : i32
    %c0_34 = arith.constant 0 : index
    %68 = arith.index_cast %67 : i32 to index
    %c0_35 = arith.constant 0 : index
    %69 = vector.load %arg6[%c0_34, %68, %c0_35] : memref<4x4x128xf32, #tpu.memory_space<vmem>>, vector<1x2x128xf32>
    %70 = vector.shape_cast %69 : vector<1x2x128xf32> to vector<2x128xf32>
    %c15_i32_36 = arith.constant 15 : i32
    %71 = tpu.dynamic_rotate %65 by %c15_i32_36 dim 1 : vector<2x128xf32>, i32 -> vector<2x128xf32>
    %c15_i32_37 = arith.constant 15 : i32
    %72 = tpu.dynamic_rotate %70 by %c15_i32_37 dim 1 : vector<2x128xf32>, i32 -> vector<2x128xf32>
    %c15_i32_38 = arith.constant 15 : i32
    %73 = vector.broadcast %c15_i32_38 : i32 to vector<2x128xi32>
    %74 = arith.cmpi slt, %5, %73 : vector<2x128xi32>
    %75 = arith.select %74, %71, %72 : vector<2x128xi1>, vector<2x128xf32>
    %cst_39 = arith.constant 0.000000e+00 : f32
    %76 = vector.broadcast %cst_39 : f32 to vector<2x128xf32>
    %77 = arith.select %25, %75, %76 : vector<2x128xi1>, vector<2x128xf32>
    %c2 = arith.constant 2 : index
    %c0_40 = arith.constant 0 : index
    %c0_41 = arith.constant 0 : index
    %78 = vector.load %arg7[%c2, %c0_40, %c0_41] : memref<36x2x128xf32, #tpu.memory_space<vmem>>, vector<1x2x128xf32>
    %79 = vector.shape_cast %78 : vector<1x2x128xf32> to vector<2x128xf32>
    %80 = vector.shape_cast %77 : vector<2x128xf32> to vector<1x2x128xf32>
    tpu.vector_store %arg7[%c2, %c0_40, %c0_41], %80 {strides = array<i32>} : memref<36x2x128xf32, #tpu.memory_space<vmem>>, vector<1x2x128xf32>,
    %c0_i32_42 = arith.constant 0 : i32
    %81 = arith.addi %4, %c0_i32_42 : i32
    %c0_43 = arith.constant 0 : index
    %82 = arith.index_cast %81 : i32 to index
    %c0_44 = arith.constant 0 : index
    %83 = vector.load %arg6[%c0_43, %82, %c0_44] : memref<4x4x128xf32, #tpu.memory_space<vmem>>, vector<1x2x128xf32>
    %84 = vector.shape_cast %83 : vector<1x2x128xf32> to vector<2x128xf32>
    %c0_i32_45 = arith.constant 0 : i32
    %85 = arith.addi %4, %c0_i32_45 : i32
    %c1_i32_46 = arith.constant 1 : i32
    %86 = arith.addi %85, %c1_i32_46 : i32
    %c0_47 = arith.constant 0 : index
    %87 = arith.index_cast %86 : i32 to index
    %c0_48 = arith.constant 0 : index
    %88 = vector.load %arg6[%c0_47, %87, %c0_48] : memref<4x4x128xf32, #tpu.memory_space<vmem>>, vector<1x2x128xf32>
    %89 = vector.shape_cast %88 : vector<1x2x128xf32> to vector<2x128xf32>
    %c1_i32_49 = arith.constant 1 : i32
    %90 = tpu.dynamic_rotate %84 by %c1_i32_49 dim 1 : vector<2x128xf32>, i32 -> vector<2x128xf32>
    %c1_i32_50 = arith.constant 1 : i32
    %91 = tpu.dynamic_rotate %89 by %c1_i32_50 dim 1 : vector<2x128xf32>, i32 -> vector<2x128xf32>
    %c1_i32_51 = arith.constant 1 : i32
    %92 = vector.broadcast %c1_i32_51 : i32 to vector<2x128xi32>
    %93 = arith.cmpi slt, %5, %92 : vector<2x128xi32>
    %94 = arith.select %93, %90, %91 : vector<2x128xi1>, vector<2x128xf32>
    %cst_52 = arith.constant 0.000000e+00 : f32
    %95 = vector.broadcast %cst_52 : f32 to vector<2x128xf32>
    %96 = arith.select %23, %94, %95 : vector<2x128xi1>, vector<2x128xf32>
    %c3 = arith.constant 3 : index
    %c0_53 = arith.constant 0 : index
    %c0_54 = arith.constant 0 : index
    %97 = vector.load %arg7[%c3, %c0_53, %c0_54] : memref<36x2x128xf32, #tpu.memory_space<vmem>>, vector<1x2x128xf32>
    %98 = vector.shape_cast %97 : vector<1x2x128xf32> to vector<2x128xf32>
    %99 = vector.shape_cast %96 : vector<2x128xf32> to vector<1x2x128xf32>
    tpu.vector_store %arg7[%c3, %c0_53, %c0_54], %99 {strides = array<i32>} : memref<36x2x128xf32, #tpu.memory_space<vmem>>, vector<1x2x128xf32>,
    %c1_i32_55 = arith.constant 1 : i32
    %100 = arith.addi %4, %c1_i32_55 : i32
    %c0_56 = arith.constant 0 : index
    %101 = arith.index_cast %100 : i32 to index
    %c0_57 = arith.constant 0 : index
    %102 = vector.load %arg6[%c0_56, %101, %c0_57] : memref<4x4x128xf32, #tpu.memory_space<vmem>>, vector<1x2x128xf32>
    %103 = vector.shape_cast %102 : vector<1x2x128xf32> to vector<2x128xf32>
    %c4 = arith.constant 4 : index
    %c0_58 = arith.constant 0 : index
    %c0_59 = arith.constant 0 : index
    %104 = vector.load %arg7[%c4, %c0_58, %c0_59] : memref<36x2x128xf32, #tpu.memory_space<vmem>>, vector<1x2x128xf32>
    %105 = vector.shape_cast %104 : vector<1x2x128xf32> to vector<2x128xf32>
    %106 = vector.shape_cast %103 : vector<2x128xf32> to vector<1x2x128xf32>
    tpu.vector_store %arg7[%c4, %c0_58, %c0_59], %106 {strides = array<i32>} : memref<36x2x128xf32, #tpu.memory_space<vmem>>, vector<1x2x128xf32>,
    %c1_i32_60 = arith.constant 1 : i32
    %107 = arith.addi %4, %c1_i32_60 : i32
    %c0_61 = arith.constant 0 : index
    %108 = arith.index_cast %107 : i32 to index
    %c0_62 = arith.constant 0 : index
    %109 = vector.load %arg6[%c0_61, %108, %c0_62] : memref<4x4x128xf32, #tpu.memory_space<vmem>>, vector<1x2x128xf32>
    %110 = vector.shape_cast %109 : vector<1x2x128xf32> to vector<2x128xf32>
    %c1_i32_63 = arith.constant 1 : i32
    %111 = arith.addi %4, %c1_i32_63 : i32
    %c1_i32_64 = arith.constant 1 : i32
    %112 = arith.addi %111, %c1_i32_64 : i32
    %c0_65 = arith.constant 0 : index
    %113 = arith.index_cast %112 : i32 to index
    %c0_66 = arith.constant 0 : index
    %114 = vector.load %arg6[%c0_65, %113, %c0_66] : memref<4x4x128xf32, #tpu.memory_space<vmem>>, vector<1x2x128xf32>
    %115 = vector.shape_cast %114 : vector<1x2x128xf32> to vector<2x128xf32>
    %c127_i32 = arith.constant 127 : i32
    %116 = tpu.dynamic_rotate %110 by %c127_i32 dim 1 : vector<2x128xf32>, i32 -> vector<2x128xf32>
    %c127_i32_67 = arith.constant 127 : i32
    %117 = tpu.dynamic_rotate %115 by %c127_i32_67 dim 1 : vector<2x128xf32>, i32 -> vector<2x128xf32>
    %c127_i32_68 = arith.constant 127 : i32
    %118 = vector.broadcast %c127_i32_68 : i32 to vector<2x128xi32>
    %119 = arith.cmpi slt, %5, %118 : vector<2x128xi32>
    %120 = arith.select %119, %116, %117 : vector<2x128xi1>, vector<2x128xf32>
    %cst_69 = arith.constant 0.000000e+00 : f32
    %121 = vector.broadcast %cst_69 : f32 to vector<2x128xf32>
    %122 = arith.select %25, %120, %121 : vector<2x128xi1>, vector<2x128xf32>
    %c5 = arith.constant 5 : index
    %c0_70 = arith.constant 0 : index
    %c0_71 = arith.constant 0 : index
    %123 = vector.load %arg7[%c5, %c0_70, %c0_71] : memref<36x2x128xf32, #tpu.memory_space<vmem>>, vector<1x2x128xf32>
    %124 = vector.shape_cast %123 : vector<1x2x128xf32> to vector<2x128xf32>
    %125 = vector.shape_cast %122 : vector<2x128xf32> to vector<1x2x128xf32>
    tpu.vector_store %arg7[%c5, %c0_70, %c0_71], %125 {strides = array<i32>} : memref<36x2x128xf32, #tpu.memory_space<vmem>>, vector<1x2x128xf32>,
    %c1_i32_72 = arith.constant 1 : i32
    %126 = arith.addi %4, %c1_i32_72 : i32
    %c0_73 = arith.constant 0 : index
    %127 = arith.index_cast %126 : i32 to index
    %c0_74 = arith.constant 0 : index
    %128 = vector.load %arg6[%c0_73, %127, %c0_74] : memref<4x4x128xf32, #tpu.memory_space<vmem>>, vector<1x2x128xf32>
    %129 = vector.shape_cast %128 : vector<1x2x128xf32> to vector<2x128xf32>
    %c1_i32_75 = arith.constant 1 : i32
    %130 = arith.addi %4, %c1_i32_75 : i32
    %c1_i32_76 = arith.constant 1 : i32
    %131 = arith.addi %130, %c1_i32_76 : i32
    %c0_77 = arith.constant 0 : index
    %132 = arith.index_cast %131 : i32 to index
    %c0_78 = arith.constant 0 : index
    %133 = vector.load %arg6[%c0_77, %132, %c0_78] : memref<4x4x128xf32, #tpu.memory_space<vmem>>, vector<1x2x128xf32>
    %134 = vector.shape_cast %133 : vector<1x2x128xf32> to vector<2x128xf32>
    %c113_i32 = arith.constant 113 : i32
    %135 = tpu.dynamic_rotate %129 by %c113_i32 dim 1 : vector<2x128xf32>, i32 -> vector<2x128xf32>
    %c113_i32_79 = arith.constant 113 : i32
    %136 = tpu.dynamic_rotate %134 by %c113_i32_79 dim 1 : vector<2x128xf32>, i32 -> vector<2x128xf32>
    %c113_i32_80 = arith.constant 113 : i32
    %137 = vector.broadcast %c113_i32_80 : i32 to vector<2x128xi32>
    %138 = arith.cmpi slt, %5, %137 : vector<2x128xi32>
    %139 = arith.select %138, %135, %136 : vector<2x128xi1>, vector<2x128xf32>
    %cst_81 = arith.constant 0.000000e+00 : f32
    %140 = vector.broadcast %cst_81 : f32 to vector<2x128xf32>
    %141 = arith.select %23, %139, %140 : vector<2x128xi1>, vector<2x128xf32>
    %c6 = arith.constant 6 : index
    %c0_82 = arith.constant 0 : index
    %c0_83 = arith.constant 0 : index
    %142 = vector.load %arg7[%c6, %c0_82, %c0_83] : memref<36x2x128xf32, #tpu.memory_space<vmem>>, vector<1x2x128xf32>
    %143 = vector.shape_cast %142 : vector<1x2x128xf32> to vector<2x128xf32>
    %144 = vector.shape_cast %141 : vector<2x128xf32> to vector<1x2x128xf32>
    tpu.vector_store %arg7[%c6, %c0_82, %c0_83], %144 {strides = array<i32>} : memref<36x2x128xf32, #tpu.memory_space<vmem>>, vector<1x2x128xf32>,
    %c1_i32_84 = arith.constant 1 : i32
    %145 = arith.addi %4, %c1_i32_84 : i32
    %c0_85 = arith.constant 0 : index
    %146 = arith.index_cast %145 : i32 to index
    %c0_86 = arith.constant 0 : index
    %147 = vector.load %arg6[%c0_85, %146, %c0_86] : memref<4x4x128xf32, #tpu.memory_space<vmem>>, vector<1x2x128xf32>
    %148 = vector.shape_cast %147 : vector<1x2x128xf32> to vector<2x128xf32>
    %c1_i32_87 = arith.constant 1 : i32
    %149 = arith.addi %4, %c1_i32_87 : i32
    %c1_i32_88 = arith.constant 1 : i32
    %150 = arith.addi %149, %c1_i32_88 : i32
    %c0_89 = arith.constant 0 : index
    %151 = arith.index_cast %150 : i32 to index
    %c0_90 = arith.constant 0 : index
    %152 = vector.load %arg6[%c0_89, %151, %c0_90] : memref<4x4x128xf32, #tpu.memory_space<vmem>>, vector<1x2x128xf32>
    %153 = vector.shape_cast %152 : vector<1x2x128xf32> to vector<2x128xf32>
    %c112_i32 = arith.constant 112 : i32
    %154 = tpu.dynamic_rotate %148 by %c112_i32 dim 1 : vector<2x128xf32>, i32 -> vector<2x128xf32>
    %c112_i32_91 = arith.constant 112 : i32
    %155 = tpu.dynamic_rotate %153 by %c112_i32_91 dim 1 : vector<2x128xf32>, i32 -> vector<2x128xf32>
    %c112_i32_92 = arith.constant 112 : i32
    %156 = vector.broadcast %c112_i32_92 : i32 to vector<2x128xi32>
    %157 = arith.cmpi slt, %5, %156 : vector<2x128xi32>
    %158 = arith.select %157, %154, %155 : vector<2x128xi1>, vector<2x128xf32>
    %c7 = arith.constant 7 : index
    %c0_93 = arith.constant 0 : index
    %c0_94 = arith.constant 0 : index
    %159 = vector.load %arg7[%c7, %c0_93, %c0_94] : memref<36x2x128xf32, #tpu.memory_space<vmem>>, vector<1x2x128xf32>
    %160 = vector.shape_cast %159 : vector<1x2x128xf32> to vector<2x128xf32>
    %161 = vector.shape_cast %158 : vector<2x128xf32> to vector<1x2x128xf32>
    tpu.vector_store %arg7[%c7, %c0_93, %c0_94], %161 {strides = array<i32>} : memref<36x2x128xf32, #tpu.memory_space<vmem>>, vector<1x2x128xf32>,
    %c1_i32_95 = arith.constant 1 : i32
    %162 = arith.addi %4, %c1_i32_95 : i32
    %c0_96 = arith.constant 0 : index
    %163 = arith.index_cast %162 : i32 to index
    %c0_97 = arith.constant 0 : index
    %164 = vector.load %arg6[%c0_96, %163, %c0_97] : memref<4x4x128xf32, #tpu.memory_space<vmem>>, vector<1x2x128xf32>
    %165 = vector.shape_cast %164 : vector<1x2x128xf32> to vector<2x128xf32>
    %c1_i32_98 = arith.constant 1 : i32
    %166 = arith.addi %4, %c1_i32_98 : i32
    %c1_i32_99 = arith.constant 1 : i32
    %167 = arith.addi %166, %c1_i32_99 : i32
    %c0_100 = arith.constant 0 : index
    %168 = arith.index_cast %167 : i32 to index
    %c0_101 = arith.constant 0 : index
    %169 = vector.load %arg6[%c0_100, %168, %c0_101] : memref<4x4x128xf32, #tpu.memory_space<vmem>>, vector<1x2x128xf32>
    %170 = vector.shape_cast %169 : vector<1x2x128xf32> to vector<2x128xf32>
    %c111_i32 = arith.constant 111 : i32
    %171 = tpu.dynamic_rotate %165 by %c111_i32 dim 1 : vector<2x128xf32>, i32 -> vector<2x128xf32>
    %c111_i32_102 = arith.constant 111 : i32
    %172 = tpu.dynamic_rotate %170 by %c111_i32_102 dim 1 : vector<2x128xf32>, i32 -> vector<2x128xf32>
    %c111_i32_103 = arith.constant 111 : i32
    %173 = vector.broadcast %c111_i32_103 : i32 to vector<2x128xi32>
    %174 = arith.cmpi slt, %5, %173 : vector<2x128xi32>
    %175 = arith.select %174, %171, %172 : vector<2x128xi1>, vector<2x128xf32>
    %cst_104 = arith.constant 0.000000e+00 : f32
    %176 = vector.broadcast %cst_104 : f32 to vector<2x128xf32>
    %177 = arith.select %25, %175, %176 : vector<2x128xi1>, vector<2x128xf32>
    %c8 = arith.constant 8 : index
    %c0_105 = arith.constant 0 : index
    %c0_106 = arith.constant 0 : index
    %178 = vector.load %arg7[%c8, %c0_105, %c0_106] : memref<36x2x128xf32, #tpu.memory_space<vmem>>, vector<1x2x128xf32>
    %179 = vector.shape_cast %178 : vector<1x2x128xf32> to vector<2x128xf32>
    %180 = vector.shape_cast %177 : vector<2x128xf32> to vector<1x2x128xf32>
    tpu.vector_store %arg7[%c8, %c0_105, %c0_106], %180 {strides = array<i32>} : memref<36x2x128xf32, #tpu.memory_space<vmem>>, vector<1x2x128xf32>,
    %c0_i32_107 = arith.constant 0 : i32
    %181 = arith.addi %4, %c0_i32_107 : i32
    %c1_108 = arith.constant 1 : index
    %182 = arith.index_cast %181 : i32 to index
    %c0_109 = arith.constant 0 : index
    %183 = vector.load %arg6[%c1_108, %182, %c0_109] : memref<4x4x128xf32, #tpu.memory_space<vmem>>, vector<1x2x128xf32>
    %184 = vector.shape_cast %183 : vector<1x2x128xf32> to vector<2x128xf32>
    %c0_i32_110 = arith.constant 0 : i32
    %185 = arith.addi %4, %c0_i32_110 : i32
    %c1_i32_111 = arith.constant 1 : i32
    %186 = arith.addi %185, %c1_i32_111 : i32
    %c1_112 = arith.constant 1 : index
    %187 = arith.index_cast %186 : i32 to index
    %c0_113 = arith.constant 0 : index
    %188 = vector.load %arg6[%c1_112, %187, %c0_113] : memref<4x4x128xf32, #tpu.memory_space<vmem>>, vector<1x2x128xf32>
    %189 = vector.shape_cast %188 : vector<1x2x128xf32> to vector<2x128xf32>
    %c17_i32_114 = arith.constant 17 : i32
    %190 = tpu.dynamic_rotate %184 by %c17_i32_114 dim 1 : vector<2x128xf32>, i32 -> vector<2x128xf32>
    %c17_i32_115 = arith.constant 17 : i32
    %191 = tpu.dynamic_rotate %189 by %c17_i32_115 dim 1 : vector<2x128xf32>, i32 -> vector<2x128xf32>
    %c17_i32_116 = arith.constant 17 : i32
    %192 = vector.broadcast %c17_i32_116 : i32 to vector<2x128xi32>
    %193 = arith.cmpi slt, %5, %192 : vector<2x128xi32>
    %194 = arith.select %193, %190, %191 : vector<2x128xi1>, vector<2x128xf32>
    %cst_117 = arith.constant 0.000000e+00 : f32
    %195 = vector.broadcast %cst_117 : f32 to vector<2x128xf32>
    %196 = arith.select %23, %194, %195 : vector<2x128xi1>, vector<2x128xf32>
    %c9 = arith.constant 9 : index
    %c0_118 = arith.constant 0 : index
    %c0_119 = arith.constant 0 : index
    %197 = vector.load %arg7[%c9, %c0_118, %c0_119] : memref<36x2x128xf32, #tpu.memory_space<vmem>>, vector<1x2x128xf32>
    %198 = vector.shape_cast %197 : vector<1x2x128xf32> to vector<2x128xf32>
    %199 = vector.shape_cast %196 : vector<2x128xf32> to vector<1x2x128xf32>
    tpu.vector_store %arg7[%c9, %c0_118, %c0_119], %199 {strides = array<i32>} : memref<36x2x128xf32, #tpu.memory_space<vmem>>, vector<1x2x128xf32>,
    %c0_i32_120 = arith.constant 0 : i32
    %200 = arith.addi %4, %c0_i32_120 : i32
    %c1_121 = arith.constant 1 : index
    %201 = arith.index_cast %200 : i32 to index
    %c0_122 = arith.constant 0 : index
    %202 = vector.load %arg6[%c1_121, %201, %c0_122] : memref<4x4x128xf32, #tpu.memory_space<vmem>>, vector<1x2x128xf32>
    %203 = vector.shape_cast %202 : vector<1x2x128xf32> to vector<2x128xf32>
    %c0_i32_123 = arith.constant 0 : i32
    %204 = arith.addi %4, %c0_i32_123 : i32
    %c1_i32_124 = arith.constant 1 : i32
    %205 = arith.addi %204, %c1_i32_124 : i32
    %c1_125 = arith.constant 1 : index
    %206 = arith.index_cast %205 : i32 to index
    %c0_126 = arith.constant 0 : index
    %207 = vector.load %arg6[%c1_125, %206, %c0_126] : memref<4x4x128xf32, #tpu.memory_space<vmem>>, vector<1x2x128xf32>
    %208 = vector.shape_cast %207 : vector<1x2x128xf32> to vector<2x128xf32>
    %c16_i32_127 = arith.constant 16 : i32
    %209 = tpu.dynamic_rotate %203 by %c16_i32_127 dim 1 : vector<2x128xf32>, i32 -> vector<2x128xf32>
    %c16_i32_128 = arith.constant 16 : i32
    %210 = tpu.dynamic_rotate %208 by %c16_i32_128 dim 1 : vector<2x128xf32>, i32 -> vector<2x128xf32>
    %c16_i32_129 = arith.constant 16 : i32
    %211 = vector.broadcast %c16_i32_129 : i32 to vector<2x128xi32>
    %212 = arith.cmpi slt, %5, %211 : vector<2x128xi32>
    %213 = arith.select %212, %209, %210 : vector<2x128xi1>, vector<2x128xf32>
    %c10 = arith.constant 10 : index
    %c0_130 = arith.constant 0 : index
    %c0_131 = arith.constant 0 : index
    %214 = vector.load %arg7[%c10, %c0_130, %c0_131] : memref<36x2x128xf32, #tpu.memory_space<vmem>>, vector<1x2x128xf32>
    %215 = vector.shape_cast %214 : vector<1x2x128xf32> to vector<2x128xf32>
    %216 = vector.shape_cast %213 : vector<2x128xf32> to vector<1x2x128xf32>
    tpu.vector_store %arg7[%c10, %c0_130, %c0_131], %216 {strides = array<i32>} : memref<36x2x128xf32, #tpu.memory_space<vmem>>, vector<1x2x128xf32>,
    %c0_i32_132 = arith.constant 0 : i32
    %217 = arith.addi %4, %c0_i32_132 : i32
    %c1_133 = arith.constant 1 : index
    %218 = arith.index_cast %217 : i32 to index
    %c0_134 = arith.constant 0 : index
    %219 = vector.load %arg6[%c1_133, %218, %c0_134] : memref<4x4x128xf32, #tpu.memory_space<vmem>>, vector<1x2x128xf32>
    %220 = vector.shape_cast %219 : vector<1x2x128xf32> to vector<2x128xf32>
    %c0_i32_135 = arith.constant 0 : i32
    %221 = arith.addi %4, %c0_i32_135 : i32
    %c1_i32_136 = arith.constant 1 : i32
    %222 = arith.addi %221, %c1_i32_136 : i32
    %c1_137 = arith.constant 1 : index
    %223 = arith.index_cast %222 : i32 to index
    %c0_138 = arith.constant 0 : index
    %224 = vector.load %arg6[%c1_137, %223, %c0_138] : memref<4x4x128xf32, #tpu.memory_space<vmem>>, vector<1x2x128xf32>
    %225 = vector.shape_cast %224 : vector<1x2x128xf32> to vector<2x128xf32>
    %c15_i32_139 = arith.constant 15 : i32
    %226 = tpu.dynamic_rotate %220 by %c15_i32_139 dim 1 : vector<2x128xf32>, i32 -> vector<2x128xf32>
    %c15_i32_140 = arith.constant 15 : i32
    %227 = tpu.dynamic_rotate %225 by %c15_i32_140 dim 1 : vector<2x128xf32>, i32 -> vector<2x128xf32>
    %c15_i32_141 = arith.constant 15 : i32
    %228 = vector.broadcast %c15_i32_141 : i32 to vector<2x128xi32>
    %229 = arith.cmpi slt, %5, %228 : vector<2x128xi32>
    %230 = arith.select %229, %226, %227 : vector<2x128xi1>, vector<2x128xf32>
    %cst_142 = arith.constant 0.000000e+00 : f32
    %231 = vector.broadcast %cst_142 : f32 to vector<2x128xf32>
    %232 = arith.select %25, %230, %231 : vector<2x128xi1>, vector<2x128xf32>
    %c11 = arith.constant 11 : index
    %c0_143 = arith.constant 0 : index
    %c0_144 = arith.constant 0 : index
    %233 = vector.load %arg7[%c11, %c0_143, %c0_144] : memref<36x2x128xf32, #tpu.memory_space<vmem>>, vector<1x2x128xf32>
    %234 = vector.shape_cast %233 : vector<1x2x128xf32> to vector<2x128xf32>
    %235 = vector.shape_cast %232 : vector<2x128xf32> to vector<1x2x128xf32>
    tpu.vector_store %arg7[%c11, %c0_143, %c0_144], %235 {strides = array<i32>} : memref<36x2x128xf32, #tpu.memory_space<vmem>>, vector<1x2x128xf32>,
    %c0_i32_145 = arith.constant 0 : i32
    %236 = arith.addi %4, %c0_i32_145 : i32
    %c1_146 = arith.constant 1 : index
    %237 = arith.index_cast %236 : i32 to index
    %c0_147 = arith.constant 0 : index
    %238 = vector.load %arg6[%c1_146, %237, %c0_147] : memref<4x4x128xf32, #tpu.memory_space<vmem>>, vector<1x2x128xf32>
    %239 = vector.shape_cast %238 : vector<1x2x128xf32> to vector<2x128xf32>
    %c0_i32_148 = arith.constant 0 : i32
    %240 = arith.addi %4, %c0_i32_148 : i32
    %c1_i32_149 = arith.constant 1 : i32
    %241 = arith.addi %240, %c1_i32_149 : i32
    %c1_150 = arith.constant 1 : index
    %242 = arith.index_cast %241 : i32 to index
    %c0_151 = arith.constant 0 : index
    %243 = vector.load %arg6[%c1_150, %242, %c0_151] : memref<4x4x128xf32, #tpu.memory_space<vmem>>, vector<1x2x128xf32>
    %244 = vector.shape_cast %243 : vector<1x2x128xf32> to vector<2x128xf32>
    %c1_i32_152 = arith.constant 1 : i32
    %245 = tpu.dynamic_rotate %239 by %c1_i32_152 dim 1 : vector<2x128xf32>, i32 -> vector<2x128xf32>
    %c1_i32_153 = arith.constant 1 : i32
    %246 = tpu.dynamic_rotate %244 by %c1_i32_153 dim 1 : vector<2x128xf32>, i32 -> vector<2x128xf32>
    %c1_i32_154 = arith.constant 1 : i32
    %247 = vector.broadcast %c1_i32_154 : i32 to vector<2x128xi32>
    %248 = arith.cmpi slt, %5, %247 : vector<2x128xi32>
    %249 = arith.select %248, %245, %246 : vector<2x128xi1>, vector<2x128xf32>
    %cst_155 = arith.constant 0.000000e+00 : f32
    %250 = vector.broadcast %cst_155 : f32 to vector<2x128xf32>
    %251 = arith.select %23, %249, %250 : vector<2x128xi1>, vector<2x128xf32>
    %c12 = arith.constant 12 : index
    %c0_156 = arith.constant 0 : index
    %c0_157 = arith.constant 0 : index
    %252 = vector.load %arg7[%c12, %c0_156, %c0_157] : memref<36x2x128xf32, #tpu.memory_space<vmem>>, vector<1x2x128xf32>
    %253 = vector.shape_cast %252 : vector<1x2x128xf32> to vector<2x128xf32>
    %254 = vector.shape_cast %251 : vector<2x128xf32> to vector<1x2x128xf32>
    tpu.vector_store %arg7[%c12, %c0_156, %c0_157], %254 {strides = array<i32>} : memref<36x2x128xf32, #tpu.memory_space<vmem>>, vector<1x2x128xf32>,
    %c1_i32_158 = arith.constant 1 : i32
    %255 = arith.addi %4, %c1_i32_158 : i32
    %c1_159 = arith.constant 1 : index
    %256 = arith.index_cast %255 : i32 to index
    %c0_160 = arith.constant 0 : index
    %257 = vector.load %arg6[%c1_159, %256, %c0_160] : memref<4x4x128xf32, #tpu.memory_space<vmem>>, vector<1x2x128xf32>
    %258 = vector.shape_cast %257 : vector<1x2x128xf32> to vector<2x128xf32>
    %c13 = arith.constant 13 : index
    %c0_161 = arith.constant 0 : index
    %c0_162 = arith.constant 0 : index
    %259 = vector.load %arg7[%c13, %c0_161, %c0_162] : memref<36x2x128xf32, #tpu.memory_space<vmem>>, vector<1x2x128xf32>
    %260 = vector.shape_cast %259 : vector<1x2x128xf32> to vector<2x128xf32>
    %261 = vector.shape_cast %258 : vector<2x128xf32> to vector<1x2x128xf32>
    tpu.vector_store %arg7[%c13, %c0_161, %c0_162], %261 {strides = array<i32>} : memref<36x2x128xf32, #tpu.memory_space<vmem>>, vector<1x2x128xf32>,
    %c1_i32_163 = arith.constant 1 : i32
    %262 = arith.addi %4, %c1_i32_163 : i32
    %c1_164 = arith.constant 1 : index
    %263 = arith.index_cast %262 : i32 to index
    %c0_165 = arith.constant 0 : index
    %264 = vector.load %arg6[%c1_164, %263, %c0_165] : memref<4x4x128xf32, #tpu.memory_space<vmem>>, vector<1x2x128xf32>
    %265 = vector.shape_cast %264 : vector<1x2x128xf32> to vector<2x128xf32>
    %c1_i32_166 = arith.constant 1 : i32
    %266 = arith.addi %4, %c1_i32_166 : i32
    %c1_i32_167 = arith.constant 1 : i32
    %267 = arith.addi %266, %c1_i32_167 : i32
    %c1_168 = arith.constant 1 : index
    %268 = arith.index_cast %267 : i32 to index
    %c0_169 = arith.constant 0 : index
    %269 = vector.load %arg6[%c1_168, %268, %c0_169] : memref<4x4x128xf32, #tpu.memory_space<vmem>>, vector<1x2x128xf32>
    %270 = vector.shape_cast %269 : vector<1x2x128xf32> to vector<2x128xf32>
    %c127_i32_170 = arith.constant 127 : i32
    %271 = tpu.dynamic_rotate %265 by %c127_i32_170 dim 1 : vector<2x128xf32>, i32 -> vector<2x128xf32>
    %c127_i32_171 = arith.constant 127 : i32
    %272 = tpu.dynamic_rotate %270 by %c127_i32_171 dim 1 : vector<2x128xf32>, i32 -> vector<2x128xf32>
    %c127_i32_172 = arith.constant 127 : i32
    %273 = vector.broadcast %c127_i32_172 : i32 to vector<2x128xi32>
    %274 = arith.cmpi slt, %5, %273 : vector<2x128xi32>
    %275 = arith.select %274, %271, %272 : vector<2x128xi1>, vector<2x128xf32>
    %cst_173 = arith.constant 0.000000e+00 : f32
    %276 = vector.broadcast %cst_173 : f32 to vector<2x128xf32>
    %277 = arith.select %25, %275, %276 : vector<2x128xi1>, vector<2x128xf32>
    %c14 = arith.constant 14 : index
    %c0_174 = arith.constant 0 : index
    %c0_175 = arith.constant 0 : index
    %278 = vector.load %arg7[%c14, %c0_174, %c0_175] : memref<36x2x128xf32, #tpu.memory_space<vmem>>, vector<1x2x128xf32>
    %279 = vector.shape_cast %278 : vector<1x2x128xf32> to vector<2x128xf32>
    %280 = vector.shape_cast %277 : vector<2x128xf32> to vector<1x2x128xf32>
    tpu.vector_store %arg7[%c14, %c0_174, %c0_175], %280 {strides = array<i32>} : memref<36x2x128xf32, #tpu.memory_space<vmem>>, vector<1x2x128xf32>,
    %c1_i32_176 = arith.constant 1 : i32
    %281 = arith.addi %4, %c1_i32_176 : i32
    %c1_177 = arith.constant 1 : index
    %282 = arith.index_cast %281 : i32 to index
    %c0_178 = arith.constant 0 : index
    %283 = vector.load %arg6[%c1_177, %282, %c0_178] : memref<4x4x128xf32, #tpu.memory_space<vmem>>, vector<1x2x128xf32>
    %284 = vector.shape_cast %283 : vector<1x2x128xf32> to vector<2x128xf32>
    %c1_i32_179 = arith.constant 1 : i32
    %285 = arith.addi %4, %c1_i32_179 : i32
    %c1_i32_180 = arith.constant 1 : i32
    %286 = arith.addi %285, %c1_i32_180 : i32
    %c1_181 = arith.constant 1 : index
    %287 = arith.index_cast %286 : i32 to index
    %c0_182 = arith.constant 0 : index
    %288 = vector.load %arg6[%c1_181, %287, %c0_182] : memref<4x4x128xf32, #tpu.memory_space<vmem>>, vector<1x2x128xf32>
    %289 = vector.shape_cast %288 : vector<1x2x128xf32> to vector<2x128xf32>
    %c113_i32_183 = arith.constant 113 : i32
    %290 = tpu.dynamic_rotate %284 by %c113_i32_183 dim 1 : vector<2x128xf32>, i32 -> vector<2x128xf32>
    %c113_i32_184 = arith.constant 113 : i32
    %291 = tpu.dynamic_rotate %289 by %c113_i32_184 dim 1 : vector<2x128xf32>, i32 -> vector<2x128xf32>
    %c113_i32_185 = arith.constant 113 : i32
    %292 = vector.broadcast %c113_i32_185 : i32 to vector<2x128xi32>
    %293 = arith.cmpi slt, %5, %292 : vector<2x128xi32>
    %294 = arith.select %293, %290, %291 : vector<2x128xi1>, vector<2x128xf32>
    %cst_186 = arith.constant 0.000000e+00 : f32
    %295 = vector.broadcast %cst_186 : f32 to vector<2x128xf32>
    %296 = arith.select %23, %294, %295 : vector<2x128xi1>, vector<2x128xf32>
    %c15 = arith.constant 15 : index
    %c0_187 = arith.constant 0 : index
    %c0_188 = arith.constant 0 : index
    %297 = vector.load %arg7[%c15, %c0_187, %c0_188] : memref<36x2x128xf32, #tpu.memory_space<vmem>>, vector<1x2x128xf32>
    %298 = vector.shape_cast %297 : vector<1x2x128xf32> to vector<2x128xf32>
    %299 = vector.shape_cast %296 : vector<2x128xf32> to vector<1x2x128xf32>
    tpu.vector_store %arg7[%c15, %c0_187, %c0_188], %299 {strides = array<i32>} : memref<36x2x128xf32, #tpu.memory_space<vmem>>, vector<1x2x128xf32>,
    %c1_i32_189 = arith.constant 1 : i32
    %300 = arith.addi %4, %c1_i32_189 : i32
    %c1_190 = arith.constant 1 : index
    %301 = arith.index_cast %300 : i32 to index
    %c0_191 = arith.constant 0 : index
    %302 = vector.load %arg6[%c1_190, %301, %c0_191] : memref<4x4x128xf32, #tpu.memory_space<vmem>>, vector<1x2x128xf32>
    %303 = vector.shape_cast %302 : vector<1x2x128xf32> to vector<2x128xf32>
    %c1_i32_192 = arith.constant 1 : i32
    %304 = arith.addi %4, %c1_i32_192 : i32
    %c1_i32_193 = arith.constant 1 : i32
    %305 = arith.addi %304, %c1_i32_193 : i32
    %c1_194 = arith.constant 1 : index
    %306 = arith.index_cast %305 : i32 to index
    %c0_195 = arith.constant 0 : index
    %307 = vector.load %arg6[%c1_194, %306, %c0_195] : memref<4x4x128xf32, #tpu.memory_space<vmem>>, vector<1x2x128xf32>
    %308 = vector.shape_cast %307 : vector<1x2x128xf32> to vector<2x128xf32>
    %c112_i32_196 = arith.constant 112 : i32
    %309 = tpu.dynamic_rotate %303 by %c112_i32_196 dim 1 : vector<2x128xf32>, i32 -> vector<2x128xf32>
    %c112_i32_197 = arith.constant 112 : i32
    %310 = tpu.dynamic_rotate %308 by %c112_i32_197 dim 1 : vector<2x128xf32>, i32 -> vector<2x128xf32>
    %c112_i32_198 = arith.constant 112 : i32
    %311 = vector.broadcast %c112_i32_198 : i32 to vector<2x128xi32>
    %312 = arith.cmpi slt, %5, %311 : vector<2x128xi32>
    %313 = arith.select %312, %309, %310 : vector<2x128xi1>, vector<2x128xf32>
    %c16 = arith.constant 16 : index
    %c0_199 = arith.constant 0 : index
    %c0_200 = arith.constant 0 : index
    %314 = vector.load %arg7[%c16, %c0_199, %c0_200] : memref<36x2x128xf32, #tpu.memory_space<vmem>>, vector<1x2x128xf32>
    %315 = vector.shape_cast %314 : vector<1x2x128xf32> to vector<2x128xf32>
    %316 = vector.shape_cast %313 : vector<2x128xf32> to vector<1x2x128xf32>
    tpu.vector_store %arg7[%c16, %c0_199, %c0_200], %316 {strides = array<i32>} : memref<36x2x128xf32, #tpu.memory_space<vmem>>, vector<1x2x128xf32>,
    %c1_i32_201 = arith.constant 1 : i32
    %317 = arith.addi %4, %c1_i32_201 : i32
    %c1_202 = arith.constant 1 : index
    %318 = arith.index_cast %317 : i32 to index
    %c0_203 = arith.constant 0 : index
    %319 = vector.load %arg6[%c1_202, %318, %c0_203] : memref<4x4x128xf32, #tpu.memory_space<vmem>>, vector<1x2x128xf32>
    %320 = vector.shape_cast %319 : vector<1x2x128xf32> to vector<2x128xf32>
    %c1_i32_204 = arith.constant 1 : i32
    %321 = arith.addi %4, %c1_i32_204 : i32
    %c1_i32_205 = arith.constant 1 : i32
    %322 = arith.addi %321, %c1_i32_205 : i32
    %c1_206 = arith.constant 1 : index
    %323 = arith.index_cast %322 : i32 to index
    %c0_207 = arith.constant 0 : index
    %324 = vector.load %arg6[%c1_206, %323, %c0_207] : memref<4x4x128xf32, #tpu.memory_space<vmem>>, vector<1x2x128xf32>
    %325 = vector.shape_cast %324 : vector<1x2x128xf32> to vector<2x128xf32>
    %c111_i32_208 = arith.constant 111 : i32
    %326 = tpu.dynamic_rotate %320 by %c111_i32_208 dim 1 : vector<2x128xf32>, i32 -> vector<2x128xf32>
    %c111_i32_209 = arith.constant 111 : i32
    %327 = tpu.dynamic_rotate %325 by %c111_i32_209 dim 1 : vector<2x128xf32>, i32 -> vector<2x128xf32>
    %c111_i32_210 = arith.constant 111 : i32
    %328 = vector.broadcast %c111_i32_210 : i32 to vector<2x128xi32>
    %329 = arith.cmpi slt, %5, %328 : vector<2x128xi32>
    %330 = arith.select %329, %326, %327 : vector<2x128xi1>, vector<2x128xf32>
    %cst_211 = arith.constant 0.000000e+00 : f32
    %331 = vector.broadcast %cst_211 : f32 to vector<2x128xf32>
    %332 = arith.select %25, %330, %331 : vector<2x128xi1>, vector<2x128xf32>
    %c17 = arith.constant 17 : index
    %c0_212 = arith.constant 0 : index
    %c0_213 = arith.constant 0 : index
    %333 = vector.load %arg7[%c17, %c0_212, %c0_213] : memref<36x2x128xf32, #tpu.memory_space<vmem>>, vector<1x2x128xf32>
    %334 = vector.shape_cast %333 : vector<1x2x128xf32> to vector<2x128xf32>
    %335 = vector.shape_cast %332 : vector<2x128xf32> to vector<1x2x128xf32>
    tpu.vector_store %arg7[%c17, %c0_212, %c0_213], %335 {strides = array<i32>} : memref<36x2x128xf32, #tpu.memory_space<vmem>>, vector<1x2x128xf32>,
    %c0_i32_214 = arith.constant 0 : i32
    %336 = arith.addi %4, %c0_i32_214 : i32
    %c2_215 = arith.constant 2 : index
    %337 = arith.index_cast %336 : i32 to index
    %c0_216 = arith.constant 0 : index
    %338 = vector.load %arg6[%c2_215, %337, %c0_216] : memref<4x4x128xf32, #tpu.memory_space<vmem>>, vector<1x2x128xf32>
    %339 = vector.shape_cast %338 : vector<1x2x128xf32> to vector<2x128xf32>
    %c0_i32_217 = arith.constant 0 : i32
    %340 = arith.addi %4, %c0_i32_217 : i32
    %c1_i32_218 = arith.constant 1 : i32
    %341 = arith.addi %340, %c1_i32_218 : i32
    %c2_219 = arith.constant 2 : index
    %342 = arith.index_cast %341 : i32 to index
    %c0_220 = arith.constant 0 : index
    %343 = vector.load %arg6[%c2_219, %342, %c0_220] : memref<4x4x128xf32, #tpu.memory_space<vmem>>, vector<1x2x128xf32>
    %344 = vector.shape_cast %343 : vector<1x2x128xf32> to vector<2x128xf32>
    %c17_i32_221 = arith.constant 17 : i32
    %345 = tpu.dynamic_rotate %339 by %c17_i32_221 dim 1 : vector<2x128xf32>, i32 -> vector<2x128xf32>
    %c17_i32_222 = arith.constant 17 : i32
    %346 = tpu.dynamic_rotate %344 by %c17_i32_222 dim 1 : vector<2x128xf32>, i32 -> vector<2x128xf32>
    %c17_i32_223 = arith.constant 17 : i32
    %347 = vector.broadcast %c17_i32_223 : i32 to vector<2x128xi32>
    %348 = arith.cmpi slt, %5, %347 : vector<2x128xi32>
    %349 = arith.select %348, %345, %346 : vector<2x128xi1>, vector<2x128xf32>
    %cst_224 = arith.constant 0.000000e+00 : f32
    %350 = vector.broadcast %cst_224 : f32 to vector<2x128xf32>
    %351 = arith.select %23, %349, %350 : vector<2x128xi1>, vector<2x128xf32>
    %c18 = arith.constant 18 : index
    %c0_225 = arith.constant 0 : index
    %c0_226 = arith.constant 0 : index
    %352 = vector.load %arg7[%c18, %c0_225, %c0_226] : memref<36x2x128xf32, #tpu.memory_space<vmem>>, vector<1x2x128xf32>
    %353 = vector.shape_cast %352 : vector<1x2x128xf32> to vector<2x128xf32>
    %354 = vector.shape_cast %351 : vector<2x128xf32> to vector<1x2x128xf32>
    tpu.vector_store %arg7[%c18, %c0_225, %c0_226], %354 {strides = array<i32>} : memref<36x2x128xf32, #tpu.memory_space<vmem>>, vector<1x2x128xf32>,
    %c0_i32_227 = arith.constant 0 : i32
    %355 = arith.addi %4, %c0_i32_227 : i32
    %c2_228 = arith.constant 2 : index
    %356 = arith.index_cast %355 : i32 to index
    %c0_229 = arith.constant 0 : index
    %357 = vector.load %arg6[%c2_228, %356, %c0_229] : memref<4x4x128xf32, #tpu.memory_space<vmem>>, vector<1x2x128xf32>
    %358 = vector.shape_cast %357 : vector<1x2x128xf32> to vector<2x128xf32>
    %c0_i32_230 = arith.constant 0 : i32
    %359 = arith.addi %4, %c0_i32_230 : i32
    %c1_i32_231 = arith.constant 1 : i32
    %360 = arith.addi %359, %c1_i32_231 : i32
    %c2_232 = arith.constant 2 : index
    %361 = arith.index_cast %360 : i32 to index
    %c0_233 = arith.constant 0 : index
    %362 = vector.load %arg6[%c2_232, %361, %c0_233] : memref<4x4x128xf32, #tpu.memory_space<vmem>>, vector<1x2x128xf32>
    %363 = vector.shape_cast %362 : vector<1x2x128xf32> to vector<2x128xf32>
    %c16_i32_234 = arith.constant 16 : i32
    %364 = tpu.dynamic_rotate %358 by %c16_i32_234 dim 1 : vector<2x128xf32>, i32 -> vector<2x128xf32>
    %c16_i32_235 = arith.constant 16 : i32
    %365 = tpu.dynamic_rotate %363 by %c16_i32_235 dim 1 : vector<2x128xf32>, i32 -> vector<2x128xf32>
    %c16_i32_236 = arith.constant 16 : i32
    %366 = vector.broadcast %c16_i32_236 : i32 to vector<2x128xi32>
    %367 = arith.cmpi slt, %5, %366 : vector<2x128xi32>
    %368 = arith.select %367, %364, %365 : vector<2x128xi1>, vector<2x128xf32>
    %c19 = arith.constant 19 : index
    %c0_237 = arith.constant 0 : index
    %c0_238 = arith.constant 0 : index
    %369 = vector.load %arg7[%c19, %c0_237, %c0_238] : memref<36x2x128xf32, #tpu.memory_space<vmem>>, vector<1x2x128xf32>
    %370 = vector.shape_cast %369 : vector<1x2x128xf32> to vector<2x128xf32>
    %371 = vector.shape_cast %368 : vector<2x128xf32> to vector<1x2x128xf32>
    tpu.vector_store %arg7[%c19, %c0_237, %c0_238], %371 {strides = array<i32>} : memref<36x2x128xf32, #tpu.memory_space<vmem>>, vector<1x2x128xf32>,
    %c0_i32_239 = arith.constant 0 : i32
    %372 = arith.addi %4, %c0_i32_239 : i32
    %c2_240 = arith.constant 2 : index
    %373 = arith.index_cast %372 : i32 to index
    %c0_241 = arith.constant 0 : index
    %374 = vector.load %arg6[%c2_240, %373, %c0_241] : memref<4x4x128xf32, #tpu.memory_space<vmem>>, vector<1x2x128xf32>
    %375 = vector.shape_cast %374 : vector<1x2x128xf32> to vector<2x128xf32>
    %c0_i32_242 = arith.constant 0 : i32
    %376 = arith.addi %4, %c0_i32_242 : i32
    %c1_i32_243 = arith.constant 1 : i32
    %377 = arith.addi %376, %c1_i32_243 : i32
    %c2_244 = arith.constant 2 : index
    %378 = arith.index_cast %377 : i32 to index
    %c0_245 = arith.constant 0 : index
    %379 = vector.load %arg6[%c2_244, %378, %c0_245] : memref<4x4x128xf32, #tpu.memory_space<vmem>>, vector<1x2x128xf32>
    %380 = vector.shape_cast %379 : vector<1x2x128xf32> to vector<2x128xf32>
    %c15_i32_246 = arith.constant 15 : i32
    %381 = tpu.dynamic_rotate %375 by %c15_i32_246 dim 1 : vector<2x128xf32>, i32 -> vector<2x128xf32>
    %c15_i32_247 = arith.constant 15 : i32
    %382 = tpu.dynamic_rotate %380 by %c15_i32_247 dim 1 : vector<2x128xf32>, i32 -> vector<2x128xf32>
    %c15_i32_248 = arith.constant 15 : i32
    %383 = vector.broadcast %c15_i32_248 : i32 to vector<2x128xi32>
    %384 = arith.cmpi slt, %5, %383 : vector<2x128xi32>
    %385 = arith.select %384, %381, %382 : vector<2x128xi1>, vector<2x128xf32>
    %cst_249 = arith.constant 0.000000e+00 : f32
    %386 = vector.broadcast %cst_249 : f32 to vector<2x128xf32>
    %387 = arith.select %25, %385, %386 : vector<2x128xi1>, vector<2x128xf32>
    %c20 = arith.constant 20 : index
    %c0_250 = arith.constant 0 : index
    %c0_251 = arith.constant 0 : index
    %388 = vector.load %arg7[%c20, %c0_250, %c0_251] : memref<36x2x128xf32, #tpu.memory_space<vmem>>, vector<1x2x128xf32>
    %389 = vector.shape_cast %388 : vector<1x2x128xf32> to vector<2x128xf32>
    %390 = vector.shape_cast %387 : vector<2x128xf32> to vector<1x2x128xf32>
    tpu.vector_store %arg7[%c20, %c0_250, %c0_251], %390 {strides = array<i32>} : memref<36x2x128xf32, #tpu.memory_space<vmem>>, vector<1x2x128xf32>,
    %c0_i32_252 = arith.constant 0 : i32
    %391 = arith.addi %4, %c0_i32_252 : i32
    %c2_253 = arith.constant 2 : index
    %392 = arith.index_cast %391 : i32 to index
    %c0_254 = arith.constant 0 : index
    %393 = vector.load %arg6[%c2_253, %392, %c0_254] : memref<4x4x128xf32, #tpu.memory_space<vmem>>, vector<1x2x128xf32>
    %394 = vector.shape_cast %393 : vector<1x2x128xf32> to vector<2x128xf32>
    %c0_i32_255 = arith.constant 0 : i32
    %395 = arith.addi %4, %c0_i32_255 : i32
    %c1_i32_256 = arith.constant 1 : i32
    %396 = arith.addi %395, %c1_i32_256 : i32
    %c2_257 = arith.constant 2 : index
    %397 = arith.index_cast %396 : i32 to index
    %c0_258 = arith.constant 0 : index
    %398 = vector.load %arg6[%c2_257, %397, %c0_258] : memref<4x4x128xf32, #tpu.memory_space<vmem>>, vector<1x2x128xf32>
    %399 = vector.shape_cast %398 : vector<1x2x128xf32> to vector<2x128xf32>
    %c1_i32_259 = arith.constant 1 : i32
    %400 = tpu.dynamic_rotate %394 by %c1_i32_259 dim 1 : vector<2x128xf32>, i32 -> vector<2x128xf32>
    %c1_i32_260 = arith.constant 1 : i32
    %401 = tpu.dynamic_rotate %399 by %c1_i32_260 dim 1 : vector<2x128xf32>, i32 -> vector<2x128xf32>
    %c1_i32_261 = arith.constant 1 : i32
    %402 = vector.broadcast %c1_i32_261 : i32 to vector<2x128xi32>
    %403 = arith.cmpi slt, %5, %402 : vector<2x128xi32>
    %404 = arith.select %403, %400, %401 : vector<2x128xi1>, vector<2x128xf32>
    %cst_262 = arith.constant 0.000000e+00 : f32
    %405 = vector.broadcast %cst_262 : f32 to vector<2x128xf32>
    %406 = arith.select %23, %404, %405 : vector<2x128xi1>, vector<2x128xf32>
    %c21 = arith.constant 21 : index
    %c0_263 = arith.constant 0 : index
    %c0_264 = arith.constant 0 : index
    %407 = vector.load %arg7[%c21, %c0_263, %c0_264] : memref<36x2x128xf32, #tpu.memory_space<vmem>>, vector<1x2x128xf32>
    %408 = vector.shape_cast %407 : vector<1x2x128xf32> to vector<2x128xf32>
    %409 = vector.shape_cast %406 : vector<2x128xf32> to vector<1x2x128xf32>
    tpu.vector_store %arg7[%c21, %c0_263, %c0_264], %409 {strides = array<i32>} : memref<36x2x128xf32, #tpu.memory_space<vmem>>, vector<1x2x128xf32>,
    %c1_i32_265 = arith.constant 1 : i32
    %410 = arith.addi %4, %c1_i32_265 : i32
    %c2_266 = arith.constant 2 : index
    %411 = arith.index_cast %410 : i32 to index
    %c0_267 = arith.constant 0 : index
    %412 = vector.load %arg6[%c2_266, %411, %c0_267] : memref<4x4x128xf32, #tpu.memory_space<vmem>>, vector<1x2x128xf32>
    %413 = vector.shape_cast %412 : vector<1x2x128xf32> to vector<2x128xf32>
    %c22 = arith.constant 22 : index
    %c0_268 = arith.constant 0 : index
    %c0_269 = arith.constant 0 : index
    %414 = vector.load %arg7[%c22, %c0_268, %c0_269] : memref<36x2x128xf32, #tpu.memory_space<vmem>>, vector<1x2x128xf32>
    %415 = vector.shape_cast %414 : vector<1x2x128xf32> to vector<2x128xf32>
    %416 = vector.shape_cast %413 : vector<2x128xf32> to vector<1x2x128xf32>
    tpu.vector_store %arg7[%c22, %c0_268, %c0_269], %416 {strides = array<i32>} : memref<36x2x128xf32, #tpu.memory_space<vmem>>, vector<1x2x128xf32>,
    %c1_i32_270 = arith.constant 1 : i32
    %417 = arith.addi %4, %c1_i32_270 : i32
    %c2_271 = arith.constant 2 : index
    %418 = arith.index_cast %417 : i32 to index
    %c0_272 = arith.constant 0 : index
    %419 = vector.load %arg6[%c2_271, %418, %c0_272] : memref<4x4x128xf32, #tpu.memory_space<vmem>>, vector<1x2x128xf32>
    %420 = vector.shape_cast %419 : vector<1x2x128xf32> to vector<2x128xf32>
    %c1_i32_273 = arith.constant 1 : i32
    %421 = arith.addi %4, %c1_i32_273 : i32
    %c1_i32_274 = arith.constant 1 : i32
    %422 = arith.addi %421, %c1_i32_274 : i32
    %c2_275 = arith.constant 2 : index
    %423 = arith.index_cast %422 : i32 to index
    %c0_276 = arith.constant 0 : index
    %424 = vector.load %arg6[%c2_275, %423, %c0_276] : memref<4x4x128xf32, #tpu.memory_space<vmem>>, vector<1x2x128xf32>
    %425 = vector.shape_cast %424 : vector<1x2x128xf32> to vector<2x128xf32>
    %c127_i32_277 = arith.constant 127 : i32
    %426 = tpu.dynamic_rotate %420 by %c127_i32_277 dim 1 : vector<2x128xf32>, i32 -> vector<2x128xf32>
    %c127_i32_278 = arith.constant 127 : i32
    %427 = tpu.dynamic_rotate %425 by %c127_i32_278 dim 1 : vector<2x128xf32>, i32 -> vector<2x128xf32>
    %c127_i32_279 = arith.constant 127 : i32
    %428 = vector.broadcast %c127_i32_279 : i32 to vector<2x128xi32>
    %429 = arith.cmpi slt, %5, %428 : vector<2x128xi32>
    %430 = arith.select %429, %426, %427 : vector<2x128xi1>, vector<2x128xf32>
    %cst_280 = arith.constant 0.000000e+00 : f32
    %431 = vector.broadcast %cst_280 : f32 to vector<2x128xf32>
    %432 = arith.select %25, %430, %431 : vector<2x128xi1>, vector<2x128xf32>
    %c23 = arith.constant 23 : index
    %c0_281 = arith.constant 0 : index
    %c0_282 = arith.constant 0 : index
    %433 = vector.load %arg7[%c23, %c0_281, %c0_282] : memref<36x2x128xf32, #tpu.memory_space<vmem>>, vector<1x2x128xf32>
    %434 = vector.shape_cast %433 : vector<1x2x128xf32> to vector<2x128xf32>
    %435 = vector.shape_cast %432 : vector<2x128xf32> to vector<1x2x128xf32>
    tpu.vector_store %arg7[%c23, %c0_281, %c0_282], %435 {strides = array<i32>} : memref<36x2x128xf32, #tpu.memory_space<vmem>>, vector<1x2x128xf32>,
    %c1_i32_283 = arith.constant 1 : i32
    %436 = arith.addi %4, %c1_i32_283 : i32
    %c2_284 = arith.constant 2 : index
    %437 = arith.index_cast %436 : i32 to index
    %c0_285 = arith.constant 0 : index
    %438 = vector.load %arg6[%c2_284, %437, %c0_285] : memref<4x4x128xf32, #tpu.memory_space<vmem>>, vector<1x2x128xf32>
    %439 = vector.shape_cast %438 : vector<1x2x128xf32> to vector<2x128xf32>
    %c1_i32_286 = arith.constant 1 : i32
    %440 = arith.addi %4, %c1_i32_286 : i32
    %c1_i32_287 = arith.constant 1 : i32
    %441 = arith.addi %440, %c1_i32_287 : i32
    %c2_288 = arith.constant 2 : index
    %442 = arith.index_cast %441 : i32 to index
    %c0_289 = arith.constant 0 : index
    %443 = vector.load %arg6[%c2_288, %442, %c0_289] : memref<4x4x128xf32, #tpu.memory_space<vmem>>, vector<1x2x128xf32>
    %444 = vector.shape_cast %443 : vector<1x2x128xf32> to vector<2x128xf32>
    %c113_i32_290 = arith.constant 113 : i32
    %445 = tpu.dynamic_rotate %439 by %c113_i32_290 dim 1 : vector<2x128xf32>, i32 -> vector<2x128xf32>
    %c113_i32_291 = arith.constant 113 : i32
    %446 = tpu.dynamic_rotate %444 by %c113_i32_291 dim 1 : vector<2x128xf32>, i32 -> vector<2x128xf32>
    %c113_i32_292 = arith.constant 113 : i32
    %447 = vector.broadcast %c113_i32_292 : i32 to vector<2x128xi32>
    %448 = arith.cmpi slt, %5, %447 : vector<2x128xi32>
    %449 = arith.select %448, %445, %446 : vector<2x128xi1>, vector<2x128xf32>
    %cst_293 = arith.constant 0.000000e+00 : f32
    %450 = vector.broadcast %cst_293 : f32 to vector<2x128xf32>
    %451 = arith.select %23, %449, %450 : vector<2x128xi1>, vector<2x128xf32>
    %c24 = arith.constant 24 : index
    %c0_294 = arith.constant 0 : index
    %c0_295 = arith.constant 0 : index
    %452 = vector.load %arg7[%c24, %c0_294, %c0_295] : memref<36x2x128xf32, #tpu.memory_space<vmem>>, vector<1x2x128xf32>
    %453 = vector.shape_cast %452 : vector<1x2x128xf32> to vector<2x128xf32>
    %454 = vector.shape_cast %451 : vector<2x128xf32> to vector<1x2x128xf32>
    tpu.vector_store %arg7[%c24, %c0_294, %c0_295], %454 {strides = array<i32>} : memref<36x2x128xf32, #tpu.memory_space<vmem>>, vector<1x2x128xf32>,
    %c1_i32_296 = arith.constant 1 : i32
    %455 = arith.addi %4, %c1_i32_296 : i32
    %c2_297 = arith.constant 2 : index
    %456 = arith.index_cast %455 : i32 to index
    %c0_298 = arith.constant 0 : index
    %457 = vector.load %arg6[%c2_297, %456, %c0_298] : memref<4x4x128xf32, #tpu.memory_space<vmem>>, vector<1x2x128xf32>
    %458 = vector.shape_cast %457 : vector<1x2x128xf32> to vector<2x128xf32>
    %c1_i32_299 = arith.constant 1 : i32
    %459 = arith.addi %4, %c1_i32_299 : i32
    %c1_i32_300 = arith.constant 1 : i32
    %460 = arith.addi %459, %c1_i32_300 : i32
    %c2_301 = arith.constant 2 : index
    %461 = arith.index_cast %460 : i32 to index
    %c0_302 = arith.constant 0 : index
    %462 = vector.load %arg6[%c2_301, %461, %c0_302] : memref<4x4x128xf32, #tpu.memory_space<vmem>>, vector<1x2x128xf32>
    %463 = vector.shape_cast %462 : vector<1x2x128xf32> to vector<2x128xf32>
    %c112_i32_303 = arith.constant 112 : i32
    %464 = tpu.dynamic_rotate %458 by %c112_i32_303 dim 1 : vector<2x128xf32>, i32 -> vector<2x128xf32>
    %c112_i32_304 = arith.constant 112 : i32
    %465 = tpu.dynamic_rotate %463 by %c112_i32_304 dim 1 : vector<2x128xf32>, i32 -> vector<2x128xf32>
    %c112_i32_305 = arith.constant 112 : i32
    %466 = vector.broadcast %c112_i32_305 : i32 to vector<2x128xi32>
    %467 = arith.cmpi slt, %5, %466 : vector<2x128xi32>
    %468 = arith.select %467, %464, %465 : vector<2x128xi1>, vector<2x128xf32>
    %c25 = arith.constant 25 : index
    %c0_306 = arith.constant 0 : index
    %c0_307 = arith.constant 0 : index
    %469 = vector.load %arg7[%c25, %c0_306, %c0_307] : memref<36x2x128xf32, #tpu.memory_space<vmem>>, vector<1x2x128xf32>
    %470 = vector.shape_cast %469 : vector<1x2x128xf32> to vector<2x128xf32>
    %471 = vector.shape_cast %468 : vector<2x128xf32> to vector<1x2x128xf32>
    tpu.vector_store %arg7[%c25, %c0_306, %c0_307], %471 {strides = array<i32>} : memref<36x2x128xf32, #tpu.memory_space<vmem>>, vector<1x2x128xf32>,
    %c1_i32_308 = arith.constant 1 : i32
    %472 = arith.addi %4, %c1_i32_308 : i32
    %c2_309 = arith.constant 2 : index
    %473 = arith.index_cast %472 : i32 to index
    %c0_310 = arith.constant 0 : index
    %474 = vector.load %arg6[%c2_309, %473, %c0_310] : memref<4x4x128xf32, #tpu.memory_space<vmem>>, vector<1x2x128xf32>
    %475 = vector.shape_cast %474 : vector<1x2x128xf32> to vector<2x128xf32>
    %c1_i32_311 = arith.constant 1 : i32
    %476 = arith.addi %4, %c1_i32_311 : i32
    %c1_i32_312 = arith.constant 1 : i32
    %477 = arith.addi %476, %c1_i32_312 : i32
    %c2_313 = arith.constant 2 : index
    %478 = arith.index_cast %477 : i32 to index
    %c0_314 = arith.constant 0 : index
    %479 = vector.load %arg6[%c2_313, %478, %c0_314] : memref<4x4x128xf32, #tpu.memory_space<vmem>>, vector<1x2x128xf32>
    %480 = vector.shape_cast %479 : vector<1x2x128xf32> to vector<2x128xf32>
    %c111_i32_315 = arith.constant 111 : i32
    %481 = tpu.dynamic_rotate %475 by %c111_i32_315 dim 1 : vector<2x128xf32>, i32 -> vector<2x128xf32>
    %c111_i32_316 = arith.constant 111 : i32
    %482 = tpu.dynamic_rotate %480 by %c111_i32_316 dim 1 : vector<2x128xf32>, i32 -> vector<2x128xf32>
    %c111_i32_317 = arith.constant 111 : i32
    %483 = vector.broadcast %c111_i32_317 : i32 to vector<2x128xi32>
    %484 = arith.cmpi slt, %5, %483 : vector<2x128xi32>
    %485 = arith.select %484, %481, %482 : vector<2x128xi1>, vector<2x128xf32>
    %cst_318 = arith.constant 0.000000e+00 : f32
    %486 = vector.broadcast %cst_318 : f32 to vector<2x128xf32>
    %487 = arith.select %25, %485, %486 : vector<2x128xi1>, vector<2x128xf32>
    %c26 = arith.constant 26 : index
    %c0_319 = arith.constant 0 : index
    %c0_320 = arith.constant 0 : index
    %488 = vector.load %arg7[%c26, %c0_319, %c0_320] : memref<36x2x128xf32, #tpu.memory_space<vmem>>, vector<1x2x128xf32>
    %489 = vector.shape_cast %488 : vector<1x2x128xf32> to vector<2x128xf32>
    %490 = vector.shape_cast %487 : vector<2x128xf32> to vector<1x2x128xf32>
    tpu.vector_store %arg7[%c26, %c0_319, %c0_320], %490 {strides = array<i32>} : memref<36x2x128xf32, #tpu.memory_space<vmem>>, vector<1x2x128xf32>,
    %c0_i32_321 = arith.constant 0 : i32
    %491 = arith.addi %4, %c0_i32_321 : i32
    %c3_322 = arith.constant 3 : index
    %492 = arith.index_cast %491 : i32 to index
    %c0_323 = arith.constant 0 : index
    %493 = vector.load %arg6[%c3_322, %492, %c0_323] : memref<4x4x128xf32, #tpu.memory_space<vmem>>, vector<1x2x128xf32>
    %494 = vector.shape_cast %493 : vector<1x2x128xf32> to vector<2x128xf32>
    %c0_i32_324 = arith.constant 0 : i32
    %495 = arith.addi %4, %c0_i32_324 : i32
    %c1_i32_325 = arith.constant 1 : i32
    %496 = arith.addi %495, %c1_i32_325 : i32
    %c3_326 = arith.constant 3 : index
    %497 = arith.index_cast %496 : i32 to index
    %c0_327 = arith.constant 0 : index
    %498 = vector.load %arg6[%c3_326, %497, %c0_327] : memref<4x4x128xf32, #tpu.memory_space<vmem>>, vector<1x2x128xf32>
    %499 = vector.shape_cast %498 : vector<1x2x128xf32> to vector<2x128xf32>
    %c17_i32_328 = arith.constant 17 : i32
    %500 = tpu.dynamic_rotate %494 by %c17_i32_328 dim 1 : vector<2x128xf32>, i32 -> vector<2x128xf32>
    %c17_i32_329 = arith.constant 17 : i32
    %501 = tpu.dynamic_rotate %499 by %c17_i32_329 dim 1 : vector<2x128xf32>, i32 -> vector<2x128xf32>
    %c17_i32_330 = arith.constant 17 : i32
    %502 = vector.broadcast %c17_i32_330 : i32 to vector<2x128xi32>
    %503 = arith.cmpi slt, %5, %502 : vector<2x128xi32>
    %504 = arith.select %503, %500, %501 : vector<2x128xi1>, vector<2x128xf32>
    %cst_331 = arith.constant 0.000000e+00 : f32
    %505 = vector.broadcast %cst_331 : f32 to vector<2x128xf32>
    %506 = arith.select %23, %504, %505 : vector<2x128xi1>, vector<2x128xf32>
    %c27 = arith.constant 27 : index
    %c0_332 = arith.constant 0 : index
    %c0_333 = arith.constant 0 : index
    %507 = vector.load %arg7[%c27, %c0_332, %c0_333] : memref<36x2x128xf32, #tpu.memory_space<vmem>>, vector<1x2x128xf32>
    %508 = vector.shape_cast %507 : vector<1x2x128xf32> to vector<2x128xf32>
    %509 = vector.shape_cast %506 : vector<2x128xf32> to vector<1x2x128xf32>
    tpu.vector_store %arg7[%c27, %c0_332, %c0_333], %509 {strides = array<i32>} : memref<36x2x128xf32, #tpu.memory_space<vmem>>, vector<1x2x128xf32>,
    %c0_i32_334 = arith.constant 0 : i32
    %510 = arith.addi %4, %c0_i32_334 : i32
    %c3_335 = arith.constant 3 : index
    %511 = arith.index_cast %510 : i32 to index
    %c0_336 = arith.constant 0 : index
    %512 = vector.load %arg6[%c3_335, %511, %c0_336] : memref<4x4x128xf32, #tpu.memory_space<vmem>>, vector<1x2x128xf32>
    %513 = vector.shape_cast %512 : vector<1x2x128xf32> to vector<2x128xf32>
    %c0_i32_337 = arith.constant 0 : i32
    %514 = arith.addi %4, %c0_i32_337 : i32
    %c1_i32_338 = arith.constant 1 : i32
    %515 = arith.addi %514, %c1_i32_338 : i32
    %c3_339 = arith.constant 3 : index
    %516 = arith.index_cast %515 : i32 to index
    %c0_340 = arith.constant 0 : index
    %517 = vector.load %arg6[%c3_339, %516, %c0_340] : memref<4x4x128xf32, #tpu.memory_space<vmem>>, vector<1x2x128xf32>
    %518 = vector.shape_cast %517 : vector<1x2x128xf32> to vector<2x128xf32>
    %c16_i32_341 = arith.constant 16 : i32
    %519 = tpu.dynamic_rotate %513 by %c16_i32_341 dim 1 : vector<2x128xf32>, i32 -> vector<2x128xf32>
    %c16_i32_342 = arith.constant 16 : i32
    %520 = tpu.dynamic_rotate %518 by %c16_i32_342 dim 1 : vector<2x128xf32>, i32 -> vector<2x128xf32>
    %c16_i32_343 = arith.constant 16 : i32
    %521 = vector.broadcast %c16_i32_343 : i32 to vector<2x128xi32>
    %522 = arith.cmpi slt, %5, %521 : vector<2x128xi32>
    %523 = arith.select %522, %519, %520 : vector<2x128xi1>, vector<2x128xf32>
    %c28 = arith.constant 28 : index
    %c0_344 = arith.constant 0 : index
    %c0_345 = arith.constant 0 : index
    %524 = vector.load %arg7[%c28, %c0_344, %c0_345] : memref<36x2x128xf32, #tpu.memory_space<vmem>>, vector<1x2x128xf32>
    %525 = vector.shape_cast %524 : vector<1x2x128xf32> to vector<2x128xf32>
    %526 = vector.shape_cast %523 : vector<2x128xf32> to vector<1x2x128xf32>
    tpu.vector_store %arg7[%c28, %c0_344, %c0_345], %526 {strides = array<i32>} : memref<36x2x128xf32, #tpu.memory_space<vmem>>, vector<1x2x128xf32>,
    %c0_i32_346 = arith.constant 0 : i32
    %527 = arith.addi %4, %c0_i32_346 : i32
    %c3_347 = arith.constant 3 : index
    %528 = arith.index_cast %527 : i32 to index
    %c0_348 = arith.constant 0 : index
    %529 = vector.load %arg6[%c3_347, %528, %c0_348] : memref<4x4x128xf32, #tpu.memory_space<vmem>>, vector<1x2x128xf32>
    %530 = vector.shape_cast %529 : vector<1x2x128xf32> to vector<2x128xf32>
    %c0_i32_349 = arith.constant 0 : i32
    %531 = arith.addi %4, %c0_i32_349 : i32
    %c1_i32_350 = arith.constant 1 : i32
    %532 = arith.addi %531, %c1_i32_350 : i32
    %c3_351 = arith.constant 3 : index
    %533 = arith.index_cast %532 : i32 to index
    %c0_352 = arith.constant 0 : index
    %534 = vector.load %arg6[%c3_351, %533, %c0_352] : memref<4x4x128xf32, #tpu.memory_space<vmem>>, vector<1x2x128xf32>
    %535 = vector.shape_cast %534 : vector<1x2x128xf32> to vector<2x128xf32>
    %c15_i32_353 = arith.constant 15 : i32
    %536 = tpu.dynamic_rotate %530 by %c15_i32_353 dim 1 : vector<2x128xf32>, i32 -> vector<2x128xf32>
    %c15_i32_354 = arith.constant 15 : i32
    %537 = tpu.dynamic_rotate %535 by %c15_i32_354 dim 1 : vector<2x128xf32>, i32 -> vector<2x128xf32>
    %c15_i32_355 = arith.constant 15 : i32
    %538 = vector.broadcast %c15_i32_355 : i32 to vector<2x128xi32>
    %539 = arith.cmpi slt, %5, %538 : vector<2x128xi32>
    %540 = arith.select %539, %536, %537 : vector<2x128xi1>, vector<2x128xf32>
    %cst_356 = arith.constant 0.000000e+00 : f32
    %541 = vector.broadcast %cst_356 : f32 to vector<2x128xf32>
    %542 = arith.select %25, %540, %541 : vector<2x128xi1>, vector<2x128xf32>
    %c29 = arith.constant 29 : index
    %c0_357 = arith.constant 0 : index
    %c0_358 = arith.constant 0 : index
    %543 = vector.load %arg7[%c29, %c0_357, %c0_358] : memref<36x2x128xf32, #tpu.memory_space<vmem>>, vector<1x2x128xf32>
    %544 = vector.shape_cast %543 : vector<1x2x128xf32> to vector<2x128xf32>
    %545 = vector.shape_cast %542 : vector<2x128xf32> to vector<1x2x128xf32>
    tpu.vector_store %arg7[%c29, %c0_357, %c0_358], %545 {strides = array<i32>} : memref<36x2x128xf32, #tpu.memory_space<vmem>>, vector<1x2x128xf32>,
    %c0_i32_359 = arith.constant 0 : i32
    %546 = arith.addi %4, %c0_i32_359 : i32
    %c3_360 = arith.constant 3 : index
    %547 = arith.index_cast %546 : i32 to index
    %c0_361 = arith.constant 0 : index
    %548 = vector.load %arg6[%c3_360, %547, %c0_361] : memref<4x4x128xf32, #tpu.memory_space<vmem>>, vector<1x2x128xf32>
    %549 = vector.shape_cast %548 : vector<1x2x128xf32> to vector<2x128xf32>
    %c0_i32_362 = arith.constant 0 : i32
    %550 = arith.addi %4, %c0_i32_362 : i32
    %c1_i32_363 = arith.constant 1 : i32
    %551 = arith.addi %550, %c1_i32_363 : i32
    %c3_364 = arith.constant 3 : index
    %552 = arith.index_cast %551 : i32 to index
    %c0_365 = arith.constant 0 : index
    %553 = vector.load %arg6[%c3_364, %552, %c0_365] : memref<4x4x128xf32, #tpu.memory_space<vmem>>, vector<1x2x128xf32>
    %554 = vector.shape_cast %553 : vector<1x2x128xf32> to vector<2x128xf32>
    %c1_i32_366 = arith.constant 1 : i32
    %555 = tpu.dynamic_rotate %549 by %c1_i32_366 dim 1 : vector<2x128xf32>, i32 -> vector<2x128xf32>
    %c1_i32_367 = arith.constant 1 : i32
    %556 = tpu.dynamic_rotate %554 by %c1_i32_367 dim 1 : vector<2x128xf32>, i32 -> vector<2x128xf32>
    %c1_i32_368 = arith.constant 1 : i32
    %557 = vector.broadcast %c1_i32_368 : i32 to vector<2x128xi32>
    %558 = arith.cmpi slt, %5, %557 : vector<2x128xi32>
    %559 = arith.select %558, %555, %556 : vector<2x128xi1>, vector<2x128xf32>
    %cst_369 = arith.constant 0.000000e+00 : f32
    %560 = vector.broadcast %cst_369 : f32 to vector<2x128xf32>
    %561 = arith.select %23, %559, %560 : vector<2x128xi1>, vector<2x128xf32>
    %c30 = arith.constant 30 : index
    %c0_370 = arith.constant 0 : index
    %c0_371 = arith.constant 0 : index
    %562 = vector.load %arg7[%c30, %c0_370, %c0_371] : memref<36x2x128xf32, #tpu.memory_space<vmem>>, vector<1x2x128xf32>
    %563 = vector.shape_cast %562 : vector<1x2x128xf32> to vector<2x128xf32>
    %564 = vector.shape_cast %561 : vector<2x128xf32> to vector<1x2x128xf32>
    tpu.vector_store %arg7[%c30, %c0_370, %c0_371], %564 {strides = array<i32>} : memref<36x2x128xf32, #tpu.memory_space<vmem>>, vector<1x2x128xf32>,
    %c1_i32_372 = arith.constant 1 : i32
    %565 = arith.addi %4, %c1_i32_372 : i32
    %c3_373 = arith.constant 3 : index
    %566 = arith.index_cast %565 : i32 to index
    %c0_374 = arith.constant 0 : index
    %567 = vector.load %arg6[%c3_373, %566, %c0_374] : memref<4x4x128xf32, #tpu.memory_space<vmem>>, vector<1x2x128xf32>
    %568 = vector.shape_cast %567 : vector<1x2x128xf32> to vector<2x128xf32>
    %c31 = arith.constant 31 : index
    %c0_375 = arith.constant 0 : index
    %c0_376 = arith.constant 0 : index
    %569 = vector.load %arg7[%c31, %c0_375, %c0_376] : memref<36x2x128xf32, #tpu.memory_space<vmem>>, vector<1x2x128xf32>
    %570 = vector.shape_cast %569 : vector<1x2x128xf32> to vector<2x128xf32>
    %571 = vector.shape_cast %568 : vector<2x128xf32> to vector<1x2x128xf32>
    tpu.vector_store %arg7[%c31, %c0_375, %c0_376], %571 {strides = array<i32>} : memref<36x2x128xf32, #tpu.memory_space<vmem>>, vector<1x2x128xf32>,
    %c1_i32_377 = arith.constant 1 : i32
    %572 = arith.addi %4, %c1_i32_377 : i32
    %c3_378 = arith.constant 3 : index
    %573 = arith.index_cast %572 : i32 to index
    %c0_379 = arith.constant 0 : index
    %574 = vector.load %arg6[%c3_378, %573, %c0_379] : memref<4x4x128xf32, #tpu.memory_space<vmem>>, vector<1x2x128xf32>
    %575 = vector.shape_cast %574 : vector<1x2x128xf32> to vector<2x128xf32>
    %c1_i32_380 = arith.constant 1 : i32
    %576 = arith.addi %4, %c1_i32_380 : i32
    %c1_i32_381 = arith.constant 1 : i32
    %577 = arith.addi %576, %c1_i32_381 : i32
    %c3_382 = arith.constant 3 : index
    %578 = arith.index_cast %577 : i32 to index
    %c0_383 = arith.constant 0 : index
    %579 = vector.load %arg6[%c3_382, %578, %c0_383] : memref<4x4x128xf32, #tpu.memory_space<vmem>>, vector<1x2x128xf32>
    %580 = vector.shape_cast %579 : vector<1x2x128xf32> to vector<2x128xf32>
    %c127_i32_384 = arith.constant 127 : i32
    %581 = tpu.dynamic_rotate %575 by %c127_i32_384 dim 1 : vector<2x128xf32>, i32 -> vector<2x128xf32>
    %c127_i32_385 = arith.constant 127 : i32
    %582 = tpu.dynamic_rotate %580 by %c127_i32_385 dim 1 : vector<2x128xf32>, i32 -> vector<2x128xf32>
    %c127_i32_386 = arith.constant 127 : i32
    %583 = vector.broadcast %c127_i32_386 : i32 to vector<2x128xi32>
    %584 = arith.cmpi slt, %5, %583 : vector<2x128xi32>
    %585 = arith.select %584, %581, %582 : vector<2x128xi1>, vector<2x128xf32>
    %cst_387 = arith.constant 0.000000e+00 : f32
    %586 = vector.broadcast %cst_387 : f32 to vector<2x128xf32>
    %587 = arith.select %25, %585, %586 : vector<2x128xi1>, vector<2x128xf32>
    %c32 = arith.constant 32 : index
    %c0_388 = arith.constant 0 : index
    %c0_389 = arith.constant 0 : index
    %588 = vector.load %arg7[%c32, %c0_388, %c0_389] : memref<36x2x128xf32, #tpu.memory_space<vmem>>, vector<1x2x128xf32>
    %589 = vector.shape_cast %588 : vector<1x2x128xf32> to vector<2x128xf32>
    %590 = vector.shape_cast %587 : vector<2x128xf32> to vector<1x2x128xf32>
    tpu.vector_store %arg7[%c32, %c0_388, %c0_389], %590 {strides = array<i32>} : memref<36x2x128xf32, #tpu.memory_space<vmem>>, vector<1x2x128xf32>,
    %c1_i32_390 = arith.constant 1 : i32
    %591 = arith.addi %4, %c1_i32_390 : i32
    %c3_391 = arith.constant 3 : index
    %592 = arith.index_cast %591 : i32 to index
    %c0_392 = arith.constant 0 : index
    %593 = vector.load %arg6[%c3_391, %592, %c0_392] : memref<4x4x128xf32, #tpu.memory_space<vmem>>, vector<1x2x128xf32>
    %594 = vector.shape_cast %593 : vector<1x2x128xf32> to vector<2x128xf32>
    %c1_i32_393 = arith.constant 1 : i32
    %595 = arith.addi %4, %c1_i32_393 : i32
    %c1_i32_394 = arith.constant 1 : i32
    %596 = arith.addi %595, %c1_i32_394 : i32
    %c3_395 = arith.constant 3 : index
    %597 = arith.index_cast %596 : i32 to index
    %c0_396 = arith.constant 0 : index
    %598 = vector.load %arg6[%c3_395, %597, %c0_396] : memref<4x4x128xf32, #tpu.memory_space<vmem>>, vector<1x2x128xf32>
    %599 = vector.shape_cast %598 : vector<1x2x128xf32> to vector<2x128xf32>
    %c113_i32_397 = arith.constant 113 : i32
    %600 = tpu.dynamic_rotate %594 by %c113_i32_397 dim 1 : vector<2x128xf32>, i32 -> vector<2x128xf32>
    %c113_i32_398 = arith.constant 113 : i32
    %601 = tpu.dynamic_rotate %599 by %c113_i32_398 dim 1 : vector<2x128xf32>, i32 -> vector<2x128xf32>
    %c113_i32_399 = arith.constant 113 : i32
    %602 = vector.broadcast %c113_i32_399 : i32 to vector<2x128xi32>
    %603 = arith.cmpi slt, %5, %602 : vector<2x128xi32>
    %604 = arith.select %603, %600, %601 : vector<2x128xi1>, vector<2x128xf32>
    %cst_400 = arith.constant 0.000000e+00 : f32
    %605 = vector.broadcast %cst_400 : f32 to vector<2x128xf32>
    %606 = arith.select %23, %604, %605 : vector<2x128xi1>, vector<2x128xf32>
    %c33 = arith.constant 33 : index
    %c0_401 = arith.constant 0 : index
    %c0_402 = arith.constant 0 : index
    %607 = vector.load %arg7[%c33, %c0_401, %c0_402] : memref<36x2x128xf32, #tpu.memory_space<vmem>>, vector<1x2x128xf32>
    %608 = vector.shape_cast %607 : vector<1x2x128xf32> to vector<2x128xf32>
    %609 = vector.shape_cast %606 : vector<2x128xf32> to vector<1x2x128xf32>
    tpu.vector_store %arg7[%c33, %c0_401, %c0_402], %609 {strides = array<i32>} : memref<36x2x128xf32, #tpu.memory_space<vmem>>, vector<1x2x128xf32>,
    %c1_i32_403 = arith.constant 1 : i32
    %610 = arith.addi %4, %c1_i32_403 : i32
    %c3_404 = arith.constant 3 : index
    %611 = arith.index_cast %610 : i32 to index
    %c0_405 = arith.constant 0 : index
    %612 = vector.load %arg6[%c3_404, %611, %c0_405] : memref<4x4x128xf32, #tpu.memory_space<vmem>>, vector<1x2x128xf32>
    %613 = vector.shape_cast %612 : vector<1x2x128xf32> to vector<2x128xf32>
    %c1_i32_406 = arith.constant 1 : i32
    %614 = arith.addi %4, %c1_i32_406 : i32
    %c1_i32_407 = arith.constant 1 : i32
    %615 = arith.addi %614, %c1_i32_407 : i32
    %c3_408 = arith.constant 3 : index
    %616 = arith.index_cast %615 : i32 to index
    %c0_409 = arith.constant 0 : index
    %617 = vector.load %arg6[%c3_408, %616, %c0_409] : memref<4x4x128xf32, #tpu.memory_space<vmem>>, vector<1x2x128xf32>
    %618 = vector.shape_cast %617 : vector<1x2x128xf32> to vector<2x128xf32>
    %c112_i32_410 = arith.constant 112 : i32
    %619 = tpu.dynamic_rotate %613 by %c112_i32_410 dim 1 : vector<2x128xf32>, i32 -> vector<2x128xf32>
    %c112_i32_411 = arith.constant 112 : i32
    %620 = tpu.dynamic_rotate %618 by %c112_i32_411 dim 1 : vector<2x128xf32>, i32 -> vector<2x128xf32>
    %c112_i32_412 = arith.constant 112 : i32
    %621 = vector.broadcast %c112_i32_412 : i32 to vector<2x128xi32>
    %622 = arith.cmpi slt, %5, %621 : vector<2x128xi32>
    %623 = arith.select %622, %619, %620 : vector<2x128xi1>, vector<2x128xf32>
    %c34 = arith.constant 34 : index
    %c0_413 = arith.constant 0 : index
    %c0_414 = arith.constant 0 : index
    %624 = vector.load %arg7[%c34, %c0_413, %c0_414] : memref<36x2x128xf32, #tpu.memory_space<vmem>>, vector<1x2x128xf32>
    %625 = vector.shape_cast %624 : vector<1x2x128xf32> to vector<2x128xf32>
    %626 = vector.shape_cast %623 : vector<2x128xf32> to vector<1x2x128xf32>
    tpu.vector_store %arg7[%c34, %c0_413, %c0_414], %626 {strides = array<i32>} : memref<36x2x128xf32, #tpu.memory_space<vmem>>, vector<1x2x128xf32>,
    %c1_i32_415 = arith.constant 1 : i32
    %627 = arith.addi %4, %c1_i32_415 : i32
    %c3_416 = arith.constant 3 : index
    %628 = arith.index_cast %627 : i32 to index
    %c0_417 = arith.constant 0 : index
    %629 = vector.load %arg6[%c3_416, %628, %c0_417] : memref<4x4x128xf32, #tpu.memory_space<vmem>>, vector<1x2x128xf32>
    %630 = vector.shape_cast %629 : vector<1x2x128xf32> to vector<2x128xf32>
    %c1_i32_418 = arith.constant 1 : i32
    %631 = arith.addi %4, %c1_i32_418 : i32
    %c1_i32_419 = arith.constant 1 : i32
    %632 = arith.addi %631, %c1_i32_419 : i32
    %c3_420 = arith.constant 3 : index
    %633 = arith.index_cast %632 : i32 to index
    %c0_421 = arith.constant 0 : index
    %634 = vector.load %arg6[%c3_420, %633, %c0_421] : memref<4x4x128xf32, #tpu.memory_space<vmem>>, vector<1x2x128xf32>
    %635 = vector.shape_cast %634 : vector<1x2x128xf32> to vector<2x128xf32>
    %c111_i32_422 = arith.constant 111 : i32
    %636 = tpu.dynamic_rotate %630 by %c111_i32_422 dim 1 : vector<2x128xf32>, i32 -> vector<2x128xf32>
    %c111_i32_423 = arith.constant 111 : i32
    %637 = tpu.dynamic_rotate %635 by %c111_i32_423 dim 1 : vector<2x128xf32>, i32 -> vector<2x128xf32>
    %c111_i32_424 = arith.constant 111 : i32
    %638 = vector.broadcast %c111_i32_424 : i32 to vector<2x128xi32>
    %639 = arith.cmpi slt, %5, %638 : vector<2x128xi32>
    %640 = arith.select %639, %636, %637 : vector<2x128xi1>, vector<2x128xf32>
    %cst_425 = arith.constant 0.000000e+00 : f32
    %641 = vector.broadcast %cst_425 : f32 to vector<2x128xf32>
    %642 = arith.select %25, %640, %641 : vector<2x128xi1>, vector<2x128xf32>
    %c35 = arith.constant 35 : index
    %c0_426 = arith.constant 0 : index
    %c0_427 = arith.constant 0 : index
    %643 = vector.load %arg7[%c35, %c0_426, %c0_427] : memref<36x2x128xf32, #tpu.memory_space<vmem>>, vector<1x2x128xf32>
    %644 = vector.shape_cast %643 : vector<1x2x128xf32> to vector<2x128xf32>
    %645 = vector.shape_cast %642 : vector<2x128xf32> to vector<1x2x128xf32>
    tpu.vector_store %arg7[%c35, %c0_426, %c0_427], %645 {strides = array<i32>} : memref<36x2x128xf32, #tpu.memory_space<vmem>>, vector<1x2x128xf32>,
    %cst_428 = arith.constant 0.707106769 : f32
    %c0_i32_429 = arith.constant 0 : i32
    %c8_i32 = arith.constant 8 : i32
    %646 = arith.addi %c0_i32_429, %c8_i32 : i32
    %c1_i32_430 = arith.constant 1 : i32
    scf.for %arg8 = %c0_i32_429 to %646 step %c1_i32_430  : i32 {
      %cst_432 = arith.constant 0.000000e+00 : f32
      %647 = vector.broadcast %cst_432 : f32 to vector<2x128xf32>
      %648 = arith.index_cast %arg8 : i32 to index
      %c0_433 = arith.constant 0 : index
      %649 = memref.load %arg3[%648, %c0_433] : memref<8x36xf32, #tpu.memory_space<smem>>
      %c0_434 = arith.constant 0 : index
      %c0_435 = arith.constant 0 : index
      %c0_436 = arith.constant 0 : index
      %650 = vector.load %arg7[%c0_434, %c0_435, %c0_436] : memref<36x2x128xf32, #tpu.memory_space<vmem>>, vector<1x2x128xf32>
      %651 = vector.shape_cast %650 : vector<1x2x128xf32> to vector<2x128xf32>
      %652 = vector.broadcast %649 : f32 to vector<2x128xf32>
      %653 = arith.mulf %652, %651 : vector<2x128xf32>
      %654 = arith.addf %647, %653 : vector<2x128xf32>
      %655 = arith.index_cast %arg8 : i32 to index
      %c1_437 = arith.constant 1 : index
      %656 = memref.load %arg3[%655, %c1_437] : memref<8x36xf32, #tpu.memory_space<smem>>
      %c1_438 = arith.constant 1 : index
      %c0_439 = arith.constant 0 : index
      %c0_440 = arith.constant 0 : index
      %657 = vector.load %arg7[%c1_438, %c0_439, %c0_440] : memref<36x2x128xf32, #tpu.memory_space<vmem>>, vector<1x2x128xf32>
      %658 = vector.shape_cast %657 : vector<1x2x128xf32> to vector<2x128xf32>
      %659 = vector.broadcast %656 : f32 to vector<2x128xf32>
      %660 = arith.mulf %659, %658 : vector<2x128xf32>
      %661 = arith.addf %654, %660 : vector<2x128xf32>
      %662 = arith.index_cast %arg8 : i32 to index
      %c2_441 = arith.constant 2 : index
      %663 = memref.load %arg3[%662, %c2_441] : memref<8x36xf32, #tpu.memory_space<smem>>
      %c2_442 = arith.constant 2 : index
      %c0_443 = arith.constant 0 : index
      %c0_444 = arith.constant 0 : index
      %664 = vector.load %arg7[%c2_442, %c0_443, %c0_444] : memref<36x2x128xf32, #tpu.memory_space<vmem>>, vector<1x2x128xf32>
      %665 = vector.shape_cast %664 : vector<1x2x128xf32> to vector<2x128xf32>
      %666 = vector.broadcast %663 : f32 to vector<2x128xf32>
      %667 = arith.mulf %666, %665 : vector<2x128xf32>
      %668 = arith.addf %661, %667 : vector<2x128xf32>
      %669 = arith.index_cast %arg8 : i32 to index
      %c3_445 = arith.constant 3 : index
      %670 = memref.load %arg3[%669, %c3_445] : memref<8x36xf32, #tpu.memory_space<smem>>
      %c3_446 = arith.constant 3 : index
      %c0_447 = arith.constant 0 : index
      %c0_448 = arith.constant 0 : index
      %671 = vector.load %arg7[%c3_446, %c0_447, %c0_448] : memref<36x2x128xf32, #tpu.memory_space<vmem>>, vector<1x2x128xf32>
      %672 = vector.shape_cast %671 : vector<1x2x128xf32> to vector<2x128xf32>
      %673 = vector.broadcast %670 : f32 to vector<2x128xf32>
      %674 = arith.mulf %673, %672 : vector<2x128xf32>
      %675 = arith.addf %668, %674 : vector<2x128xf32>
      %676 = arith.index_cast %arg8 : i32 to index
      %c4_449 = arith.constant 4 : index
      %677 = memref.load %arg3[%676, %c4_449] : memref<8x36xf32, #tpu.memory_space<smem>>
      %c4_450 = arith.constant 4 : index
      %c0_451 = arith.constant 0 : index
      %c0_452 = arith.constant 0 : index
      %678 = vector.load %arg7[%c4_450, %c0_451, %c0_452] : memref<36x2x128xf32, #tpu.memory_space<vmem>>, vector<1x2x128xf32>
      %679 = vector.shape_cast %678 : vector<1x2x128xf32> to vector<2x128xf32>
      %680 = vector.broadcast %677 : f32 to vector<2x128xf32>
      %681 = arith.mulf %680, %679 : vector<2x128xf32>
      %682 = arith.addf %675, %681 : vector<2x128xf32>
      %683 = arith.index_cast %arg8 : i32 to index
      %c5_453 = arith.constant 5 : index
      %684 = memref.load %arg3[%683, %c5_453] : memref<8x36xf32, #tpu.memory_space<smem>>
      %c5_454 = arith.constant 5 : index
      %c0_455 = arith.constant 0 : index
      %c0_456 = arith.constant 0 : index
      %685 = vector.load %arg7[%c5_454, %c0_455, %c0_456] : memref<36x2x128xf32, #tpu.memory_space<vmem>>, vector<1x2x128xf32>
      %686 = vector.shape_cast %685 : vector<1x2x128xf32> to vector<2x128xf32>
      %687 = vector.broadcast %684 : f32 to vector<2x128xf32>
      %688 = arith.mulf %687, %686 : vector<2x128xf32>
      %689 = arith.addf %682, %688 : vector<2x128xf32>
      %690 = arith.index_cast %arg8 : i32 to index
      %c6_457 = arith.constant 6 : index
      %691 = memref.load %arg3[%690, %c6_457] : memref<8x36xf32, #tpu.memory_space<smem>>
      %c6_458 = arith.constant 6 : index
      %c0_459 = arith.constant 0 : index
      %c0_460 = arith.constant 0 : index
      %692 = vector.load %arg7[%c6_458, %c0_459, %c0_460] : memref<36x2x128xf32, #tpu.memory_space<vmem>>, vector<1x2x128xf32>
      %693 = vector.shape_cast %692 : vector<1x2x128xf32> to vector<2x128xf32>
      %694 = vector.broadcast %691 : f32 to vector<2x128xf32>
      %695 = arith.mulf %694, %693 : vector<2x128xf32>
      %696 = arith.addf %689, %695 : vector<2x128xf32>
      %697 = arith.index_cast %arg8 : i32 to index
      %c7_461 = arith.constant 7 : index
      %698 = memref.load %arg3[%697, %c7_461] : memref<8x36xf32, #tpu.memory_space<smem>>
      %c7_462 = arith.constant 7 : index
      %c0_463 = arith.constant 0 : index
      %c0_464 = arith.constant 0 : index
      %699 = vector.load %arg7[%c7_462, %c0_463, %c0_464] : memref<36x2x128xf32, #tpu.memory_space<vmem>>, vector<1x2x128xf32>
      %700 = vector.shape_cast %699 : vector<1x2x128xf32> to vector<2x128xf32>
      %701 = vector.broadcast %698 : f32 to vector<2x128xf32>
      %702 = arith.mulf %701, %700 : vector<2x128xf32>
      %703 = arith.addf %696, %702 : vector<2x128xf32>
      %704 = arith.index_cast %arg8 : i32 to index
      %c8_465 = arith.constant 8 : index
      %705 = memref.load %arg3[%704, %c8_465] : memref<8x36xf32, #tpu.memory_space<smem>>
      %c8_466 = arith.constant 8 : index
      %c0_467 = arith.constant 0 : index
      %c0_468 = arith.constant 0 : index
      %706 = vector.load %arg7[%c8_466, %c0_467, %c0_468] : memref<36x2x128xf32, #tpu.memory_space<vmem>>, vector<1x2x128xf32>
      %707 = vector.shape_cast %706 : vector<1x2x128xf32> to vector<2x128xf32>
      %708 = vector.broadcast %705 : f32 to vector<2x128xf32>
      %709 = arith.mulf %708, %707 : vector<2x128xf32>
      %710 = arith.addf %703, %709 : vector<2x128xf32>
      %711 = arith.index_cast %arg8 : i32 to index
      %c9_469 = arith.constant 9 : index
      %712 = memref.load %arg3[%711, %c9_469] : memref<8x36xf32, #tpu.memory_space<smem>>
      %c9_470 = arith.constant 9 : index
      %c0_471 = arith.constant 0 : index
      %c0_472 = arith.constant 0 : index
      %713 = vector.load %arg7[%c9_470, %c0_471, %c0_472] : memref<36x2x128xf32, #tpu.memory_space<vmem>>, vector<1x2x128xf32>
      %714 = vector.shape_cast %713 : vector<1x2x128xf32> to vector<2x128xf32>
      %715 = vector.broadcast %712 : f32 to vector<2x128xf32>
      %716 = arith.mulf %715, %714 : vector<2x128xf32>
      %717 = arith.addf %710, %716 : vector<2x128xf32>
      %718 = arith.index_cast %arg8 : i32 to index
      %c10_473 = arith.constant 10 : index
      %719 = memref.load %arg3[%718, %c10_473] : memref<8x36xf32, #tpu.memory_space<smem>>
      %c10_474 = arith.constant 10 : index
      %c0_475 = arith.constant 0 : index
      %c0_476 = arith.constant 0 : index
      %720 = vector.load %arg7[%c10_474, %c0_475, %c0_476] : memref<36x2x128xf32, #tpu.memory_space<vmem>>, vector<1x2x128xf32>
      %721 = vector.shape_cast %720 : vector<1x2x128xf32> to vector<2x128xf32>
      %722 = vector.broadcast %719 : f32 to vector<2x128xf32>
      %723 = arith.mulf %722, %721 : vector<2x128xf32>
      %724 = arith.addf %717, %723 : vector<2x128xf32>
      %725 = arith.index_cast %arg8 : i32 to index
      %c11_477 = arith.constant 11 : index
      %726 = memref.load %arg3[%725, %c11_477] : memref<8x36xf32, #tpu.memory_space<smem>>
      %c11_478 = arith.constant 11 : index
      %c0_479 = arith.constant 0 : index
      %c0_480 = arith.constant 0 : index
      %727 = vector.load %arg7[%c11_478, %c0_479, %c0_480] : memref<36x2x128xf32, #tpu.memory_space<vmem>>, vector<1x2x128xf32>
      %728 = vector.shape_cast %727 : vector<1x2x128xf32> to vector<2x128xf32>
      %729 = vector.broadcast %726 : f32 to vector<2x128xf32>
      %730 = arith.mulf %729, %728 : vector<2x128xf32>
      %731 = arith.addf %724, %730 : vector<2x128xf32>
      %732 = arith.index_cast %arg8 : i32 to index
      %c12_481 = arith.constant 12 : index
      %733 = memref.load %arg3[%732, %c12_481] : memref<8x36xf32, #tpu.memory_space<smem>>
      %c12_482 = arith.constant 12 : index
      %c0_483 = arith.constant 0 : index
      %c0_484 = arith.constant 0 : index
      %734 = vector.load %arg7[%c12_482, %c0_483, %c0_484] : memref<36x2x128xf32, #tpu.memory_space<vmem>>, vector<1x2x128xf32>
      %735 = vector.shape_cast %734 : vector<1x2x128xf32> to vector<2x128xf32>
      %736 = vector.broadcast %733 : f32 to vector<2x128xf32>
      %737 = arith.mulf %736, %735 : vector<2x128xf32>
      %738 = arith.addf %731, %737 : vector<2x128xf32>
      %739 = arith.index_cast %arg8 : i32 to index
      %c13_485 = arith.constant 13 : index
      %740 = memref.load %arg3[%739, %c13_485] : memref<8x36xf32, #tpu.memory_space<smem>>
      %c13_486 = arith.constant 13 : index
      %c0_487 = arith.constant 0 : index
      %c0_488 = arith.constant 0 : index
      %741 = vector.load %arg7[%c13_486, %c0_487, %c0_488] : memref<36x2x128xf32, #tpu.memory_space<vmem>>, vector<1x2x128xf32>
      %742 = vector.shape_cast %741 : vector<1x2x128xf32> to vector<2x128xf32>
      %743 = vector.broadcast %740 : f32 to vector<2x128xf32>
      %744 = arith.mulf %743, %742 : vector<2x128xf32>
      %745 = arith.addf %738, %744 : vector<2x128xf32>
      %746 = arith.index_cast %arg8 : i32 to index
      %c14_489 = arith.constant 14 : index
      %747 = memref.load %arg3[%746, %c14_489] : memref<8x36xf32, #tpu.memory_space<smem>>
      %c14_490 = arith.constant 14 : index
      %c0_491 = arith.constant 0 : index
      %c0_492 = arith.constant 0 : index
      %748 = vector.load %arg7[%c14_490, %c0_491, %c0_492] : memref<36x2x128xf32, #tpu.memory_space<vmem>>, vector<1x2x128xf32>
      %749 = vector.shape_cast %748 : vector<1x2x128xf32> to vector<2x128xf32>
      %750 = vector.broadcast %747 : f32 to vector<2x128xf32>
      %751 = arith.mulf %750, %749 : vector<2x128xf32>
      %752 = arith.addf %745, %751 : vector<2x128xf32>
      %753 = arith.index_cast %arg8 : i32 to index
      %c15_493 = arith.constant 15 : index
      %754 = memref.load %arg3[%753, %c15_493] : memref<8x36xf32, #tpu.memory_space<smem>>
      %c15_494 = arith.constant 15 : index
      %c0_495 = arith.constant 0 : index
      %c0_496 = arith.constant 0 : index
      %755 = vector.load %arg7[%c15_494, %c0_495, %c0_496] : memref<36x2x128xf32, #tpu.memory_space<vmem>>, vector<1x2x128xf32>
      %756 = vector.shape_cast %755 : vector<1x2x128xf32> to vector<2x128xf32>
      %757 = vector.broadcast %754 : f32 to vector<2x128xf32>
      %758 = arith.mulf %757, %756 : vector<2x128xf32>
      %759 = arith.addf %752, %758 : vector<2x128xf32>
      %760 = arith.index_cast %arg8 : i32 to index
      %c16_497 = arith.constant 16 : index
      %761 = memref.load %arg3[%760, %c16_497] : memref<8x36xf32, #tpu.memory_space<smem>>
      %c16_498 = arith.constant 16 : index
      %c0_499 = arith.constant 0 : index
      %c0_500 = arith.constant 0 : index
      %762 = vector.load %arg7[%c16_498, %c0_499, %c0_500] : memref<36x2x128xf32, #tpu.memory_space<vmem>>, vector<1x2x128xf32>
      %763 = vector.shape_cast %762 : vector<1x2x128xf32> to vector<2x128xf32>
      %764 = vector.broadcast %761 : f32 to vector<2x128xf32>
      %765 = arith.mulf %764, %763 : vector<2x128xf32>
      %766 = arith.addf %759, %765 : vector<2x128xf32>
      %767 = arith.index_cast %arg8 : i32 to index
      %c17_501 = arith.constant 17 : index
      %768 = memref.load %arg3[%767, %c17_501] : memref<8x36xf32, #tpu.memory_space<smem>>
      %c17_502 = arith.constant 17 : index
      %c0_503 = arith.constant 0 : index
      %c0_504 = arith.constant 0 : index
      %769 = vector.load %arg7[%c17_502, %c0_503, %c0_504] : memref<36x2x128xf32, #tpu.memory_space<vmem>>, vector<1x2x128xf32>
      %770 = vector.shape_cast %769 : vector<1x2x128xf32> to vector<2x128xf32>
      %771 = vector.broadcast %768 : f32 to vector<2x128xf32>
      %772 = arith.mulf %771, %770 : vector<2x128xf32>
      %773 = arith.addf %766, %772 : vector<2x128xf32>
      %774 = arith.index_cast %arg8 : i32 to index
      %c18_505 = arith.constant 18 : index
      %775 = memref.load %arg3[%774, %c18_505] : memref<8x36xf32, #tpu.memory_space<smem>>
      %c18_506 = arith.constant 18 : index
      %c0_507 = arith.constant 0 : index
      %c0_508 = arith.constant 0 : index
      %776 = vector.load %arg7[%c18_506, %c0_507, %c0_508] : memref<36x2x128xf32, #tpu.memory_space<vmem>>, vector<1x2x128xf32>
      %777 = vector.shape_cast %776 : vector<1x2x128xf32> to vector<2x128xf32>
      %778 = vector.broadcast %775 : f32 to vector<2x128xf32>
      %779 = arith.mulf %778, %777 : vector<2x128xf32>
      %780 = arith.addf %773, %779 : vector<2x128xf32>
      %781 = arith.index_cast %arg8 : i32 to index
      %c19_509 = arith.constant 19 : index
      %782 = memref.load %arg3[%781, %c19_509] : memref<8x36xf32, #tpu.memory_space<smem>>
      %c19_510 = arith.constant 19 : index
      %c0_511 = arith.constant 0 : index
      %c0_512 = arith.constant 0 : index
      %783 = vector.load %arg7[%c19_510, %c0_511, %c0_512] : memref<36x2x128xf32, #tpu.memory_space<vmem>>, vector<1x2x128xf32>
      %784 = vector.shape_cast %783 : vector<1x2x128xf32> to vector<2x128xf32>
      %785 = vector.broadcast %782 : f32 to vector<2x128xf32>
      %786 = arith.mulf %785, %784 : vector<2x128xf32>
      %787 = arith.addf %780, %786 : vector<2x128xf32>
      %788 = arith.index_cast %arg8 : i32 to index
      %c20_513 = arith.constant 20 : index
      %789 = memref.load %arg3[%788, %c20_513] : memref<8x36xf32, #tpu.memory_space<smem>>
      %c20_514 = arith.constant 20 : index
      %c0_515 = arith.constant 0 : index
      %c0_516 = arith.constant 0 : index
      %790 = vector.load %arg7[%c20_514, %c0_515, %c0_516] : memref<36x2x128xf32, #tpu.memory_space<vmem>>, vector<1x2x128xf32>
      %791 = vector.shape_cast %790 : vector<1x2x128xf32> to vector<2x128xf32>
      %792 = vector.broadcast %789 : f32 to vector<2x128xf32>
      %793 = arith.mulf %792, %791 : vector<2x128xf32>
      %794 = arith.addf %787, %793 : vector<2x128xf32>
      %795 = arith.index_cast %arg8 : i32 to index
      %c21_517 = arith.constant 21 : index
      %796 = memref.load %arg3[%795, %c21_517] : memref<8x36xf32, #tpu.memory_space<smem>>
      %c21_518 = arith.constant 21 : index
      %c0_519 = arith.constant 0 : index
      %c0_520 = arith.constant 0 : index
      %797 = vector.load %arg7[%c21_518, %c0_519, %c0_520] : memref<36x2x128xf32, #tpu.memory_space<vmem>>, vector<1x2x128xf32>
      %798 = vector.shape_cast %797 : vector<1x2x128xf32> to vector<2x128xf32>
      %799 = vector.broadcast %796 : f32 to vector<2x128xf32>
      %800 = arith.mulf %799, %798 : vector<2x128xf32>
      %801 = arith.addf %794, %800 : vector<2x128xf32>
      %802 = arith.index_cast %arg8 : i32 to index
      %c22_521 = arith.constant 22 : index
      %803 = memref.load %arg3[%802, %c22_521] : memref<8x36xf32, #tpu.memory_space<smem>>
      %c22_522 = arith.constant 22 : index
      %c0_523 = arith.constant 0 : index
      %c0_524 = arith.constant 0 : index
      %804 = vector.load %arg7[%c22_522, %c0_523, %c0_524] : memref<36x2x128xf32, #tpu.memory_space<vmem>>, vector<1x2x128xf32>
      %805 = vector.shape_cast %804 : vector<1x2x128xf32> to vector<2x128xf32>
      %806 = vector.broadcast %803 : f32 to vector<2x128xf32>
      %807 = arith.mulf %806, %805 : vector<2x128xf32>
      %808 = arith.addf %801, %807 : vector<2x128xf32>
      %809 = arith.index_cast %arg8 : i32 to index
      %c23_525 = arith.constant 23 : index
      %810 = memref.load %arg3[%809, %c23_525] : memref<8x36xf32, #tpu.memory_space<smem>>
      %c23_526 = arith.constant 23 : index
      %c0_527 = arith.constant 0 : index
      %c0_528 = arith.constant 0 : index
      %811 = vector.load %arg7[%c23_526, %c0_527, %c0_528] : memref<36x2x128xf32, #tpu.memory_space<vmem>>, vector<1x2x128xf32>
      %812 = vector.shape_cast %811 : vector<1x2x128xf32> to vector<2x128xf32>
      %813 = vector.broadcast %810 : f32 to vector<2x128xf32>
      %814 = arith.mulf %813, %812 : vector<2x128xf32>
      %815 = arith.addf %808, %814 : vector<2x128xf32>
      %816 = arith.index_cast %arg8 : i32 to index
      %c24_529 = arith.constant 24 : index
      %817 = memref.load %arg3[%816, %c24_529] : memref<8x36xf32, #tpu.memory_space<smem>>
      %c24_530 = arith.constant 24 : index
      %c0_531 = arith.constant 0 : index
      %c0_532 = arith.constant 0 : index
      %818 = vector.load %arg7[%c24_530, %c0_531, %c0_532] : memref<36x2x128xf32, #tpu.memory_space<vmem>>, vector<1x2x128xf32>
      %819 = vector.shape_cast %818 : vector<1x2x128xf32> to vector<2x128xf32>
      %820 = vector.broadcast %817 : f32 to vector<2x128xf32>
      %821 = arith.mulf %820, %819 : vector<2x128xf32>
      %822 = arith.addf %815, %821 : vector<2x128xf32>
      %823 = arith.index_cast %arg8 : i32 to index
      %c25_533 = arith.constant 25 : index
      %824 = memref.load %arg3[%823, %c25_533] : memref<8x36xf32, #tpu.memory_space<smem>>
      %c25_534 = arith.constant 25 : index
      %c0_535 = arith.constant 0 : index
      %c0_536 = arith.constant 0 : index
      %825 = vector.load %arg7[%c25_534, %c0_535, %c0_536] : memref<36x2x128xf32, #tpu.memory_space<vmem>>, vector<1x2x128xf32>
      %826 = vector.shape_cast %825 : vector<1x2x128xf32> to vector<2x128xf32>
      %827 = vector.broadcast %824 : f32 to vector<2x128xf32>
      %828 = arith.mulf %827, %826 : vector<2x128xf32>
      %829 = arith.addf %822, %828 : vector<2x128xf32>
      %830 = arith.index_cast %arg8 : i32 to index
      %c26_537 = arith.constant 26 : index
      %831 = memref.load %arg3[%830, %c26_537] : memref<8x36xf32, #tpu.memory_space<smem>>
      %c26_538 = arith.constant 26 : index
      %c0_539 = arith.constant 0 : index
      %c0_540 = arith.constant 0 : index
      %832 = vector.load %arg7[%c26_538, %c0_539, %c0_540] : memref<36x2x128xf32, #tpu.memory_space<vmem>>, vector<1x2x128xf32>
      %833 = vector.shape_cast %832 : vector<1x2x128xf32> to vector<2x128xf32>
      %834 = vector.broadcast %831 : f32 to vector<2x128xf32>
      %835 = arith.mulf %834, %833 : vector<2x128xf32>
      %836 = arith.addf %829, %835 : vector<2x128xf32>
      %837 = arith.index_cast %arg8 : i32 to index
      %c27_541 = arith.constant 27 : index
      %838 = memref.load %arg3[%837, %c27_541] : memref<8x36xf32, #tpu.memory_space<smem>>
      %c27_542 = arith.constant 27 : index
      %c0_543 = arith.constant 0 : index
      %c0_544 = arith.constant 0 : index
      %839 = vector.load %arg7[%c27_542, %c0_543, %c0_544] : memref<36x2x128xf32, #tpu.memory_space<vmem>>, vector<1x2x128xf32>
      %840 = vector.shape_cast %839 : vector<1x2x128xf32> to vector<2x128xf32>
      %841 = vector.broadcast %838 : f32 to vector<2x128xf32>
      %842 = arith.mulf %841, %840 : vector<2x128xf32>
      %843 = arith.addf %836, %842 : vector<2x128xf32>
      %844 = arith.index_cast %arg8 : i32 to index
      %c28_545 = arith.constant 28 : index
      %845 = memref.load %arg3[%844, %c28_545] : memref<8x36xf32, #tpu.memory_space<smem>>
      %c28_546 = arith.constant 28 : index
      %c0_547 = arith.constant 0 : index
      %c0_548 = arith.constant 0 : index
      %846 = vector.load %arg7[%c28_546, %c0_547, %c0_548] : memref<36x2x128xf32, #tpu.memory_space<vmem>>, vector<1x2x128xf32>
      %847 = vector.shape_cast %846 : vector<1x2x128xf32> to vector<2x128xf32>
      %848 = vector.broadcast %845 : f32 to vector<2x128xf32>
      %849 = arith.mulf %848, %847 : vector<2x128xf32>
      %850 = arith.addf %843, %849 : vector<2x128xf32>
      %851 = arith.index_cast %arg8 : i32 to index
      %c29_549 = arith.constant 29 : index
      %852 = memref.load %arg3[%851, %c29_549] : memref<8x36xf32, #tpu.memory_space<smem>>
      %c29_550 = arith.constant 29 : index
      %c0_551 = arith.constant 0 : index
      %c0_552 = arith.constant 0 : index
      %853 = vector.load %arg7[%c29_550, %c0_551, %c0_552] : memref<36x2x128xf32, #tpu.memory_space<vmem>>, vector<1x2x128xf32>
      %854 = vector.shape_cast %853 : vector<1x2x128xf32> to vector<2x128xf32>
      %855 = vector.broadcast %852 : f32 to vector<2x128xf32>
      %856 = arith.mulf %855, %854 : vector<2x128xf32>
      %857 = arith.addf %850, %856 : vector<2x128xf32>
      %858 = arith.index_cast %arg8 : i32 to index
      %c30_553 = arith.constant 30 : index
      %859 = memref.load %arg3[%858, %c30_553] : memref<8x36xf32, #tpu.memory_space<smem>>
      %c30_554 = arith.constant 30 : index
      %c0_555 = arith.constant 0 : index
      %c0_556 = arith.constant 0 : index
      %860 = vector.load %arg7[%c30_554, %c0_555, %c0_556] : memref<36x2x128xf32, #tpu.memory_space<vmem>>, vector<1x2x128xf32>
      %861 = vector.shape_cast %860 : vector<1x2x128xf32> to vector<2x128xf32>
      %862 = vector.broadcast %859 : f32 to vector<2x128xf32>
      %863 = arith.mulf %862, %861 : vector<2x128xf32>
      %864 = arith.addf %857, %863 : vector<2x128xf32>
      %865 = arith.index_cast %arg8 : i32 to index
      %c31_557 = arith.constant 31 : index
      %866 = memref.load %arg3[%865, %c31_557] : memref<8x36xf32, #tpu.memory_space<smem>>
      %c31_558 = arith.constant 31 : index
      %c0_559 = arith.constant 0 : index
      %c0_560 = arith.constant 0 : index
      %867 = vector.load %arg7[%c31_558, %c0_559, %c0_560] : memref<36x2x128xf32, #tpu.memory_space<vmem>>, vector<1x2x128xf32>
      %868 = vector.shape_cast %867 : vector<1x2x128xf32> to vector<2x128xf32>
      %869 = vector.broadcast %866 : f32 to vector<2x128xf32>
      %870 = arith.mulf %869, %868 : vector<2x128xf32>
      %871 = arith.addf %864, %870 : vector<2x128xf32>
      %872 = arith.index_cast %arg8 : i32 to index
      %c32_561 = arith.constant 32 : index
      %873 = memref.load %arg3[%872, %c32_561] : memref<8x36xf32, #tpu.memory_space<smem>>
      %c32_562 = arith.constant 32 : index
      %c0_563 = arith.constant 0 : index
      %c0_564 = arith.constant 0 : index
      %874 = vector.load %arg7[%c32_562, %c0_563, %c0_564] : memref<36x2x128xf32, #tpu.memory_space<vmem>>, vector<1x2x128xf32>
      %875 = vector.shape_cast %874 : vector<1x2x128xf32> to vector<2x128xf32>
      %876 = vector.broadcast %873 : f32 to vector<2x128xf32>
      %877 = arith.mulf %876, %875 : vector<2x128xf32>
      %878 = arith.addf %871, %877 : vector<2x128xf32>
      %879 = arith.index_cast %arg8 : i32 to index
      %c33_565 = arith.constant 33 : index
      %880 = memref.load %arg3[%879, %c33_565] : memref<8x36xf32, #tpu.memory_space<smem>>
      %c33_566 = arith.constant 33 : index
      %c0_567 = arith.constant 0 : index
      %c0_568 = arith.constant 0 : index
      %881 = vector.load %arg7[%c33_566, %c0_567, %c0_568] : memref<36x2x128xf32, #tpu.memory_space<vmem>>, vector<1x2x128xf32>
      %882 = vector.shape_cast %881 : vector<1x2x128xf32> to vector<2x128xf32>
      %883 = vector.broadcast %880 : f32 to vector<2x128xf32>
      %884 = arith.mulf %883, %882 : vector<2x128xf32>
      %885 = arith.addf %878, %884 : vector<2x128xf32>
      %886 = arith.index_cast %arg8 : i32 to index
      %c34_569 = arith.constant 34 : index
      %887 = memref.load %arg3[%886, %c34_569] : memref<8x36xf32, #tpu.memory_space<smem>>
      %c34_570 = arith.constant 34 : index
      %c0_571 = arith.constant 0 : index
      %c0_572 = arith.constant 0 : index
      %888 = vector.load %arg7[%c34_570, %c0_571, %c0_572] : memref<36x2x128xf32, #tpu.memory_space<vmem>>, vector<1x2x128xf32>
      %889 = vector.shape_cast %888 : vector<1x2x128xf32> to vector<2x128xf32>
      %890 = vector.broadcast %887 : f32 to vector<2x128xf32>
      %891 = arith.mulf %890, %889 : vector<2x128xf32>
      %892 = arith.addf %885, %891 : vector<2x128xf32>
      %893 = arith.index_cast %arg8 : i32 to index
      %c35_573 = arith.constant 35 : index
      %894 = memref.load %arg3[%893, %c35_573] : memref<8x36xf32, #tpu.memory_space<smem>>
      %c35_574 = arith.constant 35 : index
      %c0_575 = arith.constant 0 : index
      %c0_576 = arith.constant 0 : index
      %895 = vector.load %arg7[%c35_574, %c0_575, %c0_576] : memref<36x2x128xf32, #tpu.memory_space<vmem>>, vector<1x2x128xf32>
      %896 = vector.shape_cast %895 : vector<1x2x128xf32> to vector<2x128xf32>
      %897 = vector.broadcast %894 : f32 to vector<2x128xf32>
      %898 = arith.mulf %897, %896 : vector<2x128xf32>
      %899 = arith.addf %892, %898 : vector<2x128xf32>
      %900 = arith.index_cast %arg8 : i32 to index
      %901 = memref.load %arg4[%900] : memref<8xf32, #tpu.memory_space<smem>>
      %902 = vector.broadcast %901 : f32 to vector<2x128xf32>
      %903 = arith.addf %899, %902 : vector<2x128xf32>
      %cst_577 = arith.constant 5.000000e-01 : f32
      %904 = vector.broadcast %cst_577 : f32 to vector<2x128xf32>
      %905 = arith.mulf %904, %903 : vector<2x128xf32>
      %906 = vector.broadcast %cst_428 : f32 to vector<2x128xf32>
      %907 = arith.mulf %903, %906 : vector<2x128xf32>
      %908 = math.erf %907 : vector<2x128xf32>
      %cst_578 = arith.constant 1.000000e+00 : f32
      %909 = vector.broadcast %cst_578 : f32 to vector<2x128xf32>
      %910 = arith.addf %909, %908 : vector<2x128xf32>
      %911 = arith.mulf %905, %910 : vector<2x128xf32>
      %c0_579 = arith.constant 0 : index
      %912 = arith.index_cast %arg8 : i32 to index
      %c0_580 = arith.constant 0 : index
      %c0_581 = arith.constant 0 : index
      %913 = vector.load %arg5[%c0_579, %912, %c0_580, %c0_581] : memref<1x8x2x128xf32, #tpu.memory_space<vmem>>, vector<1x1x2x128xf32>
      %914 = vector.shape_cast %913 : vector<1x1x2x128xf32> to vector<2x128xf32>
      %915 = vector.shape_cast %911 : vector<2x128xf32> to vector<1x1x2x128xf32>
      tpu.vector_store %arg5[%c0_579, %912, %c0_580, %c0_581], %915 {strides = array<i32>} : memref<1x8x2x128xf32, #tpu.memory_space<vmem>>, vector<1x1x2x128xf32>,
    }
    %c8_i32_431 = arith.constant 8 : i32
    return
  }
  func.func @transform_0(%arg0: i32, %arg1: i32) -> (i32, i32, i32, i32) {
    %c0_i32 = arith.constant 0 : i32
    %c0_i32_0 = arith.constant 0 : i32
    %c0_i32_1 = arith.constant 0 : i32
    %c0_i32_2 = arith.constant 0 : i32
    return %arg0, %c0_i32, %c0_i32_0, %c0_i32_1 : i32, i32, i32, i32
  }
  func.func @transform_1(%arg0: i32, %arg1: i32) -> (i32, i32) {
    %c0_i32 = arith.constant 0 : i32
    %c0_i32_0 = arith.constant 0 : i32
    %c0_i32_1 = arith.constant 0 : i32
    return %c0_i32, %c0_i32_0 : i32, i32
  }
  func.func @transform_2(%arg0: i32, %arg1: i32) -> i32 {
    %c0_i32 = arith.constant 0 : i32
    %c0_i32_0 = arith.constant 0 : i32
    return %c0_i32 : i32
  }
  func.func @transform_3(%arg0: i32, %arg1: i32) -> (i32, i32, i32, i32) {
    %c0_i32 = arith.constant 0 : i32
    %c0_i32_0 = arith.constant 0 : i32
    %c0_i32_1 = arith.constant 0 : i32
    return %arg0, %c0_i32, %arg1, %c0_i32_0 : i32, i32, i32, i32
  }
}

</mosaic_0001>

<bundles_post_ra>
// kernel: tpu_custom_call.1
= control target key start
LH: loop header
LB: loop body
LE: loop exit
PB: predicated region body
PF: predicated region fallthrough
CT: control target
= control target key end

     0   :  { %s2031_s0 = inlined_call_operand.hbm [shape: f32[2,4,2,128], index: 0, kind: input, shape index: {}]   ;;  %s2032_s1 = inlined_call_operand.hbm [shape: f32[8,36], index: 1, kind: input, shape index: {}]   ;;  %s2033_s2 = inlined_call_operand.vmem [shape: f32[8], index: 2, kind: input, shape index: {}]   ;;  %s2034_s3 = inlined_call_operand.hbm [shape: f32[2,8,2,128], index: 3, kind: output, shape index: {}]  }
   0x1   :  { %2039 = sst [smem:[#allocation19_spill]] %s2031_s0 }
   0x2   :  { %8 = vsyncpa [#allocation5], 0 }
   0x3   :  { %10 = vsyncpa [#allocation5 + $0x1], 0 }
   0x4   :  { %11 = vsyncpa [#allocation7], 0 }
   0x5   :  { %12 = vsyncpa [#allocation8], 0 }
   0x6   :  { %13 = vsyncpa [#allocation6], 0 }
   0x7   :  { %15 = vsyncpa [#allocation6 + $0x1], 0  ;;  %s1482_s12 = smov 0   ;;  %s1484_s13 = smov 0  }
   0x8   :  { %s1486_s14 = smov 0   ;;  %s1488_s15 = smov 0  }
   0x9   :  { %s1490_s16 = smov 0   ;;  %s1492_s17 = smov 0  }
   0xa LB: > { %s1092_s18 = sadd.s32 4294967295, %s1439_s17   ;;  %s1093_s19 = sadd.s32 4294967294, %s1439_s17   ;;  %s1439_s17 = sphi %s1492_s17, %s21_s17   ;;  %s1435_s16 = sphi %s1490_s16, %s2061_s16   ;;  %s1431_s15 = sphi %s1488_s15, %s2060_s15   ;;  %s1427_s14 = sphi %s1486_s14, %s2059_s14   ;;  %s1423_s13 = sphi %s1484_s13, %s2058_s13   ;;  %s1419_s12 = sphi %s1482_s12, %s2057_s12  }
   0xb   : > { %s40_s20 = sadd.s32 1, %s1427_s14  ;;  %p47_p0 = scmp.ne.s32.totalorder %s1427_s14, %s1423_s13 }
   0xc   : > { %p48_p1 = scmp.eq.s32.totalorder %s1439_s17, 0  ;;  %p53_p2 = scmp.ne.s32.totalorder %s1423_s13, %s1419_s12 }
   0xd   : > { %p1520_p3 = scmp.eq.s32.totalorder %s1092_s18, 0  ;;  %p121_p4 = scmp.eq.s32.totalorder %s1092_s18, 1 }
   0xe   : > { %p49_p5 = por %p48_p1, %p47_p0  ;;  %p127_p6 = scmp.eq.s32.totalorder %s1093_s19, 1 }
   0xf   : > { %s2040_s21 = scalar_select %p1520_p3, 1, 0 }
  0x10   : > { %p1526_p7 = por %p1520_p3, %p53_p2  ;;  %p1530_p8 = por %p121_p4, %p47_p0 }
  0x11   : > { %p1534_p9 = por %p127_p6, %p53_p2  ;;  %p1094_p10 = scmp.ge.s32.totalorder %s1439_s17, 1 }
  0x12   : > { %s2041_s22 = scalar_select %p1526_p7, 1, 0 }
  0x13   : > { %s2042_s23 = scalar_select %p1530_p8, 1, 0 }
  0x14   : > { %s2043_s24 = scalar_select %p1534_p9, 1, 0 }
  0x15   : > { %p134_p11 = scmp.lt.s32.totalorder %s1439_s17, 3  ;;  %p1208_p1 = scmp.lt.s32.totalorder %s1439_s17, 2 }
  0x16   : > { %s156_s28 = sshll.u32 %s2033_s2, 4  ;;  %s167_s4 = sand.u32 1, %s1427_s14   ;;  %s157_s28 = int_to_ptr.vmem [resolvable:$true] %s156_s28 }
  0x17   : > { %p1541_p13 = pnand %p1094_p10, %p134_p11  ;;  %p1551_p4 = pnand %p1208_p1, %p49_p5 }
  0x18   : > { %s33_s5 = sadd.s32 1, %s1435_s16  ;;  %s1285_s8 = scalar_lea.hbm %s2032_s1, 128 }
  0x19   : > { %p1191_p0 = pneg %p1541_p13  ;;  %p1286_p5 = scmp.ne.s32.totalorder %s2032_s1, %s1285_s8 }
  0x1a   : > { %p1292_p1 = scmp.lt.u32.totalorder %s1285_s8, %s2032_s1 }
  0x1b   : > { %p1557_p2 = pnand %p1191_p0, %p1520_p3 }
  0x1d   : > { %p1287_p6 = pneg %p1557_p2 }
  0x1f   : > { %p1288_p10 = pnand %p1287_p6, %p1286_p5 }
  0x21   : > { %p1289_p11 = pneg %p1288_p10 }
  0x23   : > { %p1294_p0 = pnand %p1292_p1, %p1289_p11 }
  0x25   : > { %1297 = shalt.err (!%p1294_p0)
}
  0x26   : > { %s1445_s19 = smov [#allocation9]   ;;  %s1298_s6 = scalar_lea.vmem %s157_s28, 16 }
  0x27   : > { %1194 = dma.hbm_to_smem (!%p1557_p2), %s2032_s1, 128, %s1445_s19, [#allocation7]  }
  0x28   : > { %p1299_p12 = scmp.ne.s32.totalorder %s157_s28, %s1298_s6  ;;  %p1306_p3 = scmp.lt.s32.totalorder %s157_s28, %s157_s28 }
  0x29   : > { %p1307_p5 = scmp.lt.s32.totalorder %s1298_s6, %s1298_s6 }
  0x2a   : > { %p1301_p9 = pnand %p1299_p12, %p1287_p6 }
  0x2b   : > { %p1308_p10 = por %p1307_p5, %p1306_p3 }
  0x2c   : > { %p1302_p8 = pneg %p1301_p9 }
  0x2e   : > { %p1309_p7 = pnand %p1308_p10, %p1302_p8 }
  0x30   : > { %1312 = shalt.err (!%p1309_p7)
}
  0x31   : > { %s1446_s7 = smov [#allocation10]   ;;  %p35_p11 = scmp.ge.s32.totalorder %s33_s5, 2 }
  0x32   : > { %1197 = dma.vmem_to_smem (!%p1557_p2), %s157_s28, 16, %s1446_s7, [#allocation8]  }
  0x33   : > { %s1098_s8 = sshll.u32 %s167_s4, 3  ;;  %s1177_s9 = sshll.u32 %s1435_s16, 7 }
  0x34   : > { %s2063_s5 = smov (%p35_p11, %s33_s5), 0  ;;  %s2047_s0 = sld [smem:[#allocation19_spill]] }
  0x35   : > { %s37_s18 = ssub.s32 %s1435_s16, %s2063_s5  ;;  %s171_s19 = scalar_lea.vmem [#allocation4], %s1098_s8 }
  0x36   : > { %s178_s28 = sshll.u32 %s171_s19, 4  ;;  %p38_p3 = scmp.eq.s32.totalorder %s37_s18, 0  ;;  %s1593_s28 = int_to_ptr.vmem [resolvable:$true] %s178_s28 }
  0x37   : > { %s1602_s27 = scalar_lea.sflag [#allocation5], %s167_s4  ;;  %p1315_p8 = pneg %p1551_p4 }
  0x38   : > { %s1598_s26 = scalar_select %p38_p3, %s1427_s14, %s40_s20  }
  0x3a   : > { %s1589_s30 = scalar_lea.hbm %s2047_s0, %s1177_s9  ;;  %s1318_s9 = scalar_lea.hbm %s2047_s0, 256 }
  0x3b   : > { %s1313_s6 = scalar_lea.hbm %s1589_s30, 128  ;;  %p1319_p2 = scmp.lt.u32.totalorder %s1589_s30, %s2047_s0 }
  0x3c   : > { %p1314_p7 = scmp.ne.s32.totalorder %s1589_s30, %s1313_s6  ;;  %p1320_p6 = scmp.lt.u32.totalorder %s1318_s9, %s1313_s6 }
  0x3d   : > { %p1322_p0 = scmp.lt.u32.totalorder %s1313_s6, %s1589_s30 }
  0x3e   : > { %p1316_p9 = pnand %p1315_p8, %p1314_p7  ;;  %p1321_p1 = por %p1320_p6, %p1319_p2 }
  0x40   : > { %p1317_p12 = pneg %p1316_p9  ;;  %p1323_p5 = por %p1322_p0, %p1321_p1 }
  0x42   : > { %p1324_p10 = pnand %p1323_p5, %p1317_p12 }
  0x44   : > { %1327 = shalt.err (!%p1324_p10)
}
  0x45   : > { %s1328_s20 = scalar_lea.vmem %s1593_s28, 128  ;;  %s1447_s4 = smov [#allocation4]  }
  0x46   : > { %p1329_p11 = scmp.ne.s32.totalorder %s1593_s28, %s1328_s20  ;;  %s1333_s18 = sshll.u32 %s1447_s4, 4  ;;  %s1334_s18 = int_to_ptr.vmem [resolvable:$false] %s1333_s18 }
  0x47   : > { %s1335_s19 = scalar_lea.vmem %s1334_s18, 256  ;;  %p1336_p9 = scmp.lt.s32.totalorder %s1593_s28, %s1334_s18 }
  0x48   : > { %p1331_p3 = pnand %p1329_p11, %p1315_p8  ;;  %p1337_p2 = scmp.lt.s32.totalorder %s1335_s19, %s1328_s20 }
  0x4a   : > { %p1332_p7 = pneg %p1331_p3  ;;  %p1338_p6 = por %p1337_p2, %p1336_p9 }
  0x4c   : > { %p1339_p1 = pnand %p1338_p6, %p1332_p7 }
  0x4e   : > { %1342 = shalt.err (!%p1339_p1)
}
  0x4f   : > { %s1448_s6 = smov 32   ;;  %s1449_s7 = smov 2  }
  0x50   : > { %1201 = dma.hbm_to_vmem [thread:$0]  (!%p1551_p4), %s1589_s30, 128, %s1593_s28, %s1602_s27, %s1448_s6, %s1448_s6, %s1449_s7  }
  0x51   : > { %190 = sbr.rel (%p1541_p13) target bundleno = 467 (0x1d3), region = 32  ;;  %s1633_s8 = sand.u32 (!%p1541_p13), 1, %s1423_s13  }
  0x52   : > { %s1102_s9 = sshll.u32 (!%p1541_p13), %s1633_s8, 3  ;;  %s193_s10 = scalar_lea.sflag (!%p1541_p13), [#allocation5], %s1633_s8 }
  0x53   : > { %s196_s11 = scalar_lea.vmem (!%p1541_p13), [#allocation4], %s1102_s9  ;;  %p2048_p8 = scmp.ne.s32.totalorder (!%p1541_p13), %s2041_s22, 0 }
  0x58   : > { %1400 = dma.done.wait (%p2048_p8), %s193_s10, 128  }
  0x59   : > { %1402 = vsyncadd (%p2048_p8), %s193_s10, 4294967168  ;;  %p2049_p12 = scmp.ne.s32.totalorder %s2040_s21, 0 }
  0x5b   : > { %1404 = dma.done.wait (%p2049_p12), [#allocation7], 128  }
  0x5c   : > { %1406 = vsyncadd (%p2049_p12), [#allocation7], 4294967168 }
  0x5d   : > { %1408 = dma.done.wait (%p2049_p12), [#allocation8], 16  }
  0x5e   : > { %1410 = vsyncadd (%p2049_p12), [#allocation8], 4294967280 }
  0x5f   : > { %209 = sfence }
  0x60   : > { %s1105_s25 = sshll.u32 %s1633_s8, 4  ;;  %v1450_v0 = vmov 0.0  }
  0x61   : > { %232 = vst [vmem:[#allocation2] sm:$0x1] %v1450_v0  ;;  %233 = vst [vmem:[#allocation2 + $0x4] sm:$0x1] %v1450_v0  ;;  %s1650_s22 = scalar_lea.vmem [#allocation11], %s1105_s25 }
  0x62   : > { %234 = vst [vmem:[#allocation2 + $0x8] sm:$0x1] %v1450_v0  ;;  %235 = vst [vmem:[#allocation2 + $0xc] sm:$0x1] %v1450_v0 }
  0x63   : > { %236 = vst [vmem:[#allocation2 + $0x3] sm:$0x1] %v1450_v0  ;;  %237 = vst [vmem:[#allocation2 + $0x7] sm:$0x1] %v1450_v0 }
  0x64   : > { %238 = vst [vmem:[#allocation2 + $0xb] sm:$0x1] %v1450_v0  ;;  %239 = vst [vmem:[#allocation2 + $0xf] sm:$0x1] %v1450_v0 }
  0x65   : > { %v258_v1 = vld [vmem:[%s196_s11] sm:$0x3]  ;;  %v260_v2 = vld [vmem:[%s196_s11 + $0x2] sm:$0x3]  ;;  %v262_v3 = vld [vmem:[%s196_s11 + $0x4] sm:$0x3] }
  0x66   : > { %259 = vst [vmem:[#allocation2 + $0x1] sm:$0x3] %v258_v1  ;;  %261 = vst [vmem:[#allocation2 + $0x5] sm:$0x3] %v260_v2  ;;  %v264_v4 = vld [vmem:[%s196_s11 + $0x6] sm:$0x3] }
  0x67   : > { %263 = vst [vmem:[#allocation2 + $0x9] sm:$0x3] %v262_v3  ;;  %265 = vst [vmem:[#allocation2 + $0xd] sm:$0x3] %v264_v4 }
  0x68   : > { %304 = vsyncadd [#allocation12], 128 }
  0x69   : > { %1411 = dma.done.wait [#allocation12], 128 }
  0x6a   : > { %1412 = vsyncadd [#allocation12], 4294967168  ;;  %s1451_s21 = smov 16   ;;  %s1452_s29 = smov 17   ;;  %v310_v61 = vlaneseq }
  0x6b   : > { %s1453_s30 = smov 15   ;;  %s1454_s28 = smov 1  }
  0x6c   : > { %s1455_s27 = smov 127   ;;  %s1456_s20 = smov 113   ;;  %v1708_v0 = vand.u32 127, %v310_v61 }
  0x6d   : > { %v339_v5 = vld [vmem:[#allocation2] sm:$0x3]  ;;  %v1112_v13 = vld [vmem:[#allocation2 + $0x2] sm:$0x3]  ;;  %s1457_s4 = smov 112   ;;  %s1458_s18 = smov 111  }
  0x6e   : > { %v327_v6 = vld [vmem:[#allocation2] sm:$0x3]  ;;  %341 = vrot.lane.b32.xlu1 %v339_v5, %s1451_s21  ;;  %v1114_v15 = vld [vmem:[#allocation2 + $0x2] sm:$0x3]  ;;  %v1120_v21 = vld [vmem:[#allocation2 + $0x5] sm:$0x3] }
  0x6f   : > { %331 = vrot.lane.b32.xlu0 %v327_v6, %s1452_s29  ;;  %v1107_v7 = vld [vmem:[#allocation2 + $0x1] sm:$0x3]  ;;  %v1119_v22 = vld [vmem:[#allocation2 + $0x4] sm:$0x3]  ;;  %v1129_v29 = vld [vmem:[#allocation2 + $0x6] sm:$0x3] }
  0x70   : > { %v1106_v8 = vld [vmem:[#allocation2 + $0x1] sm:$0x3]  ;;  %v1122_v23 = vld [vmem:[#allocation2 + $0x5] sm:$0x3]  ;;  %v1137_v37 = vld [vmem:[#allocation2 + $0x9] sm:$0x3] }
  0x71   : > { %v1108_v9 = vld [vmem:[#allocation2 + $0x1] sm:$0x3]  ;;  %v1121_v24 = vld [vmem:[#allocation2 + $0x4] sm:$0x3]  ;;  %v1131_v31 = vld [vmem:[#allocation2 + $0x6] sm:$0x3] }
  0x72   : > { %343 = vrot.lane.b32.xlu1 %v1107_v7, %s1451_s21  ;;  %v349_v10 = vld [vmem:[#allocation2] sm:$0x3]  ;;  %v1116_v17 = vld [vmem:[#allocation2 + $0x2] sm:$0x3]  ;;  %v1124_v25 = vld [vmem:[#allocation2 + $0x5] sm:$0x3] }
  0x73   : > { %333 = vrot.lane.b32.xlu0 %v1106_v8, %s1452_s29  ;;  %v1109_v11 = vld [vmem:[#allocation2 + $0x1] sm:$0x3]  ;;  %v1123_v26 = vld [vmem:[#allocation2 + $0x4] sm:$0x3]  ;;  %v1133_v33 = vld [vmem:[#allocation2 + $0x6] sm:$0x3] }
  0x74   : > { %v360_v12 = vld [vmem:[#allocation2] sm:$0x3]  ;;  %v1118_v19 = vld [vmem:[#allocation2 + $0x2] sm:$0x3]  ;;  %v1126_v27 = vld [vmem:[#allocation2 + $0x5] sm:$0x3] }
  0x75   : > { %v1111_v14 = vld [vmem:[#allocation2 + $0x1] sm:$0x3]  ;;  %v1125_v28 = vld [vmem:[#allocation2 + $0x4] sm:$0x3]  ;;  %v1135_v35 = vld [vmem:[#allocation2 + $0x6] sm:$0x3] }
  0x76   : > { %353 = vrot.lane.b32.xlu1 %v1108_v9, %s1453_s30  ;;  %v1113_v16 = vld [vmem:[#allocation2 + $0x1] sm:$0x3]  ;;  %v1128_v30 = vld [vmem:[#allocation2 + $0x5] sm:$0x3]  ;;  %v1136_v38 = vld [vmem:[#allocation2 + $0x8] sm:$0x3] }
  0x77   : > { %351 = vrot.lane.b32.xlu0 %v349_v10, %s1453_s30  ;;  %v1115_v18 = vld [vmem:[#allocation2 + $0x1] sm:$0x3]  ;;  %v1130_v32 = vld [vmem:[#allocation2 + $0x5] sm:$0x3]  ;;  %v1141_v39 = vld [vmem:[#allocation2 + $0x9] sm:$0x3] }
  0x78   : > { %v1117_v20 = vld [vmem:[#allocation2 + $0x1] sm:$0x3]  ;;  %v1132_v34 = vld [vmem:[#allocation2 + $0x5] sm:$0x3]  ;;  %v1140_v40 = vld [vmem:[#allocation2 + $0x8] sm:$0x3] }
  0x79   : > { %v1134_v36 = vld [vmem:[#allocation2 + $0x5] sm:$0x3]  ;;  %v1143_v41 = vld [vmem:[#allocation2 + $0x9] sm:$0x3]  ;;  %v1154_v49 = vld [vmem:[#allocation2 + $0xd] sm:$0x3] }
  0x7a   : > { %364 = vrot.lane.b32.xlu1 %v1109_v11, %s1454_s28  ;;  %v1142_v42 = vld [vmem:[#allocation2 + $0x8] sm:$0x3]  ;;  %v1146_v43 = vld [vmem:[#allocation2 + $0xa] sm:$0x3]  ;;  %v1153_v50 = vld [vmem:[#allocation2 + $0xc] sm:$0x3] }
  0x7b   : > { %362 = vrot.lane.b32.xlu0 %v360_v12, %s1454_s28  ;;  %v1145_v44 = vld [vmem:[#allocation2 + $0x9] sm:$0x3]  ;;  %v1158_v51 = vld [vmem:[#allocation2 + $0xd] sm:$0x3]  ;;  %v1110_v1 = vld [vmem:[#allocation2 + $0x1] sm:$0x3] }
  0x7c   : > { %v1148_v45 = vld [vmem:[#allocation2 + $0xa] sm:$0x3]  ;;  %v1157_v52 = vld [vmem:[#allocation2 + $0xc] sm:$0x3]  ;;  %v1163_v55 = vld [vmem:[#allocation2 + $0xe] sm:$0x3] }
  0x7d   : > { %v1147_v46 = vld [vmem:[#allocation2 + $0x9] sm:$0x3]  ;;  %v1160_v53 = vld [vmem:[#allocation2 + $0xd] sm:$0x3]  ;;  %v1127_v2 = vld [vmem:[#allocation2 + $0x5] sm:$0x3] }
  0x7e   : > { %380 = vrot.lane.b32.xlu1 %v1112_v13, %s1455_s27  ;;  %v1152_v47 = vld [vmem:[#allocation2 + $0xa] sm:$0x3]  ;;  %v1159_v54 = vld [vmem:[#allocation2 + $0xc] sm:$0x3]  ;;  %v1165_v57 = vld [vmem:[#allocation2 + $0xe] sm:$0x3] }
  0x7f   : > { %378 = vrot.lane.b32.xlu0 %v1111_v14, %s1455_s27  ;;  %v1151_v48 = vld [vmem:[#allocation2 + $0x9] sm:$0x3]  ;;  %v1162_v56 = vld [vmem:[#allocation2 + $0xd] sm:$0x3]  ;;  %373 = vst [vmem:[#allocation3 + $0x8] sm:$0x3] %v1110_v1 }
  0x80   : > { %v1164_v58 = vld [vmem:[#allocation2 + $0xd] sm:$0x3]  ;;  %v1139_v62 = vld [vmem:[#allocation2 + $0x9] sm:$0x3]  ;;  %464 = vst [vmem:[#allocation3 + $0x1a] sm:$0x3] %v1127_v2 }
  0x81   : > { %v1169_v59 = vld [vmem:[#allocation2 + $0xe] sm:$0x3]  ;;  %v1138_v63 = vld [vmem:[#allocation2 + $0x8] sm:$0x3]  ;;  %v1150_v5 = vld [vmem:[#allocation2 + $0xa] sm:$0x3] }
  0x82   : > { %391 = vrot.lane.b32.xlu1 %v1114_v15, %s1456_s20  ;;  %v1168_v60 = vld [vmem:[#allocation2 + $0xd] sm:$0x3]  ;;  %v1144_v3 = vld [vmem:[#allocation2 + $0x9] sm:$0x3]  ;;  %v316_v7 = vand.u32 15, %v1708_v0  ;;  %vm345_vm0 = vcmp.lt.s32.totalorder %v1708_v0, 16 }
  0x83   : > { %389 = vrot.lane.b32.xlu0 %v1113_v16, %s1456_s20  ;;  %551 = vst [vmem:[#allocation3 + $0x2c] sm:$0x3] %v1144_v3  ;;  %v1161_v4 = vld [vmem:[#allocation2 + $0xd] sm:$0x3]  ;;  %v1149_v6 = vld [vmem:[#allocation2 + $0x9] sm:$0x3] }
  0x84   : > { %638 = vst [vmem:[#allocation3 + $0x3e] sm:$0x3] %v1161_v4  ;;  %vm335_vm1 = vcmp.lt.s32.totalorder %v1708_v0, 17  ;;  %vm1717_vm2 = vcmp.ge.s32.totalorder %v316_v7, 1  ;;  %v1156_v11 = vld [vmem:[#allocation2 + $0xd] sm:$0x3] }
  0x85   : > { %v1155_v12 = vld [vmem:[#allocation2 + $0xc] sm:$0x3]  ;;  %vm355_vm3 = vcmp.lt.s32.totalorder %v1708_v0, 15  ;;  %vm1730_vm4 = vcmp.lt.s32.totalorder %v316_v7, 15  ;;  %vm366_vm5 = vcmp.lt.s32.totalorder %v1708_v0, 1  ;;  %vm382_vm6 = vcmp.lt.s32.totalorder %v1708_v0, 127 }
  0x86   : > { %402 = vrot.lane.b32.xlu1 %v1116_v17, %s1457_s4  ;;  %vm393_vm7 = vcmp.lt.s32.totalorder %v1708_v0, 113  ;;  %vm404_vm8 = vcmp.lt.s32.totalorder %v1708_v0, 112  ;;  %vm414_vm9 = vcmp.lt.s32.totalorder %v1708_v0, 111  ;;  %s1847_s19 = smov 0  }
  0x87   : > { %400 = vrot.lane.b32.xlu0 %v1115_v18, %s1457_s4 }
  0x8a   : > { %412 = vrot.lane.b32.xlu1 %v1118_v19, %s1458_s18  ;;  %v1167_v19 = vld [vmem:[#allocation2 + $0xe] sm:$0x3] }
  0x8b   : > { %410 = vrot.lane.b32.xlu0 %v1117_v20, %s1458_s18  ;;  %v1166_v20 = vld [vmem:[#allocation2 + $0xd] sm:$0x3] }
  0x8e   : > { %427 = vrot.lane.b32.xlu1 %v1120_v21, %s1452_s29 }
  0x8f   : > { %425 = vrot.lane.b32.xlu0 %v1119_v22, %s1452_s29 }
  0x92   : > { %437 = vrot.lane.b32.xlu1 %v1122_v23, %s1451_s21 }
  0x93   : > { %435 = vrot.lane.b32.xlu0 %v1121_v24, %s1451_s21 }
  0x96   : > { %446 = vrot.lane.b32.xlu1 %v1124_v25, %s1453_s30 }
  0x97   : > { %444 = vrot.lane.b32.xlu0 %v1123_v26, %s1453_s30 }
  0x9a   : > { %456 = vrot.lane.b32.xlu1 %v1126_v27, %s1454_s28 }
  0x9b   : > { %454 = vrot.lane.b32.xlu0 %v1125_v28, %s1454_s28 }
  0x9e   : > { %471 = vrot.lane.b32.xlu1 %v1129_v29, %s1455_s27 }
  0x9f   : > { %469 = vrot.lane.b32.xlu0 %v1128_v30, %s1455_s27 }
  0xa2   : > { %481 = vrot.lane.b32.xlu1 %v1131_v31, %s1456_s20 }
  0xa3   : > { %479 = vrot.lane.b32.xlu0 %v1130_v32, %s1456_s20 }
  0xa6   : > { %491 = vrot.lane.b32.xlu1 %v1133_v33, %s1457_s4 }
  0xa7   : > { %489 = vrot.lane.b32.xlu0 %v1132_v34, %s1457_s4 }
  0xaa   : > { %500 = vrot.lane.b32.xlu1 %v1135_v35, %s1458_s18 }
  0xab   : > { %498 = vrot.lane.b32.xlu0 %v1134_v36, %s1458_s18 }
  0xae   : > { %514 = vrot.lane.b32.xlu1 %v1137_v37, %s1452_s29 }
  0xaf   : > { %512 = vrot.lane.b32.xlu0 %v1136_v38, %s1452_s29 }
  0xb2   : > { %533 = vrot.lane.b32.xlu1 %v1141_v39, %s1453_s30 }
  0xb3   : > { %531 = vrot.lane.b32.xlu0 %v1140_v40, %s1453_s30 }
  0xb6   : > { %543 = vrot.lane.b32.xlu1 %v1143_v41, %s1454_s28 }
  0xb7   : > { %541 = vrot.lane.b32.xlu0 %v1142_v42, %s1454_s28 }
  0xba   : > { %558 = vrot.lane.b32.xlu1 %v1146_v43, %s1455_s27 }
  0xbb   : > { %556 = vrot.lane.b32.xlu0 %v1145_v44, %s1455_s27 }
  0xbe   : > { %568 = vrot.lane.b32.xlu1 %v1148_v45, %s1456_s20 }
  0xbf   : > { %566 = vrot.lane.b32.xlu0 %v1147_v46, %s1456_s20 }
  0xc2   : > { %587 = vrot.lane.b32.xlu1 %v1152_v47, %s1458_s18 }
  0xc3   : > { %585 = vrot.lane.b32.xlu0 %v1151_v48, %s1458_s18 }
  0xc6   : > { %601 = vrot.lane.b32.xlu1 %v1154_v49, %s1452_s29 }
  0xc7   : > { %599 = vrot.lane.b32.xlu0 %v1153_v50, %s1452_s29 }
  0xca   : > { %620 = vrot.lane.b32.xlu1 %v1158_v51, %s1453_s30 }
  0xcb   : > { %618 = vrot.lane.b32.xlu0 %v1157_v52, %s1453_s30 }
  0xce   : > { %630 = vrot.lane.b32.xlu1 %v1160_v53, %s1454_s28 }
  0xcf   : > { %628 = vrot.lane.b32.xlu0 %v1159_v54, %s1454_s28 }
  0xd2   : > { %645 = vrot.lane.b32.xlu1 %v1163_v55, %s1455_s27 }
  0xd3   : > { %643 = vrot.lane.b32.xlu0 %v1162_v56, %s1455_s27 }
  0xd6   : > { %655 = vrot.lane.b32.xlu1 %v1165_v57, %s1456_s20 }
  0xd7   : > { %653 = vrot.lane.b32.xlu0 %v1164_v58, %s1456_s20 }
  0xda   : > { %674 = vrot.lane.b32.xlu1 %v1169_v59, %s1458_s18 }
  0xdb   : > { %672 = vrot.lane.b32.xlu0 %v1168_v60, %s1458_s18 }
  0xde   : > { %524 = vrot.lane.b32.xlu1 %v1139_v62, %s1451_s21 }
  0xdf   : > { %522 = vrot.lane.b32.xlu0 %v1138_v63, %s1451_s21 }
  0xe0   : > { %v342_v8 = vpop.permute.xlu1 %341 }
  0xe1   : > { %v332_v9 = vpop.permute.xlu0 %331 }
  0xe2   : > { %578 = vrot.lane.b32.xlu1 %v1150_v5, %s1457_s4 }
  0xe3   : > { %576 = vrot.lane.b32.xlu0 %v1149_v6, %s1457_s4 }
  0xe4   : > { %v344_v13 = vpop.permute.xlu1 %343 }
  0xe5   : > { %v334_v14 = vpop.permute.xlu0 %333  ;;  %v346_v15 = vsel %vm345_vm0, %v342_v8, %v344_v13 }
  0xe6   : > { %v336_v16 = vsel %vm335_vm1, %v332_v9, %v334_v14  ;;  %348 = vst [vmem:[#allocation3 + $0x2] sm:$0x3] %v346_v15  ;;  %611 = vrot.lane.b32.xlu1 %v1156_v11, %s1451_s21 }
  0xe7   : > { %v337_v17 = vsel %vm1717_vm2, %v336_v16, 0.0  ;;  %609 = vrot.lane.b32.xlu0 %v1155_v12, %s1451_s21 }
  0xe8   : > { %338 = vst [vmem:[#allocation3] sm:$0x3] %v337_v17  ;;  %v354_v21 = vpop.permute.xlu1 %353 }
  0xe9   : > { %v352_v22 = vpop.permute.xlu0 %351 }
  0xea   : > { %v356_v23 = vsel %vm355_vm3, %v352_v22, %v354_v21  ;;  %665 = vrot.lane.b32.xlu1 %v1167_v19, %s1457_s4 }
  0xeb   : > { %v357_v24 = vsel %vm1730_vm4, %v356_v23, 0.0  ;;  %663 = vrot.lane.b32.xlu0 %v1166_v20, %s1457_s4 }
  0xec   : > { %359 = vst [vmem:[#allocation3 + $0x4] sm:$0x3] %v357_v24  ;;  %v365_v25 = vpop.permute.xlu1 %364 }
  0xed   : > { %v363_v26 = vpop.permute.xlu0 %362 }
  0xee   : > { %v367_v27 = vsel %vm366_vm5, %v363_v26, %v365_v25 }
  0xef   : > { %v368_v28 = vsel %vm1717_vm2, %v367_v27, 0.0 }
  0xf0   : > { %370 = vst [vmem:[#allocation3 + $0x6] sm:$0x3] %v368_v28  ;;  %v381_v29 = vpop.permute.xlu1 %380 }
  0xf1   : > { %v379_v30 = vpop.permute.xlu0 %378 }
  0xf2   : > { %v383_v31 = vsel %vm382_vm6, %v379_v30, %v381_v29 }
  0xf3   : > { %v384_v32 = vsel %vm1730_vm4, %v383_v31, 0.0 }
  0xf4   : > { %386 = vst [vmem:[#allocation3 + $0xa] sm:$0x3] %v384_v32  ;;  %v392_v33 = vpop.permute.xlu1 %391 }
  0xf5   : > { %v390_v34 = vpop.permute.xlu0 %389 }
  0xf6   : > { %v394_v35 = vsel %vm393_vm7, %v390_v34, %v392_v33 }
  0xf7   : > { %v395_v36 = vsel %vm1717_vm2, %v394_v35, 0.0 }
  0xf8   : > { %397 = vst [vmem:[#allocation3 + $0xc] sm:$0x3] %v395_v36  ;;  %v403_v37 = vpop.permute.xlu1 %402 }
  0xf9   : > { %v401_v38 = vpop.permute.xlu0 %400 }
  0xfa   : > { %v405_v39 = vsel %vm404_vm8, %v401_v38, %v403_v37 }
  0xfb   : > { %407 = vst [vmem:[#allocation3 + $0xe] sm:$0x3] %v405_v39 }
  0xfc   : > { %v413_v40 = vpop.permute.xlu1 %412 }
  0xfd   : > { %v411_v41 = vpop.permute.xlu0 %410 }
  0xfe   : > { %v415_v42 = vsel %vm414_vm9, %v411_v41, %v413_v40 }
  0xff   : > { %v416_v43 = vsel %vm1730_vm4, %v415_v42, 0.0 }
 0x100   : > { %418 = vst [vmem:[#allocation3 + $0x10] sm:$0x3] %v416_v43  ;;  %v428_v44 = vpop.permute.xlu1 %427 }
 0x101   : > { %v426_v45 = vpop.permute.xlu0 %425 }
 0x102   : > { %v429_v46 = vsel %vm335_vm1, %v426_v45, %v428_v44 }
 0x103   : > { %v430_v47 = vsel %vm1717_vm2, %v429_v46, 0.0 }
 0x104   : > { %432 = vst [vmem:[#allocation3 + $0x12] sm:$0x3] %v430_v47  ;;  %v438_v48 = vpop.permute.xlu1 %437 }
 0x105   : > { %v436_v49 = vpop.permute.xlu0 %435 }
 0x106   : > { %v439_v50 = vsel %vm345_vm0, %v436_v49, %v438_v48 }
 0x107   : > { %441 = vst [vmem:[#allocation3 + $0x14] sm:$0x3] %v439_v50 }
 0x108   : > { %v447_v51 = vpop.permute.xlu1 %446 }
 0x109   : > { %v445_v52 = vpop.permute.xlu0 %444 }
 0x10a   : > { %v448_v53 = vsel %vm355_vm3, %v445_v52, %v447_v51 }
 0x10b   : > { %v449_v54 = vsel %vm1730_vm4, %v448_v53, 0.0 }
 0x10c   : > { %451 = vst [vmem:[#allocation3 + $0x16] sm:$0x3] %v449_v54  ;;  %v457_v55 = vpop.permute.xlu1 %456 }
 0x10d   : > { %v455_v56 = vpop.permute.xlu0 %454 }
 0x10e   : > { %v458_v57 = vsel %vm366_vm5, %v455_v56, %v457_v55 }
 0x10f   : > { %v459_v58 = vsel %vm1717_vm2, %v458_v57, 0.0 }
 0x110   : > { %461 = vst [vmem:[#allocation3 + $0x18] sm:$0x3] %v459_v58  ;;  %v472_v59 = vpop.permute.xlu1 %471 }
 0x111   : > { %v470_v60 = vpop.permute.xlu0 %469 }
 0x112   : > { %v473_v61 = vsel %vm382_vm6, %v470_v60, %v472_v59 }
 0x113   : > { %v474_v62 = vsel %vm1730_vm4, %v473_v61, 0.0 }
 0x114   : > { %476 = vst [vmem:[#allocation3 + $0x1c] sm:$0x3] %v474_v62  ;;  %v482_v63 = vpop.permute.xlu1 %481 }
 0x115   : > { %v480_v1 = vpop.permute.xlu0 %479 }
 0x116   : > { %v483_v2 = vsel %vm393_vm7, %v480_v1, %v482_v63 }
 0x117   : > { %v484_v3 = vsel %vm1717_vm2, %v483_v2, 0.0 }
 0x118   : > { %486 = vst [vmem:[#allocation3 + $0x1e] sm:$0x3] %v484_v3  ;;  %v492_v4 = vpop.permute.xlu1 %491 }
 0x119   : > { %v490_v5 = vpop.permute.xlu0 %489 }
 0x11a   : > { %v493_v6 = vsel %vm404_vm8, %v490_v5, %v492_v4 }
 0x11b   : > { %495 = vst [vmem:[#allocation3 + $0x20] sm:$0x3] %v493_v6 }
 0x11c   : > { %v501_v7 = vpop.permute.xlu1 %500 }
 0x11d   : > { %v499_v8 = vpop.permute.xlu0 %498 }
 0x11e   : > { %v502_v9 = vsel %vm414_vm9, %v499_v8, %v501_v7 }
 0x11f   : > { %v503_v11 = vsel %vm1730_vm4, %v502_v9, 0.0 }
 0x120   : > { %505 = vst [vmem:[#allocation3 + $0x22] sm:$0x3] %v503_v11  ;;  %v515_v12 = vpop.permute.xlu1 %514 }
 0x121   : > { %v513_v13 = vpop.permute.xlu0 %512 }
 0x122   : > { %v516_v14 = vsel %vm335_vm1, %v513_v13, %v515_v12 }
 0x123   : > { %v517_v15 = vsel %vm1717_vm2, %v516_v14, 0.0 }
 0x124   : > { %519 = vst [vmem:[#allocation3 + $0x24] sm:$0x3] %v517_v15  ;;  %v534_v16 = vpop.permute.xlu1 %533 }
 0x125   : > { %v532_v17 = vpop.permute.xlu0 %531 }
 0x126   : > { %v535_v19 = vsel %vm355_vm3, %v532_v17, %v534_v16 }
 0x127   : > { %v536_v20 = vsel %vm1730_vm4, %v535_v19, 0.0 }
 0x128   : > { %538 = vst [vmem:[#allocation3 + $0x28] sm:$0x3] %v536_v20  ;;  %v544_v21 = vpop.permute.xlu1 %543 }
 0x129   : > { %v542_v22 = vpop.permute.xlu0 %541 }
 0x12a   : > { %v545_v23 = vsel %vm366_vm5, %v542_v22, %v544_v21 }
 0x12b   : > { %v546_v24 = vsel %vm1717_vm2, %v545_v23, 0.0 }
 0x12c   : > { %548 = vst [vmem:[#allocation3 + $0x2a] sm:$0x3] %v546_v24  ;;  %v559_v25 = vpop.permute.xlu1 %558 }
 0x12d   : > { %v557_v26 = vpop.permute.xlu0 %556 }
 0x12e   : > { %v560_v27 = vsel %vm382_vm6, %v557_v26, %v559_v25 }
 0x12f   : > { %v561_v28 = vsel %vm1730_vm4, %v560_v27, 0.0 }
 0x130   : > { %563 = vst [vmem:[#allocation3 + $0x2e] sm:$0x3] %v561_v28  ;;  %v569_v29 = vpop.permute.xlu1 %568 }
 0x131   : > { %v567_v30 = vpop.permute.xlu0 %566 }
 0x132   : > { %v570_v31 = vsel %vm393_vm7, %v567_v30, %v569_v29 }
 0x133   : > { %v571_v32 = vsel %vm1717_vm2, %v570_v31, 0.0 }
 0x134   : > { %573 = vst [vmem:[#allocation3 + $0x30] sm:$0x3] %v571_v32  ;;  %v588_v33 = vpop.permute.xlu1 %587 }
 0x135   : > { %v586_v34 = vpop.permute.xlu0 %585 }
 0x136   : > { %v589_v35 = vsel %vm414_vm9, %v586_v34, %v588_v33 }
 0x137   : > { %v590_v36 = vsel %vm1730_vm4, %v589_v35, 0.0 }
 0x138   : > { %592 = vst [vmem:[#allocation3 + $0x34] sm:$0x3] %v590_v36  ;;  %v602_v37 = vpop.permute.xlu1 %601 }
 0x139   : > { %v600_v38 = vpop.permute.xlu0 %599 }
 0x13a   : > { %v603_v39 = vsel %vm335_vm1, %v600_v38, %v602_v37 }
 0x13b   : > { %v604_v40 = vsel %vm1717_vm2, %v603_v39, 0.0 }
 0x13c   : > { %606 = vst [vmem:[#allocation3 + $0x36] sm:$0x3] %v604_v40  ;;  %v621_v41 = vpop.permute.xlu1 %620 }
 0x13d   : > { %v619_v42 = vpop.permute.xlu0 %618 }
 0x13e   : > { %v622_v43 = vsel %vm355_vm3, %v619_v42, %v621_v41 }
 0x13f   : > { %v623_v44 = vsel %vm1730_vm4, %v622_v43, 0.0 }
 0x140   : > { %625 = vst [vmem:[#allocation3 + $0x3a] sm:$0x3] %v623_v44  ;;  %v631_v45 = vpop.permute.xlu1 %630 }
 0x141   : > { %v629_v46 = vpop.permute.xlu0 %628 }
 0x142   : > { %v632_v47 = vsel %vm366_vm5, %v629_v46, %v631_v45 }
 0x143   : > { %v633_v48 = vsel %vm1717_vm2, %v632_v47, 0.0 }
 0x144   : > { %635 = vst [vmem:[#allocation3 + $0x3c] sm:$0x3] %v633_v48  ;;  %v646_v49 = vpop.permute.xlu1 %645 }
 0x145   : > { %v644_v50 = vpop.permute.xlu0 %643 }
 0x146   : > { %v647_v51 = vsel %vm382_vm6, %v644_v50, %v646_v49 }
 0x147   : > { %v648_v52 = vsel %vm1730_vm4, %v647_v51, 0.0 }
 0x148   : > { %650 = vst [vmem:[#allocation3 + $0x40] sm:$0x3] %v648_v52  ;;  %v656_v53 = vpop.permute.xlu1 %655 }
 0x149   : > { %v654_v54 = vpop.permute.xlu0 %653 }
 0x14a   : > { %v657_v55 = vsel %vm393_vm7, %v654_v54, %v656_v53 }
 0x14b   : > { %v658_v56 = vsel %vm1717_vm2, %v657_v55, 0.0 }
 0x14c   : > { %660 = vst [vmem:[#allocation3 + $0x42] sm:$0x3] %v658_v56  ;;  %v675_v57 = vpop.permute.xlu1 %674 }
 0x14d   : > { %v673_v58 = vpop.permute.xlu0 %672 }
 0x14e   : > { %v676_v59 = vsel %vm414_vm9, %v673_v58, %v675_v57 }
 0x14f   : > { %v677_v60 = vsel %vm1730_vm4, %v676_v59, 0.0 }
 0x150   : > { %679 = vst [vmem:[#allocation3 + $0x46] sm:$0x3] %v677_v60  ;;  %v525_v61 = vpop.permute.xlu1 %524 }
 0x151   : > { %v523_v62 = vpop.permute.xlu0 %522 }
 0x152   : > { %v526_v63 = vsel %vm345_vm0, %v523_v62, %v525_v61 }
 0x153   : > { %528 = vst [vmem:[#allocation3 + $0x26] sm:$0x3] %v526_v63 }
 0x154   : > { %v579_v1 = vpop.permute.xlu1 %578 }
 0x155   : > { %v577_v2 = vpop.permute.xlu0 %576 }
 0x156   : > { %v580_v10 = vsel %vm404_vm8, %v577_v2, %v579_v1 }
 0x157   : > { %582 = vst [vmem:[#allocation3 + $0x32] sm:$0x3] %v580_v10 }
 0x158   : > { %v612_v3 = vpop.permute.xlu1 %611 }
 0x159   : > { %v610_v4 = vpop.permute.xlu0 %609 }
 0x15a   : > { %v613_v5 = vsel %vm345_vm0, %v610_v4, %v612_v3 }
 0x15b   : > { %615 = vst [vmem:[#allocation3 + $0x38] sm:$0x3] %v613_v5 }
 0x15c   : > { %v666_v18 = vpop.permute.xlu1 %665 }
 0x15d   : > { %v664_v6 = vpop.permute.xlu0 %663 }
 0x15e   : > { %v667_v7 = vsel %vm404_vm8, %v664_v6, %v666_v18 }
 0x15f   : > { %669 = vst [vmem:[#allocation3 + $0x44] sm:$0x3] %v667_v7 }
 0x160 LB: >> { %s1853_s6 = sshll.u32 %s1443_s19, 7  ;;  %v688_v0 = vld [vmem:[#allocation3] sm:$0x3]  ;;  %v694_v8 = vld [vmem:[#allocation3 + $0x2] sm:$0x3]  ;;  %s1443_s19 = sphi %s1847_s19, %s685_s19  }
 0x161   : >> { %s687_s7 = sld [smem:[#allocation9 + %s1853_s6]]  ;;  %s692_s9 = sadd.s32 1, %s1853_s6  ;;  %v700_v11 = vld [vmem:[#allocation3 + $0x4] sm:$0x3]  ;;  %v706_v14 = vld [vmem:[#allocation3 + $0x6] sm:$0x3] }
 0x162   : >> { %s693_s10 = sld [smem:[#allocation9 + %s692_s9]]  ;;  %s698_s11 = sadd.s32 2, %s1853_s6  ;;  %v712_v20 = vld [vmem:[#allocation3 + $0x8] sm:$0x3]  ;;  %v718_v24 = vld [vmem:[#allocation3 + $0xa] sm:$0x3] }
 0x163   : >> { %s699_s25 = sld [smem:[#allocation9 + %s698_s11]]  ;;  %s704_s21 = sadd.s32 3, %s1853_s6  ;;  %v724_v28 = vld [vmem:[#allocation3 + $0xc] sm:$0x3]  ;;  %v730_v32 = vld [vmem:[#allocation3 + $0xe] sm:$0x3] }
 0x164   : >> { %s705_s29 = sld [smem:[#allocation9 + %s704_s21]]  ;;  %s710_s30 = sadd.s32 4, %s1853_s6  ;;  %v736_v36 = vld [vmem:[#allocation3 + $0x10] sm:$0x3]  ;;  %v742_v40 = vld [vmem:[#allocation3 + $0x12] sm:$0x3] }
 0x165   : >> { %s711_s28 = sld [smem:[#allocation9 + %s710_s30]]  ;;  %s716_s27 = sadd.s32 5, %s1853_s6  ;;  %v748_v44 = vld [vmem:[#allocation3 + $0x14] sm:$0x3]  ;;  %v754_v48 = vld [vmem:[#allocation3 + $0x16] sm:$0x3] }
 0x166   : >> { %s1861_s20 = sld [smem:[#allocation9 + %s716_s27]]  ;;  %s722_s4 = sadd.s32 6, %s1853_s6  ;;  %v760_v52 = vld [vmem:[#allocation3 + $0x18] sm:$0x3]  ;;  %v766_v56 = vld [vmem:[#allocation3 + $0x1a] sm:$0x3] }
 0x167   : >> { %v689_v9 = vstv %s687_s7  ;;  %s1864_s18 = sld [smem:[#allocation9 + %s722_s4]]  ;;  %s728_s0 = sadd.s32 7, %s1853_s6  ;;  %v772_v60 = vld [vmem:[#allocation3 + $0x1c] sm:$0x3]  ;;  %v778_v1 = vld [vmem:[#allocation3 + $0x1e] sm:$0x3] }
 0x168   : >> { %v690_v12 = vmul.f32 %v689_v9, %v688_v0  ;;  %v695_v13 = vstv %s693_s10  ;;  %s1867_s9 = sld [smem:[#allocation9 + %s728_s0]]  ;;  %s734_s11 = sadd.s32 8, %s1853_s6  ;;  %v784_v4 = vld [vmem:[#allocation3 + $0x20] sm:$0x3]  ;;  %v790_v7 = vld [vmem:[#allocation3 + $0x22] sm:$0x3] }
 0x169   : >> { %v696_v15 = vmul.f32 %v695_v13, %v694_v8  ;;  %v701_v16 = vstv %s699_s25  ;;  %s740_s21 = sadd.s32 9, %s1853_s6  ;;  %s1871_s7 = sld [smem:[#allocation9 + %s734_s11]] }
 0x16a   : >> { %v702_v17 = vmul.f32 %v701_v16, %v700_v11  ;;  %v707_v19 = vstv %s705_s29  ;;  %s746_s10 = sadd.s32 10, %s1853_s6  ;;  %s1875_s0 = sld [smem:[#allocation9 + %s740_s21]]  ;;  %v796_v11 = vld [vmem:[#allocation3 + $0x24] sm:$0x3] }
 0x16b   : >> { %v697_v21 = vadd.f32 %v696_v15, %v690_v12  ;;  %v708_v22 = vmul.f32 %v707_v19, %v706_v14  ;;  %v713_v23 = vstv %s711_s28  ;;  %s752_s25 = sadd.s32 11, %s1853_s6  ;;  %s1879_s29 = sld [smem:[#allocation9 + %s746_s10]]  ;;  %v802_v15 = vld [vmem:[#allocation3 + $0x26] sm:$0x3] }
 0x16c   : >> { %v719_v25 = vstv %s1861_s20  ;;  %v714_v27 = vmul.f32 %v713_v23, %v712_v20  ;;  %s758_s30 = sadd.s32 12, %s1853_s6  ;;  %s1883_s28 = sld [smem:[#allocation9 + %s752_s25]]  ;;  %v808_v20 = vld [vmem:[#allocation3 + $0x28] sm:$0x3] }
 0x16d   : >> { %v703_v26 = vadd.f32 %v702_v17, %v697_v21  ;;  %v725_v29 = vstv %s1864_s18  ;;  %v720_v31 = vmul.f32 %v719_v25, %v718_v24  ;;  %s764_s27 = sadd.s32 13, %s1853_s6  ;;  %s1887_s20 = sld [smem:[#allocation9 + %s758_s30]]  ;;  %v814_v24 = vld [vmem:[#allocation3 + $0x2a] sm:$0x3] }
 0x16e   : >> { %v731_v33 = vstv %s1867_s9  ;;  %v726_v35 = vmul.f32 %v725_v29, %v724_v28  ;;  %s770_s4 = sadd.s32 14, %s1853_s6  ;;  %s1891_s18 = sld [smem:[#allocation9 + %s764_s27]]  ;;  %v820_v28 = vld [vmem:[#allocation3 + $0x2c] sm:$0x3] }
 0x16f   : >> { %v709_v30 = vadd.f32 %v708_v22, %v703_v26  ;;  %v737_v37 = vstv %s1871_s7  ;;  %v732_v39 = vmul.f32 %v731_v33, %v730_v32  ;;  %s776_s9 = sadd.s32 15, %s1853_s6  ;;  %s1895_s11 = sld [smem:[#allocation9 + %s770_s4]]  ;;  %v826_v32 = vld [vmem:[#allocation3 + $0x2e] sm:$0x3] }
 0x170   : >> { %v743_v41 = vstv %s1875_s0  ;;  %v738_v43 = vmul.f32 %v737_v37, %v736_v36  ;;  %s782_s21 = sadd.s32 16, %s1853_s6  ;;  %s1899_s7 = sld [smem:[#allocation9 + %s776_s9]]  ;;  %v832_v36 = vld [vmem:[#allocation3 + $0x30] sm:$0x3] }
 0x171   : >> { %v715_v34 = vadd.f32 %v714_v27, %v709_v30  ;;  %v749_v45 = vstv %s1879_s29  ;;  %v744_v47 = vmul.f32 %v743_v41, %v742_v40  ;;  %s788_s10 = sadd.s32 17, %s1853_s6  ;;  %s1903_s0 = sld [smem:[#allocation9 + %s782_s21]]  ;;  %v838_v40 = vld [vmem:[#allocation3 + $0x32] sm:$0x3] }
 0x172   : >> { %v755_v49 = vstv %s1883_s28  ;;  %v750_v51 = vmul.f32 %v749_v45, %v748_v44  ;;  %s794_s25 = sadd.s32 18, %s1853_s6  ;;  %s1907_s29 = sld [smem:[#allocation9 + %s788_s10]]  ;;  %v844_v44 = vld [vmem:[#allocation3 + $0x34] sm:$0x3] }
 0x173   : >> { %v721_v38 = vadd.f32 %v720_v31, %v715_v34  ;;  %v761_v53 = vstv %s1887_s20  ;;  %v756_v55 = vmul.f32 %v755_v49, %v754_v48  ;;  %s800_s30 = sadd.s32 19, %s1853_s6  ;;  %s1911_s28 = sld [smem:[#allocation9 + %s794_s25]]  ;;  %v850_v48 = vld [vmem:[#allocation3 + $0x36] sm:$0x3] }
 0x174   : >> { %v767_v57 = vstv %s1891_s18  ;;  %v762_v59 = vmul.f32 %v761_v53, %v760_v52  ;;  %s806_s27 = sadd.s32 20, %s1853_s6  ;;  %s1915_s20 = sld [smem:[#allocation9 + %s800_s30]]  ;;  %v856_v52 = vld [vmem:[#allocation3 + $0x38] sm:$0x3] }
 0x175   : >> { %v727_v42 = vadd.f32 %v726_v35, %v721_v38  ;;  %v773_v61 = vstv %s1895_s11  ;;  %v768_v63 = vmul.f32 %v767_v57, %v766_v56  ;;  %s812_s4 = sadd.s32 21, %s1853_s6  ;;  %s1919_s18 = sld [smem:[#allocation9 + %s806_s27]]  ;;  %v862_v56 = vld [vmem:[#allocation3 + $0x3a] sm:$0x3] }
 0x176   : >> { %v779_v2 = vstv %s1899_s7  ;;  %v774_v3 = vmul.f32 %v773_v61, %v772_v60  ;;  %s818_s9 = sadd.s32 22, %s1853_s6  ;;  %s1923_s11 = sld [smem:[#allocation9 + %s812_s4]]  ;;  %v868_v60 = vld [vmem:[#allocation3 + $0x3c] sm:$0x3] }
 0x177   : >> { %v733_v46 = vadd.f32 %v732_v39, %v727_v42  ;;  %v785_v5 = vstv %s1903_s0  ;;  %v780_v6 = vmul.f32 %v779_v2, %v778_v1  ;;  %s824_s21 = sadd.s32 23, %s1853_s6  ;;  %s1927_s7 = sld [smem:[#allocation9 + %s818_s9]]  ;;  %v874_v1 = vld [vmem:[#allocation3 + $0x3e] sm:$0x3] }
 0x178   : >> { %v791_v0 = vstv %s1907_s29  ;;  %v786_v9 = vmul.f32 %v785_v5, %v784_v4  ;;  %s830_s10 = sadd.s32 24, %s1853_s6  ;;  %s1931_s0 = sld [smem:[#allocation9 + %s824_s21]]  ;;  %v880_v4 = vld [vmem:[#allocation3 + $0x40] sm:$0x3] }
 0x179   : >> { %v739_v50 = vadd.f32 %v738_v43, %v733_v46  ;;  %v797_v12 = vstv %s1911_s28  ;;  %v792_v14 = vmul.f32 %v791_v0, %v790_v7  ;;  %s836_s25 = sadd.s32 25, %s1853_s6  ;;  %s1935_s29 = sld [smem:[#allocation9 + %s830_s10]]  ;;  %v886_v7 = vld [vmem:[#allocation3 + $0x42] sm:$0x3] }
 0x17a   : >> { %v803_v16 = vstv %s1915_s20  ;;  %v798_v19 = vmul.f32 %v797_v12, %v796_v11  ;;  %s842_s30 = sadd.s32 26, %s1853_s6  ;;  %s1939_s28 = sld [smem:[#allocation9 + %s836_s25]]  ;;  %v892_v11 = vld [vmem:[#allocation3 + $0x44] sm:$0x3] }
 0x17b   : >> { %v745_v54 = vadd.f32 %v744_v47, %v739_v50  ;;  %v809_v21 = vstv %s1919_s18  ;;  %v804_v23 = vmul.f32 %v803_v16, %v802_v15  ;;  %s848_s27 = sadd.s32 27, %s1853_s6  ;;  %s1943_s20 = sld [smem:[#allocation9 + %s842_s30]]  ;;  %v898_v15 = vld [vmem:[#allocation3 + $0x46] sm:$0x3] }
 0x17c   : >> { %v815_v25 = vstv %s1923_s11  ;;  %v810_v27 = vmul.f32 %v809_v21, %v808_v20  ;;  %s854_s4 = sadd.s32 28, %s1853_s6  ;;  %s1947_s18 = sld [smem:[#allocation9 + %s848_s27]] }
 0x17d   : >> { %v751_v58 = vadd.f32 %v750_v51, %v745_v54  ;;  %v821_v29 = vstv %s1927_s7  ;;  %v816_v31 = vmul.f32 %v815_v25, %v814_v24  ;;  %s860_s9 = sadd.s32 29, %s1853_s6  ;;  %s1951_s11 = sld [smem:[#allocation9 + %s854_s4]] }
 0x17e   : >> { %v827_v33 = vstv %s1931_s0  ;;  %v822_v35 = vmul.f32 %v821_v29, %v820_v28  ;;  %s866_s21 = sadd.s32 30, %s1853_s6  ;;  %s1955_s7 = sld [smem:[#allocation9 + %s860_s9]] }
 0x17f   : >> { %v757_v62 = vadd.f32 %v756_v55, %v751_v58  ;;  %v833_v37 = vstv %s1935_s29  ;;  %v828_v39 = vmul.f32 %v827_v33, %v826_v32  ;;  %s872_s10 = sadd.s32 31, %s1853_s6  ;;  %s1959_s0 = sld [smem:[#allocation9 + %s866_s21]] }
 0x180   : >> { %v839_v41 = vstv %s1939_s28  ;;  %v834_v43 = vmul.f32 %v833_v37, %v832_v36  ;;  %s878_s25 = sadd.s32 32, %s1853_s6  ;;  %s873_s29 = sld [smem:[#allocation9 + %s872_s10]] }
 0x181   : >> { %v763_v10 = vadd.f32 %v762_v59, %v757_v62  ;;  %v845_v45 = vstv %s1943_s20  ;;  %v840_v47 = vmul.f32 %v839_v41, %v838_v40  ;;  %s884_s30 = sadd.s32 33, %s1853_s6  ;;  %s879_s28 = sld [smem:[#allocation9 + %s878_s25]] }
 0x182   : >> { %v851_v49 = vstv %s1947_s18  ;;  %v846_v51 = vmul.f32 %v845_v45, %v844_v44  ;;  %s890_s27 = sadd.s32 34, %s1853_s6  ;;  %s885_s20 = sld [smem:[#allocation9 + %s884_s30]] }
 0x183   : >> { %v769_v18 = vadd.f32 %v768_v63, %v763_v10  ;;  %v857_v53 = vstv %s1951_s11  ;;  %v852_v55 = vmul.f32 %v851_v49, %v850_v48  ;;  %s896_s4 = sadd.s32 35, %s1853_s6  ;;  %s891_s18 = sld [smem:[#allocation9 + %s890_s27]] }
 0x184   : >> { %v863_v57 = vstv %s1955_s7  ;;  %v858_v59 = vmul.f32 %v857_v53, %v856_v52  ;;  %s897_s9 = sld [smem:[#allocation9 + %s896_s4]]  ;;  %s1171_s11 = sshll.u32 %s1443_s19, 1 }
 0x185   : >> { %v775_v8 = vadd.f32 %v774_v3, %v769_v18  ;;  %v869_v61 = vstv %s1959_s0  ;;  %v864_v63 = vmul.f32 %v863_v57, %v862_v56  ;;  %s902_s6 = sld [smem:[#allocation10 + %s1443_s19]]  ;;  %s911_s21 = scalar_lea.vmem %s1650_s22, %s1171_s11 [#allocation11] }
 0x186   : >> { %v875_v2 = vstv %s873_s29  ;;  %v870_v3 = vmul.f32 %v869_v61, %v868_v60  ;;  %s685_s19 = sadd.s32 1, %s1443_s19  }
 0x187   : >> { %v781_v13 = vadd.f32 %v780_v6, %v775_v8  ;;  %v881_v5 = vstv %s879_s28  ;;  %v876_v6 = vmul.f32 %v875_v2, %v874_v1  ;;  %p682_p13 = scmp.ge.s32.totalorder %s685_s19, 8  }
 0x188   : >> { %v887_v0 = vstv %s885_s20  ;;  %s1178_s7 = sshll.u32 (%p682_p13), %s1431_s15, 8  ;;  %s928_s29 = sshll.u32 (%p682_p13), %s1650_s22, 4  ;;  %s1982_s29 = int_to_ptr.vmem [resolvable:$true] %s928_s29 }
 0x189   : >> { %v787_v17 = vadd.f32 %v786_v9, %v781_v13  ;;  %v882_v9 = vmul.f32 %v881_v5, %v880_v4  ;;  %v893_v12 = vstv %s891_s18  ;;  %s1979_s25 = scalar_lea.hbm (%p682_p13), %s2034_s3, %s1178_s7  ;;  %s914_s30 = scalar_lea.sflag (%p682_p13), [#allocation6], %s1633_s8 }
 0x18a   : >> { %v899_v16 = vstv %s897_s9  ;;  %s1343_s28 = scalar_lea.vmem (%p682_p13), %s1982_s29, 256  ;;  %p2054_p0 = scmp.ne.s32.totalorder (%p682_p13), %s2042_s23, 0 }
 0x18b   : >> { %v793_v22 = vadd.f32 %v792_v14, %v787_v17  ;;  %v888_v14 = vmul.f32 %v887_v0, %v886_v7  ;;  %v900_v21 = vmul.f32 %v899_v16, %v898_v15  ;;  %p1344_p4 = scmp.ne.s32.totalorder (%p682_p13), %s1982_s29, %s1343_s28  ;;  %s1459_s19 = smov (%p682_p13), [#allocation11]  }
 0x18c   : > { %s1347_s27 = sshll.u32 (%p682_p13), %s1459_s19, 4  ;;  %s1348_s27 = int_to_ptr.vmem [resolvable:$false] %s1347_s27 }
 0x18d   : >> { %v799_v26 = vadd.f32 %v798_v19, %v793_v22  ;;  %v894_v19 = vmul.f32 %v893_v12, %v892_v11  ;;  %p1345_p5 = pnand (%p682_p13), %p1344_p4, %p2054_p0  ;;  %s1349_s15 = scalar_lea.vmem (%p682_p13), %s1348_s27, 512 }
 0x18e   : > { %p1350_p11 = scmp.lt.s32.totalorder (%p682_p13), %s1982_s29, %s1348_s27  ;;  %p1351_p3 = scmp.lt.s32.totalorder (%p682_p13), %s1349_s15, %s1343_s28 }
 0x18f   : >> { %v805_v30 = vadd.f32 %v804_v23, %v799_v26  ;;  %v903_v23 = vstv %s902_s6  ;;  %p1346_p10 = pneg (%p682_p13), %p1345_p5 }
 0x190   : > { %p1352_p7 = por (%p682_p13), %p1351_p3, %p1350_p11 }
 0x191   : >> { %v811_v34 = vadd.f32 %v810_v27, %v805_v30 }
 0x192   : > { %p1353_p9 = pnand (%p682_p13), %p1352_p7, %p1346_p10 }
 0x193   : >> { %v817_v38 = vadd.f32 %v816_v31, %v811_v34 }
 0x195   : >> { %v823_v42 = vadd.f32 %v822_v35, %v817_v38 }
 0x197   : >> { %v829_v46 = vadd.f32 %v828_v39, %v823_v42 }
 0x199   : >> { %v835_v50 = vadd.f32 %v834_v43, %v829_v46 }
 0x19b   : >> { %v841_v54 = vadd.f32 %v840_v47, %v835_v50 }
 0x19d   : >> { %v847_v58 = vadd.f32 %v846_v51, %v841_v54 }
 0x19f   : >> { %v853_v62 = vadd.f32 %v852_v55, %v847_v58 }
 0x1a1   : >> { %v859_v10 = vadd.f32 %v858_v59, %v853_v62 }
 0x1a3   : >> { %v865_v18 = vadd.f32 %v864_v63, %v859_v10 }
 0x1a5   : >> { %v871_v8 = vadd.f32 %v870_v3, %v865_v18 }
 0x1a7   : >> { %v877_v13 = vadd.f32 %v876_v6, %v871_v8 }
 0x1a9   : >> { %v883_v17 = vadd.f32 %v882_v9, %v877_v13 }
 0x1ab   : >> { %v889_v20 = vadd.f32 %v888_v14, %v883_v17 }
 0x1ad   : >> { %v895_v22 = vadd.f32 %v894_v19, %v889_v20 }
 0x1af   : >> { %v901_v24 = vadd.f32 %v900_v21, %v895_v22 }
 0x1b1   : >> { %v904_v25 = vadd.f32 %v903_v23, %v901_v24 }
 0x1b3   : >> { %v906_v26 = vmul.f32 0.70710677, %v904_v25  ;;  %v905_v27 = vmul.f32 0.5, %v904_v25 }
 0x1b5   : >> { %1283 = verf.f32 %v906_v26 }
 0x1be   : > { %684 = sbr.rel (!%p682_p13) target bundleno = 352 (0x160), region = 199 }
 0x1bf   : >> { %v1284_v28 = vpop.eup %1283 }
 0x1c0   : >> { %v908_v29 = vadd.f32 1.0, %v1284_v28 }
 0x1c2   : >> { %v909_v30 = vmul.f32 %v908_v29, %v905_v27 }
 0x1c4   : >> { %912 = vst [vmem:[%s911_s21] sm:$0x3] %v909_v30 }
 0x1c5   : > { %1356 = shalt.err (!%p1353_p9)
}
 0x1c6   : > { %s1357_s22 = scalar_lea.hbm %s1979_s25, 256  ;;  %s1361_s18 = scalar_lea.hbm %s2034_s3, 512 }
 0x1c7   : > { %p1358_p2 = scmp.ne.s32.totalorder %s1979_s25, %s1357_s22  ;;  %p1362_p8 = scmp.lt.u32.totalorder %s1979_s25, %s2034_s3 }
 0x1c8   : > { %p1363_p12 = scmp.lt.u32.totalorder %s1361_s18, %s1357_s22  ;;  %p1365_p4 = scmp.lt.u32.totalorder %s1357_s22, %s1979_s25 }
 0x1c9   : > { %p1359_p6 = pnand %p1358_p2, %p2054_p0 }
 0x1ca   : > { %p1364_p13 = por %p1363_p12, %p1362_p8 }
 0x1cb   : > { %p1360_p1 = pneg %p1359_p6 }
 0x1cc   : > { %p1366_p5 = por %p1365_p4, %p1364_p13 }
 0x1ce   : > { %p1367_p10 = pnand %p1366_p5, %p1360_p1 }
 0x1d0   : > { %1370 = shalt.err (!%p1367_p10)
}
 0x1d1   : > { %s1460_s11 = smov 32   ;;  %s1461_s21 = smov 2  }
 0x1d2   : > { %1189 = dma.vmem_to_hbm [thread:$0]  (%p2054_p0), %s1982_s29, 256, %s1979_s25, %s914_s30, %s1460_s11, %s1460_s11, %s1461_s21  }
 0x1d3 PF: > { %s943_s7 = sand.u32 1, %s1419_s12   ;;  %p2055_p11 = scmp.ne.s32.totalorder %s2043_s24, 0 }
 0x1d4   : > { %p2056_p3 = scmp.ge.s32.totalorder %s1439_s17, 2  ;;  %s944_s10 = scalar_lea.sflag [#allocation6], %s943_s7 }
 0x1d6   : > { %p1203_p7 = pnand %p2056_p3, %p2055_p11 }
 0x1d8   : > { %1414 = dma.done.wait (!%p1203_p7), %s944_s10, 256  }
 0x1d9   : > { %1416 = vsyncadd (!%p1203_p7), %s944_s10, 4294967040  ;;  %s21_s17 = sadd.s32 1, %s1439_s17   ;;  %s2057_s12 = smov %s1423_s13 }
 0x1da   : > { %p18_p9 = scmp.ge.s32.totalorder %s21_s17, 4   ;;  %s2058_s13 = smov %s1427_s14 }
 0x1db   : > { %s2059_s14 = smov %s1598_s26  ;;  %s2060_s15 = smov %s1435_s16 }
 0x1dc   : > { %s2061_s16 = smov %s2063_s5  ;;  %20 = sbr.rel (!%p18_p9) target bundleno = 10 (0xa), region = 210 }
 0x1e3   :  { %949 = vsyncpa [#allocation5], 1 }
 0x1e4   :  { %951 = vsyncpa [#allocation5 + $0x1], 1 }
 0x1e5   :  { %952 = vsyncpa [#allocation6], 1 }
 0x1e6   :  { %954 = vsyncpa [#allocation6 + $0x1], 1 }
 0x1e7   :  { %955 = vsyncpa [#allocation7], 1 }
 0x1e8   :  { %957 = vsyncpa [#allocation7 + $0x1], 1 }
 0x1e9   :  { %958 = vsyncpa [#allocation8], 1 }
 0x1ea   :  { %960 = vsyncpa [#allocation8 + $0x1], 1 }

</bundles_post_ra>
